<compile_context>
chip_gen: v5e
topology: v5e:2x2
jax: 0.10.0
libtpu: 0.0.40
codegen_flags: <defaults>
</compile_context>

<pallas_src>
import functools

import jax
import jax.numpy as jnp
from jax import lax
from jax.experimental import pallas as pl
from jax.experimental.pallas import tpu as pltpu

F32 = jnp.float32

# ---------------------------------------------------------------------------
# Hyper-parameters (module defaults scaled down to small synthetic sizes).
# ---------------------------------------------------------------------------
INPUT_DIM = 6
ENC_HIDDEN = 32         # encoder_hidden_dim
ENC_LATENT = 16         # encoder_latent_dim
CTX_HIDDEN = 32         # context_hidden_dim
PRED_HIDDEN = 32        # prediction_hidden_dim
NUM_STEPS = 5
TEMPERATURE = 0.1
NUM_CONV_LAYERS = 3
KERNEL_SIZE = 3
BN_EPS = 1e-5

# ---------------------------------------------------------------------------
# Packed-buffer layouts (row offsets shared by host packing and the kernel).
# ---------------------------------------------------------------------------
# Encoder buffer: lane width = ENC_HIDDEN.
ENC_BIN_ROW = 0                                           # (1, H)   in-proj bias
ENC_BC_ROW = 1                                            # (NL, H)  folded conv+BN bias
ENC_BOUT_ROW = ENC_BC_ROW + NUM_CONV_LAYERS               # (1, L)   out-proj bias (cols 0:L)
ENC_WIN_ROW = 8                                           # (D, H)   in-proj weight^T
ENC_WC_ROW = 16                                           # 9 x (H, H) conv taps
ENC_WOUT_ROW = ENC_WC_ROW + NUM_CONV_LAYERS * KERNEL_SIZE * ENC_HIDDEN   # (H, L)
ENC_ROWS = ENC_WOUT_ROW + ENC_HIDDEN

# GRU buffer: lane width = 3 * CTX_HIDDEN, fused gate order (r, z, n).
GRU_WIH1_ROW = 0
GRU_WHH1_ROW = GRU_WIH1_ROW + ENC_LATENT
GRU_WIH2_ROW = GRU_WHH1_ROW + CTX_HIDDEN
GRU_WHH2_ROW = GRU_WIH2_ROW + CTX_HIDDEN
GRU_BIH1_ROW = GRU_WHH2_ROW + CTX_HIDDEN
GRU_BHH1_ROW = GRU_BIH1_ROW + 1
GRU_BIH2_ROW = GRU_BHH1_ROW + 1
GRU_BHH2_ROW = GRU_BIH2_ROW + 1
GRU_ROWS = GRU_BHH2_ROW + 1

# Prediction buffer: lane width = NUM_STEPS * PRED_HIDDEN.
PRED_W1_ROW = 0                                           # (C, S*Hp)   all first layers
PRED_W2_ROW = PRED_W1_ROW + CTX_HIDDEN                    # (S*Hp, S*L) block-diagonal
PRED_B1_ROW = PRED_W2_ROW + NUM_STEPS * PRED_HIDDEN       # (1, S*Hp)
PRED_B2_ROW = PRED_B1_ROW + 1                             # (1, S*L)
PRED_ROWS = PRED_B2_ROW + 1


# ---------------------------------------------------------------------------
# Fused kernel: one grid block == one batch element (sequence).
# ---------------------------------------------------------------------------
def cpc_kernel(x_ref, enc_ref, gru_ref, predw_ref,
               z_ref, c_ref, preds_ref, loss_ref,
               hpad_ref, *, with_loss):
    T, L = z_ref.shape
    C = c_ref.shape[1]
    H = ENC_HIDDEN
    K = KERNEL_SIZE
    S = NUM_STEPS
    PW = NUM_STEPS * PRED_HIDDEN
    PL = NUM_STEPS * ENC_LATENT
    D = x_ref.shape[1]

    # ---------------- Encoder ------------------------------------------------
    # Linear -> 3x [Conv1d(k=3, pad=1) + BN(eval, folded) + ReLU + residual]
    # -> Linear.  The block is a single sequence, so the +/-1 conv taps are
    # plain offset loads from a zero-haloed scratch (no boundary masks needed).
    x = x_ref[...]                                                   # (T, D)
    win = enc_ref[ENC_WIN_ROW:ENC_WIN_ROW + D, :]                    # (D, H)
    bin_ = enc_ref[ENC_BIN_ROW:ENC_BIN_ROW + 1, :]                   # (1, H)
    h = jnp.dot(x, win, preferred_element_type=F32) + bin_           # (T, H)

    hpad_ref[...] = jnp.zeros_like(hpad_ref)     # halo rows 0 and T+1 stay zero
    for l in range(NUM_CONV_LAYERS):
        hpad_ref[1:T + 1, :] = h
        base = ENC_WC_ROW + l * K * H
        # tap k=1 (center) uses h directly (already in vregs)
        acc = jnp.dot(h, enc_ref[base + H:base + 2 * H, :],
                      preferred_element_type=F32)
        # tap k=0 -> input[t-1]
        acc = acc + jnp.dot(hpad_ref[0:T, :], enc_ref[base:base + H, :],
                            preferred_element_type=F32)
        # tap k=2 -> input[t+1]
        acc = acc + jnp.dot(hpad_ref[2:T + 2, :],
                            enc_ref[base + 2 * H:base + 3 * H, :],
                            preferred_element_type=F32)
        bc = enc_ref[ENC_BC_ROW + l:ENC_BC_ROW + l + 1, :]           # folded BN bias
        h = h + jnp.maximum(acc + bc, 0.0)        # Dropout(eval)=identity, residual

    wout = enc_ref[ENC_WOUT_ROW:ENC_WOUT_ROW + H, 0:L]               # (H, L)
    bout = enc_ref[ENC_BOUT_ROW:ENC_BOUT_ROW + 1, 0:L]               # (1, L)
    z_val = jnp.dot(h, wout, preferred_element_type=F32) + bout      # (T, L)
    z_ref[...] = z_val                                               # one dense store

    # ---------------- 2-layer GRU, fused gates, time fully unrolled ----------
    wih1 = gru_ref[GRU_WIH1_ROW:GRU_WIH1_ROW + L, :]                 # (L, 3C)
    whh1 = gru_ref[GRU_WHH1_ROW:GRU_WHH1_ROW + C, :]                 # (C, 3C)
    wih2 = gru_ref[GRU_WIH2_ROW:GRU_WIH2_ROW + C, :]
    whh2 = gru_ref[GRU_WHH2_ROW:GRU_WHH2_ROW + C, :]
    bih1 = gru_ref[GRU_BIH1_ROW:GRU_BIH1_ROW + 1, :]
    bhh1 = gru_ref[GRU_BHH1_ROW:GRU_BHH1_ROW + 1, :]
    bih2 = gru_ref[GRU_BIH2_ROW:GRU_BIH2_ROW + 1, :]
    bhh2 = gru_ref[GRU_BHH2_ROW:GRU_BHH2_ROW + 1, :]

    def gru_cell(x_t, h_prev, wih, whh, bih, bhh):
        # PyTorch nn.GRU, fused gate order (r, z, n) -> 2 matmuls / step.
        gi = jnp.dot(x_t, wih, preferred_element_type=F32) + bih     # (1, 3C)
        gh = jnp.dot(h_prev, whh, preferred_element_type=F32) + bhh  # (1, 3C)
        r = jax.nn.sigmoid(gi[:, 0:C] + gh[:, 0:C])
        u = jax.nn.sigmoid(gi[:, C:2 * C] + gh[:, C:2 * C])
        n = jnp.tanh(gi[:, 2 * C:3 * C] + r * gh[:, 2 * C:3 * C])
        return (1.0 - u) * n + u * h_prev

    h1 = jnp.zeros((1, C), F32)
    h2 = jnp.zeros((1, C), F32)
    for t in range(T):                       # static unroll (T small & known)
        x_t = z_val[t:t + 1, :]                                      # (1, L)
        h1 = gru_cell(x_t, h1, wih1, whh1, bih1, bhh1)
        # inter-layer dropout (eval) = identity
        h2 = gru_cell(h1, h2, wih2, whh2, bih2, bhh2)
        c_ref[t:t + 1, :] = h2                                       # row store

    # ---------------- Prediction network: all num_steps MLPs in 2 matmuls ----
    w1 = predw_ref[PRED_W1_ROW:PRED_W1_ROW + C, :]                   # (C, S*Hp)
    b1 = predw_ref[PRED_B1_ROW:PRED_B1_ROW + 1, :]                   # (1, S*Hp)
    w2 = predw_ref[PRED_W2_ROW:PRED_W2_ROW + PW, 0:PL]               # (S*Hp, S*L) block-diag
    b2 = predw_ref[PRED_B2_ROW:PRED_B2_ROW + 1, 0:PL]                # (1, S*L)
    hid = jnp.maximum(jnp.dot(h2, w1, preferred_element_type=F32) + b1, 0.0)
    preds_flat = jnp.dot(hid, w2, preferred_element_type=F32) + b2   # (1, S*L)
    preds_ref[0] = preds_flat                                        # (1, 1, S*L)

    # ---------------- InfoNCE loss (per-block partial) ------------------------
    # Every row of torch's (T-k, T-k) similarity matrix is identical (the
    # prediction is constant over rows), so the diagonal mean of its
    # log_softmax equals the mean over valid targets -- exact rewrite.
    if with_loss:
        inv_temp = F32(1.0 / TEMPERATURE)
        t_iota = lax.broadcasted_iota(jnp.int32, (1, T), 1)
        partial = jnp.zeros((1, 1), F32)
        for si in range(S):
            step = si + 1
            pred_s = preds_flat[:, si * L:(si + 1) * L]              # (1, L)
            sim = lax.dot_general(pred_s, z_val, (((1,), (1,)), ((), ())),
                                  preferred_element_type=F32) * inv_temp  # (1, T)
            valid = t_iota >= step                                   # targets z[step:]
            sim_m = jnp.where(valid, sim, -1e30)
            mx = jnp.max(sim_m, axis=1, keepdims=True)
            lse = mx + jnp.log(jnp.sum(jnp.where(valid, jnp.exp(sim_m - mx), 0.0),
                                       axis=1, keepdims=True))
            per = jnp.sum(jnp.where(valid, sim - lse, 0.0),
                          axis=1, keepdims=True)                     # (1, 1)
            partial = partial + per / F32(T - step)
        loss_ref[0] = -partial            # wrapper sums & divides by S*B
    else:
        loss_ref[0] = jnp.zeros((1, 1), F32)


# ---------------------------------------------------------------------------
# Wrapper: one fused pallas_call, grid over batch ("parallel" -> both v7x TCs).
# ---------------------------------------------------------------------------
def _const_spec(shape):
    nd = len(shape)
    return pl.BlockSpec(shape, lambda b, _nd=nd: (0,) * _nd)


@functools.partial(jax.jit, static_argnames=("compute_loss",))
def cpc_forward(x, kp, compute_loss=True):
    B, T, D = x.shape
    with_loss = bool(compute_loss) and (T > NUM_STEPS)
    x2 = x.reshape(B * T, D)                                   # free host-side view
    PL = NUM_STEPS * ENC_LATENT

    out_shapes = (jax.ShapeDtypeStruct((B * T, ENC_LATENT), F32),
                  jax.ShapeDtypeStruct((B * T, CTX_HIDDEN), F32),
                  jax.ShapeDtypeStruct((B, 1, PL), F32),
                  jax.ShapeDtypeStruct((B, 1, 1), F32))

    z2, c2, preds, loss_p = pl.pallas_call(
        functools.partial(cpc_kernel, with_loss=with_loss),
        out_shape=out_shapes,
        grid=(B,),
        in_specs=[pl.BlockSpec((T, D), lambda b: (b, 0)),
                  _const_spec(kp['enc'].shape),
                  _const_spec(kp['gru'].shape),
                  _const_spec(kp['pred'].shape)],
        out_specs=(pl.BlockSpec((T, ENC_LATENT), lambda b: (b, 0)),
                   pl.BlockSpec((T, CTX_HIDDEN), lambda b: (b, 0)),
                   pl.BlockSpec((1, 1, PL), lambda b: (b, 0, 0)),
                   pl.BlockSpec((1, 1, 1), lambda b: (b, 0, 0))),
        scratch_shapes=[pltpu.VMEM((T + 2, ENC_HIDDEN), F32)],
        compiler_params=pltpu.CompilerParams(
            dimension_semantics=("parallel",)),
    )(x2, kp['enc'], kp['gru'], kp['pred'])

    z = z2.reshape(B, T, ENC_LATENT)
    c = c2.reshape(B, T, CTX_HIDDEN)
    preds2 = preds.reshape(B, PL)
    result = {'z': z, 'c': c,
              'predictions': [preds2[:, s * ENC_LATENT:(s + 1) * ENC_LATENT]
                              for s in range(NUM_STEPS)]}
    if with_loss:
        result['loss'] = jnp.sum(loss_p) / F32(NUM_STEPS * B)
    return result


# ---------------------------------------------------------------------------
# Parameters: synthetic weights in native PyTorch layouts + host-side prep
# (BatchNorm fold, transposes, buffer packing) into the 3 kernel buffers.
# ---------------------------------------------------------------------------
def init_params(key):
    keys = iter(jax.random.split(key, 24))

    def nrm(shape, scale=0.1):
        return (scale * jax.random.normal(next(keys), shape)).astype(F32)

    H, L, D, C, Hp, S = (ENC_HIDDEN, ENC_LATENT, INPUT_DIM, CTX_HIDDEN,
                         PRED_HIDDEN, NUM_STEPS)
    p = {}
    # Encoder
    p['enc_in_w'] = nrm((H, D))                       # nn.Linear(D, H).weight
    p['enc_in_b'] = nrm((H,))
    p['enc_conv_w'] = nrm((NUM_CONV_LAYERS, H, H, KERNEL_SIZE))  # Conv1d.weight
    p['enc_conv_b'] = nrm((NUM_CONV_LAYERS, H))
    p['enc_bn_gamma'] = jnp.ones((NUM_CONV_LAYERS, H), F32)      # fresh-init BN
    p['enc_bn_beta'] = jnp.zeros((NUM_CONV_LAYERS, H), F32)
    p['enc_bn_mean'] = jnp.zeros((NUM_CONV_LAYERS, H), F32)
    p['enc_bn_var'] = jnp.ones((NUM_CONV_LAYERS, H), F32)
    p['enc_out_w'] = nrm((L, H))                      # nn.Linear(H, L).weight
    p['enc_out_b'] = nrm((L,))
    # GRU: weight_ih_l{k} is (3H, in), fused gate order (r, z, n)
    p['gru_w_ih_l0'] = nrm((3 * C, L)); p['gru_w_hh_l0'] = nrm((3 * C, C))
    p['gru_b_ih_l0'] = nrm((3 * C,));   p['gru_b_hh_l0'] = nrm((3 * C,))
    p['gru_w_ih_l1'] = nrm((3 * C, C)); p['gru_w_hh_l1'] = nrm((3 * C, C))
    p['gru_b_ih_l1'] = nrm((3 * C,));   p['gru_b_hh_l1'] = nrm((3 * C,))
    # Prediction MLPs (nn.Linear weights per step)
    p['pred_w1'] = nrm((S, Hp, C)); p['pred_b1'] = nrm((S, Hp))
    p['pred_w2'] = nrm((S, L, Hp)); p['pred_b2'] = nrm((S, L))
    return p


def prepare_params(p):
    """Fold eval-mode BatchNorm into the conv weights/bias and pack everything
    into the 3 contiguous buffers the fused kernel consumes."""
    H, L, D, C, Hp, S, K, NL = (ENC_HIDDEN, ENC_LATENT, INPUT_DIM, CTX_HIDDEN,
                                PRED_HIDDEN, NUM_STEPS, KERNEL_SIZE,
                                NUM_CONV_LAYERS)
    # --- encoder buffer (lane width H) ---
    scale = p['enc_bn_gamma'] * lax.rsqrt(p['enc_bn_var'] + BN_EPS)   # (NL, H)
    w_fold = p['enc_conv_w'] * scale[:, :, None, None]                # per out-ch
    b_fold = (p['enc_conv_b'] - p['enc_bn_mean']) * scale + p['enc_bn_beta']

    enc = jnp.zeros((ENC_ROWS, H), F32)
    enc = enc.at[ENC_BIN_ROW].set(p['enc_in_b'])
    enc = enc.at[ENC_BC_ROW:ENC_BC_ROW + NL].set(b_fold)
    enc = enc.at[ENC_BOUT_ROW, :L].set(p['enc_out_b'])
    enc = enc.at[ENC_WIN_ROW:ENC_WIN_ROW + D].set(p['enc_in_w'].T)
    for l in range(NL):
        for k in range(K):
            r0 = ENC_WC_ROW + (l * K + k) * H
            enc = enc.at[r0:r0 + H].set(w_fold[l, :, :, k].T)         # (in, out)
    enc = enc.at[ENC_WOUT_ROW:ENC_WOUT_ROW + H, :L].set(p['enc_out_w'].T)

    # --- GRU buffer (lane width 3C, fused gate order preserved) ---
    gru = jnp.zeros((GRU_ROWS, 3 * C), F32)
    gru = gru.at[GRU_WIH1_ROW:GRU_WIH1_ROW + L].set(p['gru_w_ih_l0'].T)
    gru = gru.at[GRU_WHH1_ROW:GRU_WHH1_ROW + C].set(p['gru_w_hh_l0'].T)
    gru = gru.at[GRU_WIH2_ROW:GRU_WIH2_ROW + C].set(p['gru_w_ih_l1'].T)
    gru = gru.at[GRU_WHH2_ROW:GRU_WHH2_ROW + C].set(p['gru_w_hh_l1'].T)
    gru = gru.at[GRU_BIH1_ROW].set(p['gru_b_ih_l0'])
    gru = gru.at[GRU_BHH1_ROW].set(p['gru_b_hh_l0'])
    gru = gru.at[GRU_BIH2_ROW].set(p['gru_b_ih_l1'])
    gru = gru.at[GRU_BHH2_ROW].set(p['gru_b_hh_l1'])

    # --- prediction buffer (first layers concatenated, second block-diagonal) ---
    pred = jnp.zeros((PRED_ROWS, S * Hp), F32)
    for s in range(S):
        pred = pred.at[PRED_W1_ROW:PRED_W1_ROW + C,
                       s * Hp:(s + 1) * Hp].set(p['pred_w1'][s].T)    # (C, Hp)
        pred = pred.at[PRED_W2_ROW + s * Hp:PRED_W2_ROW + (s + 1) * Hp,
                       s * L:(s + 1) * L].set(p['pred_w2'][s].T)      # (Hp, L)
        pred = pred.at[PRED_B1_ROW, s * Hp:(s + 1) * Hp].set(p['pred_b1'][s])
        pred = pred.at[PRED_B2_ROW, s * L:(s + 1) * L].set(p['pred_b2'][s])

    return {'enc': enc, 'gru': gru, 'pred': pred}


if __name__ == "__main__":
    key = jax.random.PRNGKey(0)
    kx, kp_key = jax.random.split(key)
    B, T = 2, 8                              # seq_len > num_steps -> loss computed
    x = jax.random.normal(kx, (B, T, INPUT_DIM), dtype=F32)
    raw_params = init_params(kp_key)
    kparams = prepare_params(raw_params)

    out = cpc_forward(x, kparams, compute_loss=True)
    jax.block_until_ready(out['z'])
    jax.block_until_ready(out['c'])
    for pr in out['predictions']:
        jax.block_until_ready(pr)
    jax.block_until_ready(out['loss'])

    assert out['z'].shape == (B, T, ENC_LATENT)
    assert out['c'].shape == (B, T, CTX_HIDDEN)
    assert len(out['predictions']) == NUM_STEPS
    assert out['predictions'][0].shape == (B, ENC_LATENT)
    assert out['loss'].shape == ()
    assert bool(jnp.isfinite(out['loss']))
    print("KERNEL_OK")
</pallas_src>

<mosaic_0001>
module attributes {stable_mosaic.version = 11 : i64} {
  func.func @cpc_kernel(%arg0: i32, %arg1: memref<8x6xf32, #tpu.memory_space<vmem>>, %arg2: memref<336x32xf32, #tpu.memory_space<vmem>>, %arg3: memref<116x96xf32, #tpu.memory_space<vmem>>, %arg4: memref<194x160xf32, #tpu.memory_space<vmem>>, %arg5: memref<8x16xf32, #tpu.memory_space<vmem>>, %arg6: memref<8x32xf32, #tpu.memory_space<vmem>>, %arg7: memref<1x1x80xf32, #tpu.memory_space<vmem>>, %arg8: memref<1x1x1xf32, #tpu.memory_space<vmem>>, %arg9: memref<10x32xf32, #tpu.memory_space<vmem>>) attributes {dimension_semantics = [#tpu.dimension_semantics<parallel>], iteration_bounds = array<i64: 2>, scalar_prefetch = 0 : i64, scratch_operands = 1 : i64, tpu.core_type = #tpu.core_type<tc>, window_params = [{transform_indices = @transform_0, window_bounds = array<i64: 8, 6>}, {pipeline_mode = #tpu.pipeline_mode<synchronous>, transform_indices = @transform_1, window_bounds = array<i64: 336, 32>}, {pipeline_mode = #tpu.pipeline_mode<synchronous>, transform_indices = @transform_2, window_bounds = array<i64: 116, 96>}, {pipeline_mode = #tpu.pipeline_mode<synchronous>, transform_indices = @transform_3, window_bounds = array<i64: 194, 160>}, {transform_indices = @transform_4, window_bounds = array<i64: 8, 16>}, {transform_indices = @transform_5, window_bounds = array<i64: 8, 32>}, {transform_indices = @transform_6, window_bounds = array<i64: 1, 1, 80>}, {transform_indices = @transform_7, window_bounds = array<i64: 1, 1, 1>}]} {
    %c0 = arith.constant 0 : index
    %c0_0 = arith.constant 0 : index
    %0 = vector.load %arg1[%c0, %c0_0] : memref<8x6xf32, #tpu.memory_space<vmem>>, vector<8x6xf32>
    %c8 = arith.constant 8 : index
    %c0_1 = arith.constant 0 : index
    %1 = vector.load %arg2[%c8, %c0_1] : memref<336x32xf32, #tpu.memory_space<vmem>>, vector<6x32xf32>
    %c0_2 = arith.constant 0 : index
    %c0_3 = arith.constant 0 : index
    %2 = vector.load %arg2[%c0_2, %c0_3] : memref<336x32xf32, #tpu.memory_space<vmem>>, vector<1x32xf32>
    %cst = arith.constant dense<0.000000e+00> : vector<8x32xf32>
    %3 = tpu.matmul %0, %1, %cst {dimension_numbers = #tpu.dot_dimension_numbers<[1], [0], [0], [1], [0, 0, 1, 1], [], []>} : vector<8x6xf32>, vector<6x32xf32>, vector<8x32xf32> -> vector<8x32xf32>
    %4 = vector.broadcast %2 : vector<1x32xf32> to vector<8x32xf32>
    %5 = arith.addf %3, %4 : vector<8x32xf32>
    %cst_4 = arith.constant 0.000000e+00 : f32
    %6 = vector.broadcast %cst_4 : f32 to vector<10x32xf32>
    %c0_5 = arith.constant 0 : index
    %c0_6 = arith.constant 0 : index
    %7 = vector.load %arg9[%c0_5, %c0_6] : memref<10x32xf32, #tpu.memory_space<vmem>>, vector<10x32xf32>
    tpu.vector_store %arg9[%c0_5, %c0_6], %6 {strides = array<i32>} : memref<10x32xf32, #tpu.memory_space<vmem>>, vector<10x32xf32>,
    %c1 = arith.constant 1 : index
    %c0_7 = arith.constant 0 : index
    %8 = vector.load %arg9[%c1, %c0_7] : memref<10x32xf32, #tpu.memory_space<vmem>>, vector<8x32xf32>
    tpu.vector_store %arg9[%c1, %c0_7], %5 {strides = array<i32>} : memref<10x32xf32, #tpu.memory_space<vmem>>, vector<8x32xf32>,
    %c48 = arith.constant 48 : index
    %c0_8 = arith.constant 0 : index
    %9 = vector.load %arg2[%c48, %c0_8] : memref<336x32xf32, #tpu.memory_space<vmem>>, vector<32x32xf32>
    %cst_9 = arith.constant dense<0.000000e+00> : vector<8x32xf32>
    %10 = tpu.matmul %5, %9, %cst_9 {dimension_numbers = #tpu.dot_dimension_numbers<[1], [0], [0], [1], [0, 0, 1, 1], [], []>} : vector<8x32xf32>, vector<32x32xf32>, vector<8x32xf32> -> vector<8x32xf32>
    %c0_10 = arith.constant 0 : index
    %c0_11 = arith.constant 0 : index
    %11 = vector.load %arg9[%c0_10, %c0_11] : memref<10x32xf32, #tpu.memory_space<vmem>>, vector<8x32xf32>
    %c16 = arith.constant 16 : index
    %c0_12 = arith.constant 0 : index
    %12 = vector.load %arg2[%c16, %c0_12] : memref<336x32xf32, #tpu.memory_space<vmem>>, vector<32x32xf32>
    %cst_13 = arith.constant dense<0.000000e+00> : vector<8x32xf32>
    %13 = tpu.matmul %11, %12, %cst_13 {dimension_numbers = #tpu.dot_dimension_numbers<[1], [0], [0], [1], [0, 0, 1, 1], [], []>} : vector<8x32xf32>, vector<32x32xf32>, vector<8x32xf32> -> vector<8x32xf32>
    %14 = arith.addf %10, %13 : vector<8x32xf32>
    %c2 = arith.constant 2 : index
    %c0_14 = arith.constant 0 : index
    %15 = vector.load %arg9[%c2, %c0_14] : memref<10x32xf32, #tpu.memory_space<vmem>>, vector<8x32xf32>
    %c80 = arith.constant 80 : index
    %c0_15 = arith.constant 0 : index
    %16 = vector.load %arg2[%c80, %c0_15] : memref<336x32xf32, #tpu.memory_space<vmem>>, vector<32x32xf32>
    %cst_16 = arith.constant dense<0.000000e+00> : vector<8x32xf32>
    %17 = tpu.matmul %15, %16, %cst_16 {dimension_numbers = #tpu.dot_dimension_numbers<[1], [0], [0], [1], [0, 0, 1, 1], [], []>} : vector<8x32xf32>, vector<32x32xf32>, vector<8x32xf32> -> vector<8x32xf32>
    %18 = arith.addf %14, %17 : vector<8x32xf32>
    %c1_17 = arith.constant 1 : index
    %c0_18 = arith.constant 0 : index
    %19 = vector.load %arg2[%c1_17, %c0_18] : memref<336x32xf32, #tpu.memory_space<vmem>>, vector<1x32xf32>
    %20 = vector.broadcast %19 : vector<1x32xf32> to vector<8x32xf32>
    %21 = arith.addf %18, %20 : vector<8x32xf32>
    %cst_19 = arith.constant 0.000000e+00 : f32
    %22 = vector.broadcast %cst_19 : f32 to vector<8x32xf32>
    %23 = arith.maximumf %21, %22 : vector<8x32xf32>
    %24 = arith.addf %5, %23 : vector<8x32xf32>
    %c1_20 = arith.constant 1 : index
    %c0_21 = arith.constant 0 : index
    %25 = vector.load %arg9[%c1_20, %c0_21] : memref<10x32xf32, #tpu.memory_space<vmem>>, vector<8x32xf32>
    tpu.vector_store %arg9[%c1_20, %c0_21], %24 {strides = array<i32>} : memref<10x32xf32, #tpu.memory_space<vmem>>, vector<8x32xf32>,
    %c144 = arith.constant 144 : index
    %c0_22 = arith.constant 0 : index
    %26 = vector.load %arg2[%c144, %c0_22] : memref<336x32xf32, #tpu.memory_space<vmem>>, vector<32x32xf32>
    %cst_23 = arith.constant dense<0.000000e+00> : vector<8x32xf32>
    %27 = tpu.matmul %24, %26, %cst_23 {dimension_numbers = #tpu.dot_dimension_numbers<[1], [0], [0], [1], [0, 0, 1, 1], [], []>} : vector<8x32xf32>, vector<32x32xf32>, vector<8x32xf32> -> vector<8x32xf32>
    %c0_24 = arith.constant 0 : index
    %c0_25 = arith.constant 0 : index
    %28 = vector.load %arg9[%c0_24, %c0_25] : memref<10x32xf32, #tpu.memory_space<vmem>>, vector<8x32xf32>
    %c112 = arith.constant 112 : index
    %c0_26 = arith.constant 0 : index
    %29 = vector.load %arg2[%c112, %c0_26] : memref<336x32xf32, #tpu.memory_space<vmem>>, vector<32x32xf32>
    %cst_27 = arith.constant dense<0.000000e+00> : vector<8x32xf32>
    %30 = tpu.matmul %28, %29, %cst_27 {dimension_numbers = #tpu.dot_dimension_numbers<[1], [0], [0], [1], [0, 0, 1, 1], [], []>} : vector<8x32xf32>, vector<32x32xf32>, vector<8x32xf32> -> vector<8x32xf32>
    %31 = arith.addf %27, %30 : vector<8x32xf32>
    %c2_28 = arith.constant 2 : index
    %c0_29 = arith.constant 0 : index
    %32 = vector.load %arg9[%c2_28, %c0_29] : memref<10x32xf32, #tpu.memory_space<vmem>>, vector<8x32xf32>
    %c176 = arith.constant 176 : index
    %c0_30 = arith.constant 0 : index
    %33 = vector.load %arg2[%c176, %c0_30] : memref<336x32xf32, #tpu.memory_space<vmem>>, vector<32x32xf32>
    %cst_31 = arith.constant dense<0.000000e+00> : vector<8x32xf32>
    %34 = tpu.matmul %32, %33, %cst_31 {dimension_numbers = #tpu.dot_dimension_numbers<[1], [0], [0], [1], [0, 0, 1, 1], [], []>} : vector<8x32xf32>, vector<32x32xf32>, vector<8x32xf32> -> vector<8x32xf32>
    %35 = arith.addf %31, %34 : vector<8x32xf32>
    %c2_32 = arith.constant 2 : index
    %c0_33 = arith.constant 0 : index
    %36 = vector.load %arg2[%c2_32, %c0_33] : memref<336x32xf32, #tpu.memory_space<vmem>>, vector<1x32xf32>
    %37 = vector.broadcast %36 : vector<1x32xf32> to vector<8x32xf32>
    %38 = arith.addf %35, %37 : vector<8x32xf32>
    %cst_34 = arith.constant 0.000000e+00 : f32
    %39 = vector.broadcast %cst_34 : f32 to vector<8x32xf32>
    %40 = arith.maximumf %38, %39 : vector<8x32xf32>
    %41 = arith.addf %24, %40 : vector<8x32xf32>
    %c1_35 = arith.constant 1 : index
    %c0_36 = arith.constant 0 : index
    %42 = vector.load %arg9[%c1_35, %c0_36] : memref<10x32xf32, #tpu.memory_space<vmem>>, vector<8x32xf32>
    tpu.vector_store %arg9[%c1_35, %c0_36], %41 {strides = array<i32>} : memref<10x32xf32, #tpu.memory_space<vmem>>, vector<8x32xf32>,
    %c240 = arith.constant 240 : index
    %c0_37 = arith.constant 0 : index
    %43 = vector.load %arg2[%c240, %c0_37] : memref<336x32xf32, #tpu.memory_space<vmem>>, vector<32x32xf32>
    %cst_38 = arith.constant dense<0.000000e+00> : vector<8x32xf32>
    %44 = tpu.matmul %41, %43, %cst_38 {dimension_numbers = #tpu.dot_dimension_numbers<[1], [0], [0], [1], [0, 0, 1, 1], [], []>} : vector<8x32xf32>, vector<32x32xf32>, vector<8x32xf32> -> vector<8x32xf32>
    %c0_39 = arith.constant 0 : index
    %c0_40 = arith.constant 0 : index
    %45 = vector.load %arg9[%c0_39, %c0_40] : memref<10x32xf32, #tpu.memory_space<vmem>>, vector<8x32xf32>
    %c208 = arith.constant 208 : index
    %c0_41 = arith.constant 0 : index
    %46 = vector.load %arg2[%c208, %c0_41] : memref<336x32xf32, #tpu.memory_space<vmem>>, vector<32x32xf32>
    %cst_42 = arith.constant dense<0.000000e+00> : vector<8x32xf32>
    %47 = tpu.matmul %45, %46, %cst_42 {dimension_numbers = #tpu.dot_dimension_numbers<[1], [0], [0], [1], [0, 0, 1, 1], [], []>} : vector<8x32xf32>, vector<32x32xf32>, vector<8x32xf32> -> vector<8x32xf32>
    %48 = arith.addf %44, %47 : vector<8x32xf32>
    %c2_43 = arith.constant 2 : index
    %c0_44 = arith.constant 0 : index
    %49 = vector.load %arg9[%c2_43, %c0_44] : memref<10x32xf32, #tpu.memory_space<vmem>>, vector<8x32xf32>
    %c272 = arith.constant 272 : index
    %c0_45 = arith.constant 0 : index
    %50 = vector.load %arg2[%c272, %c0_45] : memref<336x32xf32, #tpu.memory_space<vmem>>, vector<32x32xf32>
    %cst_46 = arith.constant dense<0.000000e+00> : vector<8x32xf32>
    %51 = tpu.matmul %49, %50, %cst_46 {dimension_numbers = #tpu.dot_dimension_numbers<[1], [0], [0], [1], [0, 0, 1, 1], [], []>} : vector<8x32xf32>, vector<32x32xf32>, vector<8x32xf32> -> vector<8x32xf32>
    %52 = arith.addf %48, %51 : vector<8x32xf32>
    %c3 = arith.constant 3 : index
    %c0_47 = arith.constant 0 : index
    %53 = vector.load %arg2[%c3, %c0_47] : memref<336x32xf32, #tpu.memory_space<vmem>>, vector<1x32xf32>
    %54 = vector.broadcast %53 : vector<1x32xf32> to vector<8x32xf32>
    %55 = arith.addf %52, %54 : vector<8x32xf32>
    %cst_48 = arith.constant 0.000000e+00 : f32
    %56 = vector.broadcast %cst_48 : f32 to vector<8x32xf32>
    %57 = arith.maximumf %55, %56 : vector<8x32xf32>
    %58 = arith.addf %41, %57 : vector<8x32xf32>
    %c304 = arith.constant 304 : index
    %c0_49 = arith.constant 0 : index
    %59 = vector.load %arg2[%c304, %c0_49] : memref<336x32xf32, #tpu.memory_space<vmem>>, vector<32x16xf32>
    %c4 = arith.constant 4 : index
    %c0_50 = arith.constant 0 : index
    %60 = vector.load %arg2[%c4, %c0_50] : memref<336x32xf32, #tpu.memory_space<vmem>>, vector<1x16xf32>
    %cst_51 = arith.constant dense<0.000000e+00> : vector<8x16xf32>
    %61 = tpu.matmul %58, %59, %cst_51 {dimension_numbers = #tpu.dot_dimension_numbers<[1], [0], [0], [1], [0, 0, 1, 1], [], []>} : vector<8x32xf32>, vector<32x16xf32>, vector<8x16xf32> -> vector<8x16xf32>
    %62 = vector.broadcast %60 : vector<1x16xf32> to vector<8x16xf32>
    %63 = arith.addf %61, %62 : vector<8x16xf32>
    %c0_52 = arith.constant 0 : index
    %c0_53 = arith.constant 0 : index
    %64 = vector.load %arg5[%c0_52, %c0_53] : memref<8x16xf32, #tpu.memory_space<vmem>>, vector<8x16xf32>
    tpu.vector_store %arg5[%c0_52, %c0_53], %63 {strides = array<i32>} : memref<8x16xf32, #tpu.memory_space<vmem>>, vector<8x16xf32>,
    %c0_54 = arith.constant 0 : index
    %c0_55 = arith.constant 0 : index
    %65 = vector.load %arg3[%c0_54, %c0_55] : memref<116x96xf32, #tpu.memory_space<vmem>>, vector<16x96xf32>
    %c16_56 = arith.constant 16 : index
    %c0_57 = arith.constant 0 : index
    %66 = vector.load %arg3[%c16_56, %c0_57] : memref<116x96xf32, #tpu.memory_space<vmem>>, vector<32x96xf32>
    %c48_58 = arith.constant 48 : index
    %c0_59 = arith.constant 0 : index
    %67 = vector.load %arg3[%c48_58, %c0_59] : memref<116x96xf32, #tpu.memory_space<vmem>>, vector<32x96xf32>
    %c80_60 = arith.constant 80 : index
    %c0_61 = arith.constant 0 : index
    %68 = vector.load %arg3[%c80_60, %c0_61] : memref<116x96xf32, #tpu.memory_space<vmem>>, vector<32x96xf32>
    %c112_62 = arith.constant 112 : index
    %c0_63 = arith.constant 0 : index
    %69 = vector.load %arg3[%c112_62, %c0_63] : memref<116x96xf32, #tpu.memory_space<vmem>>, vector<1x96xf32>
    %c113 = arith.constant 113 : index
    %c0_64 = arith.constant 0 : index
    %70 = vector.load %arg3[%c113, %c0_64] : memref<116x96xf32, #tpu.memory_space<vmem>>, vector<1x96xf32>
    %c114 = arith.constant 114 : index
    %c0_65 = arith.constant 0 : index
    %71 = vector.load %arg3[%c114, %c0_65] : memref<116x96xf32, #tpu.memory_space<vmem>>, vector<1x96xf32>
    %c115 = arith.constant 115 : index
    %c0_66 = arith.constant 0 : index
    %72 = vector.load %arg3[%c115, %c0_66] : memref<116x96xf32, #tpu.memory_space<vmem>>, vector<1x96xf32>
    %cst_67 = arith.constant 0.000000e+00 : f32
    %73 = vector.broadcast %cst_67 : f32 to vector<1x32xf32>
    %cst_68 = arith.constant 0.000000e+00 : f32
    %74 = vector.broadcast %cst_68 : f32 to vector<1x32xf32>
    %75 = vector.extract_strided_slice %63 {offsets = [0, 0], sizes = [1, 16], strides = [1, 1]} : vector<8x16xf32> to vector<1x16xf32>
    %cst_69 = arith.constant dense<0.000000e+00> : vector<1x96xf32>
    %76 = tpu.matmul %75, %65, %cst_69 {dimension_numbers = #tpu.dot_dimension_numbers<[1], [0], [0], [1], [0, 0, 1, 1], [], []>} : vector<1x16xf32>, vector<16x96xf32>, vector<1x96xf32> -> vector<1x96xf32>
    %77 = arith.addf %76, %69 : vector<1x96xf32>
    %cst_70 = arith.constant dense<0.000000e+00> : vector<1x96xf32>
    %78 = tpu.matmul %73, %66, %cst_70 {dimension_numbers = #tpu.dot_dimension_numbers<[1], [0], [0], [1], [0, 0, 1, 1], [], []>} : vector<1x32xf32>, vector<32x96xf32>, vector<1x96xf32> -> vector<1x96xf32>
    %79 = arith.addf %78, %70 : vector<1x96xf32>
    %80 = vector.extract_strided_slice %77 {offsets = [0, 0], sizes = [1, 32], strides = [1, 1]} : vector<1x96xf32> to vector<1x32xf32>
    %81 = vector.extract_strided_slice %79 {offsets = [0, 0], sizes = [1, 32], strides = [1, 1]} : vector<1x96xf32> to vector<1x32xf32>
    %82 = arith.addf %80, %81 : vector<1x32xf32>
    %83 = arith.negf %82 : vector<1x32xf32>
    %84 = math.exp %83 : vector<1x32xf32>
    %cst_71 = arith.constant 1.000000e+00 : f32
    %85 = vector.broadcast %cst_71 : f32 to vector<1x32xf32>
    %86 = arith.addf %85, %84 : vector<1x32xf32>
    %87 = arith.divf %85, %86 : vector<1x32xf32>
    %88 = vector.extract_strided_slice %77 {offsets = [0, 32], sizes = [1, 32], strides = [1, 1]} : vector<1x96xf32> to vector<1x32xf32>
    %89 = vector.extract_strided_slice %79 {offsets = [0, 32], sizes = [1, 32], strides = [1, 1]} : vector<1x96xf32> to vector<1x32xf32>
    %90 = arith.addf %88, %89 : vector<1x32xf32>
    %91 = arith.negf %90 : vector<1x32xf32>
    %92 = math.exp %91 : vector<1x32xf32>
    %cst_72 = arith.constant 1.000000e+00 : f32
    %93 = vector.broadcast %cst_72 : f32 to vector<1x32xf32>
    %94 = arith.addf %93, %92 : vector<1x32xf32>
    %95 = arith.divf %93, %94 : vector<1x32xf32>
    %96 = vector.extract_strided_slice %77 {offsets = [0, 64], sizes = [1, 32], strides = [1, 1]} : vector<1x96xf32> to vector<1x32xf32>
    %97 = vector.extract_strided_slice %79 {offsets = [0, 64], sizes = [1, 32], strides = [1, 1]} : vector<1x96xf32> to vector<1x32xf32>
    %98 = arith.mulf %87, %97 : vector<1x32xf32>
    %99 = arith.addf %96, %98 : vector<1x32xf32>
    %100 = math.tanh %99 : vector<1x32xf32>
    %cst_73 = arith.constant 1.000000e+00 : f32
    %101 = vector.broadcast %cst_73 : f32 to vector<1x32xf32>
    %102 = arith.subf %101, %95 : vector<1x32xf32>
    %103 = arith.mulf %102, %100 : vector<1x32xf32>
    %104 = arith.mulf %95, %73 : vector<1x32xf32>
    %105 = arith.addf %103, %104 : vector<1x32xf32>
    %cst_74 = arith.constant dense<0.000000e+00> : vector<1x96xf32>
    %106 = tpu.matmul %105, %67, %cst_74 {dimension_numbers = #tpu.dot_dimension_numbers<[1], [0], [0], [1], [0, 0, 1, 1], [], []>} : vector<1x32xf32>, vector<32x96xf32>, vector<1x96xf32> -> vector<1x96xf32>
    %107 = arith.addf %106, %71 : vector<1x96xf32>
    %cst_75 = arith.constant dense<0.000000e+00> : vector<1x96xf32>
    %108 = tpu.matmul %74, %68, %cst_75 {dimension_numbers = #tpu.dot_dimension_numbers<[1], [0], [0], [1], [0, 0, 1, 1], [], []>} : vector<1x32xf32>, vector<32x96xf32>, vector<1x96xf32> -> vector<1x96xf32>
    %109 = arith.addf %108, %72 : vector<1x96xf32>
    %110 = vector.extract_strided_slice %107 {offsets = [0, 0], sizes = [1, 32], strides = [1, 1]} : vector<1x96xf32> to vector<1x32xf32>
    %111 = vector.extract_strided_slice %109 {offsets = [0, 0], sizes = [1, 32], strides = [1, 1]} : vector<1x96xf32> to vector<1x32xf32>
    %112 = arith.addf %110, %111 : vector<1x32xf32>
    %113 = arith.negf %112 : vector<1x32xf32>
    %114 = math.exp %113 : vector<1x32xf32>
    %cst_76 = arith.constant 1.000000e+00 : f32
    %115 = vector.broadcast %cst_76 : f32 to vector<1x32xf32>
    %116 = arith.addf %115, %114 : vector<1x32xf32>
    %117 = arith.divf %115, %116 : vector<1x32xf32>
    %118 = vector.extract_strided_slice %107 {offsets = [0, 32], sizes = [1, 32], strides = [1, 1]} : vector<1x96xf32> to vector<1x32xf32>
    %119 = vector.extract_strided_slice %109 {offsets = [0, 32], sizes = [1, 32], strides = [1, 1]} : vector<1x96xf32> to vector<1x32xf32>
    %120 = arith.addf %118, %119 : vector<1x32xf32>
    %121 = arith.negf %120 : vector<1x32xf32>
    %122 = math.exp %121 : vector<1x32xf32>
    %cst_77 = arith.constant 1.000000e+00 : f32
    %123 = vector.broadcast %cst_77 : f32 to vector<1x32xf32>
    %124 = arith.addf %123, %122 : vector<1x32xf32>
    %125 = arith.divf %123, %124 : vector<1x32xf32>
    %126 = vector.extract_strided_slice %107 {offsets = [0, 64], sizes = [1, 32], strides = [1, 1]} : vector<1x96xf32> to vector<1x32xf32>
    %127 = vector.extract_strided_slice %109 {offsets = [0, 64], sizes = [1, 32], strides = [1, 1]} : vector<1x96xf32> to vector<1x32xf32>
    %128 = arith.mulf %117, %127 : vector<1x32xf32>
    %129 = arith.addf %126, %128 : vector<1x32xf32>
    %130 = math.tanh %129 : vector<1x32xf32>
    %cst_78 = arith.constant 1.000000e+00 : f32
    %131 = vector.broadcast %cst_78 : f32 to vector<1x32xf32>
    %132 = arith.subf %131, %125 : vector<1x32xf32>
    %133 = arith.mulf %132, %130 : vector<1x32xf32>
    %134 = arith.mulf %125, %74 : vector<1x32xf32>
    %135 = arith.addf %133, %134 : vector<1x32xf32>
    %c0_79 = arith.constant 0 : index
    %c0_80 = arith.constant 0 : index
    %136 = vector.load %arg6[%c0_79, %c0_80] : memref<8x32xf32, #tpu.memory_space<vmem>>, vector<1x32xf32>
    tpu.vector_store %arg6[%c0_79, %c0_80], %135 {strides = array<i32>} : memref<8x32xf32, #tpu.memory_space<vmem>>, vector<1x32xf32>,
    %137 = vector.extract_strided_slice %63 {offsets = [1, 0], sizes = [1, 16], strides = [1, 1]} : vector<8x16xf32> to vector<1x16xf32>
    %cst_81 = arith.constant dense<0.000000e+00> : vector<1x96xf32>
    %138 = tpu.matmul %137, %65, %cst_81 {dimension_numbers = #tpu.dot_dimension_numbers<[1], [0], [0], [1], [0, 0, 1, 1], [], []>} : vector<1x16xf32>, vector<16x96xf32>, vector<1x96xf32> -> vector<1x96xf32>
    %139 = arith.addf %138, %69 : vector<1x96xf32>
    %cst_82 = arith.constant dense<0.000000e+00> : vector<1x96xf32>
    %140 = tpu.matmul %105, %66, %cst_82 {dimension_numbers = #tpu.dot_dimension_numbers<[1], [0], [0], [1], [0, 0, 1, 1], [], []>} : vector<1x32xf32>, vector<32x96xf32>, vector<1x96xf32> -> vector<1x96xf32>
    %141 = arith.addf %140, %70 : vector<1x96xf32>
    %142 = vector.extract_strided_slice %139 {offsets = [0, 0], sizes = [1, 32], strides = [1, 1]} : vector<1x96xf32> to vector<1x32xf32>
    %143 = vector.extract_strided_slice %141 {offsets = [0, 0], sizes = [1, 32], strides = [1, 1]} : vector<1x96xf32> to vector<1x32xf32>
    %144 = arith.addf %142, %143 : vector<1x32xf32>
    %145 = arith.negf %144 : vector<1x32xf32>
    %146 = math.exp %145 : vector<1x32xf32>
    %cst_83 = arith.constant 1.000000e+00 : f32
    %147 = vector.broadcast %cst_83 : f32 to vector<1x32xf32>
    %148 = arith.addf %147, %146 : vector<1x32xf32>
    %149 = arith.divf %147, %148 : vector<1x32xf32>
    %150 = vector.extract_strided_slice %139 {offsets = [0, 32], sizes = [1, 32], strides = [1, 1]} : vector<1x96xf32> to vector<1x32xf32>
    %151 = vector.extract_strided_slice %141 {offsets = [0, 32], sizes = [1, 32], strides = [1, 1]} : vector<1x96xf32> to vector<1x32xf32>
    %152 = arith.addf %150, %151 : vector<1x32xf32>
    %153 = arith.negf %152 : vector<1x32xf32>
    %154 = math.exp %153 : vector<1x32xf32>
    %cst_84 = arith.constant 1.000000e+00 : f32
    %155 = vector.broadcast %cst_84 : f32 to vector<1x32xf32>
    %156 = arith.addf %155, %154 : vector<1x32xf32>
    %157 = arith.divf %155, %156 : vector<1x32xf32>
    %158 = vector.extract_strided_slice %139 {offsets = [0, 64], sizes = [1, 32], strides = [1, 1]} : vector<1x96xf32> to vector<1x32xf32>
    %159 = vector.extract_strided_slice %141 {offsets = [0, 64], sizes = [1, 32], strides = [1, 1]} : vector<1x96xf32> to vector<1x32xf32>
    %160 = arith.mulf %149, %159 : vector<1x32xf32>
    %161 = arith.addf %158, %160 : vector<1x32xf32>
    %162 = math.tanh %161 : vector<1x32xf32>
    %cst_85 = arith.constant 1.000000e+00 : f32
    %163 = vector.broadcast %cst_85 : f32 to vector<1x32xf32>
    %164 = arith.subf %163, %157 : vector<1x32xf32>
    %165 = arith.mulf %164, %162 : vector<1x32xf32>
    %166 = arith.mulf %157, %105 : vector<1x32xf32>
    %167 = arith.addf %165, %166 : vector<1x32xf32>
    %cst_86 = arith.constant dense<0.000000e+00> : vector<1x96xf32>
    %168 = tpu.matmul %167, %67, %cst_86 {dimension_numbers = #tpu.dot_dimension_numbers<[1], [0], [0], [1], [0, 0, 1, 1], [], []>} : vector<1x32xf32>, vector<32x96xf32>, vector<1x96xf32> -> vector<1x96xf32>
    %169 = arith.addf %168, %71 : vector<1x96xf32>
    %cst_87 = arith.constant dense<0.000000e+00> : vector<1x96xf32>
    %170 = tpu.matmul %135, %68, %cst_87 {dimension_numbers = #tpu.dot_dimension_numbers<[1], [0], [0], [1], [0, 0, 1, 1], [], []>} : vector<1x32xf32>, vector<32x96xf32>, vector<1x96xf32> -> vector<1x96xf32>
    %171 = arith.addf %170, %72 : vector<1x96xf32>
    %172 = vector.extract_strided_slice %169 {offsets = [0, 0], sizes = [1, 32], strides = [1, 1]} : vector<1x96xf32> to vector<1x32xf32>
    %173 = vector.extract_strided_slice %171 {offsets = [0, 0], sizes = [1, 32], strides = [1, 1]} : vector<1x96xf32> to vector<1x32xf32>
    %174 = arith.addf %172, %173 : vector<1x32xf32>
    %175 = arith.negf %174 : vector<1x32xf32>
    %176 = math.exp %175 : vector<1x32xf32>
    %cst_88 = arith.constant 1.000000e+00 : f32
    %177 = vector.broadcast %cst_88 : f32 to vector<1x32xf32>
    %178 = arith.addf %177, %176 : vector<1x32xf32>
    %179 = arith.divf %177, %178 : vector<1x32xf32>
    %180 = vector.extract_strided_slice %169 {offsets = [0, 32], sizes = [1, 32], strides = [1, 1]} : vector<1x96xf32> to vector<1x32xf32>
    %181 = vector.extract_strided_slice %171 {offsets = [0, 32], sizes = [1, 32], strides = [1, 1]} : vector<1x96xf32> to vector<1x32xf32>
    %182 = arith.addf %180, %181 : vector<1x32xf32>
    %183 = arith.negf %182 : vector<1x32xf32>
    %184 = math.exp %183 : vector<1x32xf32>
    %cst_89 = arith.constant 1.000000e+00 : f32
    %185 = vector.broadcast %cst_89 : f32 to vector<1x32xf32>
    %186 = arith.addf %185, %184 : vector<1x32xf32>
    %187 = arith.divf %185, %186 : vector<1x32xf32>
    %188 = vector.extract_strided_slice %169 {offsets = [0, 64], sizes = [1, 32], strides = [1, 1]} : vector<1x96xf32> to vector<1x32xf32>
    %189 = vector.extract_strided_slice %171 {offsets = [0, 64], sizes = [1, 32], strides = [1, 1]} : vector<1x96xf32> to vector<1x32xf32>
    %190 = arith.mulf %179, %189 : vector<1x32xf32>
    %191 = arith.addf %188, %190 : vector<1x32xf32>
    %192 = math.tanh %191 : vector<1x32xf32>
    %cst_90 = arith.constant 1.000000e+00 : f32
    %193 = vector.broadcast %cst_90 : f32 to vector<1x32xf32>
    %194 = arith.subf %193, %187 : vector<1x32xf32>
    %195 = arith.mulf %194, %192 : vector<1x32xf32>
    %196 = arith.mulf %187, %135 : vector<1x32xf32>
    %197 = arith.addf %195, %196 : vector<1x32xf32>
    %c1_91 = arith.constant 1 : index
    %c0_92 = arith.constant 0 : index
    %198 = vector.load %arg6[%c1_91, %c0_92] : memref<8x32xf32, #tpu.memory_space<vmem>>, vector<1x32xf32>
    tpu.vector_store %arg6[%c1_91, %c0_92], %197 {strides = array<i32>} : memref<8x32xf32, #tpu.memory_space<vmem>>, vector<1x32xf32>,
    %199 = vector.extract_strided_slice %63 {offsets = [2, 0], sizes = [1, 16], strides = [1, 1]} : vector<8x16xf32> to vector<1x16xf32>
    %cst_93 = arith.constant dense<0.000000e+00> : vector<1x96xf32>
    %200 = tpu.matmul %199, %65, %cst_93 {dimension_numbers = #tpu.dot_dimension_numbers<[1], [0], [0], [1], [0, 0, 1, 1], [], []>} : vector<1x16xf32>, vector<16x96xf32>, vector<1x96xf32> -> vector<1x96xf32>
    %201 = arith.addf %200, %69 : vector<1x96xf32>
    %cst_94 = arith.constant dense<0.000000e+00> : vector<1x96xf32>
    %202 = tpu.matmul %167, %66, %cst_94 {dimension_numbers = #tpu.dot_dimension_numbers<[1], [0], [0], [1], [0, 0, 1, 1], [], []>} : vector<1x32xf32>, vector<32x96xf32>, vector<1x96xf32> -> vector<1x96xf32>
    %203 = arith.addf %202, %70 : vector<1x96xf32>
    %204 = vector.extract_strided_slice %201 {offsets = [0, 0], sizes = [1, 32], strides = [1, 1]} : vector<1x96xf32> to vector<1x32xf32>
    %205 = vector.extract_strided_slice %203 {offsets = [0, 0], sizes = [1, 32], strides = [1, 1]} : vector<1x96xf32> to vector<1x32xf32>
    %206 = arith.addf %204, %205 : vector<1x32xf32>
    %207 = arith.negf %206 : vector<1x32xf32>
    %208 = math.exp %207 : vector<1x32xf32>
    %cst_95 = arith.constant 1.000000e+00 : f32
    %209 = vector.broadcast %cst_95 : f32 to vector<1x32xf32>
    %210 = arith.addf %209, %208 : vector<1x32xf32>
    %211 = arith.divf %209, %210 : vector<1x32xf32>
    %212 = vector.extract_strided_slice %201 {offsets = [0, 32], sizes = [1, 32], strides = [1, 1]} : vector<1x96xf32> to vector<1x32xf32>
    %213 = vector.extract_strided_slice %203 {offsets = [0, 32], sizes = [1, 32], strides = [1, 1]} : vector<1x96xf32> to vector<1x32xf32>
    %214 = arith.addf %212, %213 : vector<1x32xf32>
    %215 = arith.negf %214 : vector<1x32xf32>
    %216 = math.exp %215 : vector<1x32xf32>
    %cst_96 = arith.constant 1.000000e+00 : f32
    %217 = vector.broadcast %cst_96 : f32 to vector<1x32xf32>
    %218 = arith.addf %217, %216 : vector<1x32xf32>
    %219 = arith.divf %217, %218 : vector<1x32xf32>
    %220 = vector.extract_strided_slice %201 {offsets = [0, 64], sizes = [1, 32], strides = [1, 1]} : vector<1x96xf32> to vector<1x32xf32>
    %221 = vector.extract_strided_slice %203 {offsets = [0, 64], sizes = [1, 32], strides = [1, 1]} : vector<1x96xf32> to vector<1x32xf32>
    %222 = arith.mulf %211, %221 : vector<1x32xf32>
    %223 = arith.addf %220, %222 : vector<1x32xf32>
    %224 = math.tanh %223 : vector<1x32xf32>
    %cst_97 = arith.constant 1.000000e+00 : f32
    %225 = vector.broadcast %cst_97 : f32 to vector<1x32xf32>
    %226 = arith.subf %225, %219 : vector<1x32xf32>
    %227 = arith.mulf %226, %224 : vector<1x32xf32>
    %228 = arith.mulf %219, %167 : vector<1x32xf32>
    %229 = arith.addf %227, %228 : vector<1x32xf32>
    %cst_98 = arith.constant dense<0.000000e+00> : vector<1x96xf32>
    %230 = tpu.matmul %229, %67, %cst_98 {dimension_numbers = #tpu.dot_dimension_numbers<[1], [0], [0], [1], [0, 0, 1, 1], [], []>} : vector<1x32xf32>, vector<32x96xf32>, vector<1x96xf32> -> vector<1x96xf32>
    %231 = arith.addf %230, %71 : vector<1x96xf32>
    %cst_99 = arith.constant dense<0.000000e+00> : vector<1x96xf32>
    %232 = tpu.matmul %197, %68, %cst_99 {dimension_numbers = #tpu.dot_dimension_numbers<[1], [0], [0], [1], [0, 0, 1, 1], [], []>} : vector<1x32xf32>, vector<32x96xf32>, vector<1x96xf32> -> vector<1x96xf32>
    %233 = arith.addf %232, %72 : vector<1x96xf32>
    %234 = vector.extract_strided_slice %231 {offsets = [0, 0], sizes = [1, 32], strides = [1, 1]} : vector<1x96xf32> to vector<1x32xf32>
    %235 = vector.extract_strided_slice %233 {offsets = [0, 0], sizes = [1, 32], strides = [1, 1]} : vector<1x96xf32> to vector<1x32xf32>
    %236 = arith.addf %234, %235 : vector<1x32xf32>
    %237 = arith.negf %236 : vector<1x32xf32>
    %238 = math.exp %237 : vector<1x32xf32>
    %cst_100 = arith.constant 1.000000e+00 : f32
    %239 = vector.broadcast %cst_100 : f32 to vector<1x32xf32>
    %240 = arith.addf %239, %238 : vector<1x32xf32>
    %241 = arith.divf %239, %240 : vector<1x32xf32>
    %242 = vector.extract_strided_slice %231 {offsets = [0, 32], sizes = [1, 32], strides = [1, 1]} : vector<1x96xf32> to vector<1x32xf32>
    %243 = vector.extract_strided_slice %233 {offsets = [0, 32], sizes = [1, 32], strides = [1, 1]} : vector<1x96xf32> to vector<1x32xf32>
    %244 = arith.addf %242, %243 : vector<1x32xf32>
    %245 = arith.negf %244 : vector<1x32xf32>
    %246 = math.exp %245 : vector<1x32xf32>
    %cst_101 = arith.constant 1.000000e+00 : f32
    %247 = vector.broadcast %cst_101 : f32 to vector<1x32xf32>
    %248 = arith.addf %247, %246 : vector<1x32xf32>
    %249 = arith.divf %247, %248 : vector<1x32xf32>
    %250 = vector.extract_strided_slice %231 {offsets = [0, 64], sizes = [1, 32], strides = [1, 1]} : vector<1x96xf32> to vector<1x32xf32>
    %251 = vector.extract_strided_slice %233 {offsets = [0, 64], sizes = [1, 32], strides = [1, 1]} : vector<1x96xf32> to vector<1x32xf32>
    %252 = arith.mulf %241, %251 : vector<1x32xf32>
    %253 = arith.addf %250, %252 : vector<1x32xf32>
    %254 = math.tanh %253 : vector<1x32xf32>
    %cst_102 = arith.constant 1.000000e+00 : f32
    %255 = vector.broadcast %cst_102 : f32 to vector<1x32xf32>
    %256 = arith.subf %255, %249 : vector<1x32xf32>
    %257 = arith.mulf %256, %254 : vector<1x32xf32>
    %258 = arith.mulf %249, %197 : vector<1x32xf32>
    %259 = arith.addf %257, %258 : vector<1x32xf32>
    %c2_103 = arith.constant 2 : index
    %c0_104 = arith.constant 0 : index
    %260 = vector.load %arg6[%c2_103, %c0_104] : memref<8x32xf32, #tpu.memory_space<vmem>>, vector<1x32xf32>
    tpu.vector_store %arg6[%c2_103, %c0_104], %259 {strides = array<i32>} : memref<8x32xf32, #tpu.memory_space<vmem>>, vector<1x32xf32>,
    %261 = vector.extract_strided_slice %63 {offsets = [3, 0], sizes = [1, 16], strides = [1, 1]} : vector<8x16xf32> to vector<1x16xf32>
    %cst_105 = arith.constant dense<0.000000e+00> : vector<1x96xf32>
    %262 = tpu.matmul %261, %65, %cst_105 {dimension_numbers = #tpu.dot_dimension_numbers<[1], [0], [0], [1], [0, 0, 1, 1], [], []>} : vector<1x16xf32>, vector<16x96xf32>, vector<1x96xf32> -> vector<1x96xf32>
    %263 = arith.addf %262, %69 : vector<1x96xf32>
    %cst_106 = arith.constant dense<0.000000e+00> : vector<1x96xf32>
    %264 = tpu.matmul %229, %66, %cst_106 {dimension_numbers = #tpu.dot_dimension_numbers<[1], [0], [0], [1], [0, 0, 1, 1], [], []>} : vector<1x32xf32>, vector<32x96xf32>, vector<1x96xf32> -> vector<1x96xf32>
    %265 = arith.addf %264, %70 : vector<1x96xf32>
    %266 = vector.extract_strided_slice %263 {offsets = [0, 0], sizes = [1, 32], strides = [1, 1]} : vector<1x96xf32> to vector<1x32xf32>
    %267 = vector.extract_strided_slice %265 {offsets = [0, 0], sizes = [1, 32], strides = [1, 1]} : vector<1x96xf32> to vector<1x32xf32>
    %268 = arith.addf %266, %267 : vector<1x32xf32>
    %269 = arith.negf %268 : vector<1x32xf32>
    %270 = math.exp %269 : vector<1x32xf32>
    %cst_107 = arith.constant 1.000000e+00 : f32
    %271 = vector.broadcast %cst_107 : f32 to vector<1x32xf32>
    %272 = arith.addf %271, %270 : vector<1x32xf32>
    %273 = arith.divf %271, %272 : vector<1x32xf32>
    %274 = vector.extract_strided_slice %263 {offsets = [0, 32], sizes = [1, 32], strides = [1, 1]} : vector<1x96xf32> to vector<1x32xf32>
    %275 = vector.extract_strided_slice %265 {offsets = [0, 32], sizes = [1, 32], strides = [1, 1]} : vector<1x96xf32> to vector<1x32xf32>
    %276 = arith.addf %274, %275 : vector<1x32xf32>
    %277 = arith.negf %276 : vector<1x32xf32>
    %278 = math.exp %277 : vector<1x32xf32>
    %cst_108 = arith.constant 1.000000e+00 : f32
    %279 = vector.broadcast %cst_108 : f32 to vector<1x32xf32>
    %280 = arith.addf %279, %278 : vector<1x32xf32>
    %281 = arith.divf %279, %280 : vector<1x32xf32>
    %282 = vector.extract_strided_slice %263 {offsets = [0, 64], sizes = [1, 32], strides = [1, 1]} : vector<1x96xf32> to vector<1x32xf32>
    %283 = vector.extract_strided_slice %265 {offsets = [0, 64], sizes = [1, 32], strides = [1, 1]} : vector<1x96xf32> to vector<1x32xf32>
    %284 = arith.mulf %273, %283 : vector<1x32xf32>
    %285 = arith.addf %282, %284 : vector<1x32xf32>
    %286 = math.tanh %285 : vector<1x32xf32>
    %cst_109 = arith.constant 1.000000e+00 : f32
    %287 = vector.broadcast %cst_109 : f32 to vector<1x32xf32>
    %288 = arith.subf %287, %281 : vector<1x32xf32>
    %289 = arith.mulf %288, %286 : vector<1x32xf32>
    %290 = arith.mulf %281, %229 : vector<1x32xf32>
    %291 = arith.addf %289, %290 : vector<1x32xf32>
    %cst_110 = arith.constant dense<0.000000e+00> : vector<1x96xf32>
    %292 = tpu.matmul %291, %67, %cst_110 {dimension_numbers = #tpu.dot_dimension_numbers<[1], [0], [0], [1], [0, 0, 1, 1], [], []>} : vector<1x32xf32>, vector<32x96xf32>, vector<1x96xf32> -> vector<1x96xf32>
    %293 = arith.addf %292, %71 : vector<1x96xf32>
    %cst_111 = arith.constant dense<0.000000e+00> : vector<1x96xf32>
    %294 = tpu.matmul %259, %68, %cst_111 {dimension_numbers = #tpu.dot_dimension_numbers<[1], [0], [0], [1], [0, 0, 1, 1], [], []>} : vector<1x32xf32>, vector<32x96xf32>, vector<1x96xf32> -> vector<1x96xf32>
    %295 = arith.addf %294, %72 : vector<1x96xf32>
    %296 = vector.extract_strided_slice %293 {offsets = [0, 0], sizes = [1, 32], strides = [1, 1]} : vector<1x96xf32> to vector<1x32xf32>
    %297 = vector.extract_strided_slice %295 {offsets = [0, 0], sizes = [1, 32], strides = [1, 1]} : vector<1x96xf32> to vector<1x32xf32>
    %298 = arith.addf %296, %297 : vector<1x32xf32>
    %299 = arith.negf %298 : vector<1x32xf32>
    %300 = math.exp %299 : vector<1x32xf32>
    %cst_112 = arith.constant 1.000000e+00 : f32
    %301 = vector.broadcast %cst_112 : f32 to vector<1x32xf32>
    %302 = arith.addf %301, %300 : vector<1x32xf32>
    %303 = arith.divf %301, %302 : vector<1x32xf32>
    %304 = vector.extract_strided_slice %293 {offsets = [0, 32], sizes = [1, 32], strides = [1, 1]} : vector<1x96xf32> to vector<1x32xf32>
    %305 = vector.extract_strided_slice %295 {offsets = [0, 32], sizes = [1, 32], strides = [1, 1]} : vector<1x96xf32> to vector<1x32xf32>
    %306 = arith.addf %304, %305 : vector<1x32xf32>
    %307 = arith.negf %306 : vector<1x32xf32>
    %308 = math.exp %307 : vector<1x32xf32>
    %cst_113 = arith.constant 1.000000e+00 : f32
    %309 = vector.broadcast %cst_113 : f32 to vector<1x32xf32>
    %310 = arith.addf %309, %308 : vector<1x32xf32>
    %311 = arith.divf %309, %310 : vector<1x32xf32>
    %312 = vector.extract_strided_slice %293 {offsets = [0, 64], sizes = [1, 32], strides = [1, 1]} : vector<1x96xf32> to vector<1x32xf32>
    %313 = vector.extract_strided_slice %295 {offsets = [0, 64], sizes = [1, 32], strides = [1, 1]} : vector<1x96xf32> to vector<1x32xf32>
    %314 = arith.mulf %303, %313 : vector<1x32xf32>
    %315 = arith.addf %312, %314 : vector<1x32xf32>
    %316 = math.tanh %315 : vector<1x32xf32>
    %cst_114 = arith.constant 1.000000e+00 : f32
    %317 = vector.broadcast %cst_114 : f32 to vector<1x32xf32>
    %318 = arith.subf %317, %311 : vector<1x32xf32>
    %319 = arith.mulf %318, %316 : vector<1x32xf32>
    %320 = arith.mulf %311, %259 : vector<1x32xf32>
    %321 = arith.addf %319, %320 : vector<1x32xf32>
    %c3_115 = arith.constant 3 : index
    %c0_116 = arith.constant 0 : index
    %322 = vector.load %arg6[%c3_115, %c0_116] : memref<8x32xf32, #tpu.memory_space<vmem>>, vector<1x32xf32>
    tpu.vector_store %arg6[%c3_115, %c0_116], %321 {strides = array<i32>} : memref<8x32xf32, #tpu.memory_space<vmem>>, vector<1x32xf32>,
    %323 = vector.extract_strided_slice %63 {offsets = [4, 0], sizes = [1, 16], strides = [1, 1]} : vector<8x16xf32> to vector<1x16xf32>
    %cst_117 = arith.constant dense<0.000000e+00> : vector<1x96xf32>
    %324 = tpu.matmul %323, %65, %cst_117 {dimension_numbers = #tpu.dot_dimension_numbers<[1], [0], [0], [1], [0, 0, 1, 1], [], []>} : vector<1x16xf32>, vector<16x96xf32>, vector<1x96xf32> -> vector<1x96xf32>
    %325 = arith.addf %324, %69 : vector<1x96xf32>
    %cst_118 = arith.constant dense<0.000000e+00> : vector<1x96xf32>
    %326 = tpu.matmul %291, %66, %cst_118 {dimension_numbers = #tpu.dot_dimension_numbers<[1], [0], [0], [1], [0, 0, 1, 1], [], []>} : vector<1x32xf32>, vector<32x96xf32>, vector<1x96xf32> -> vector<1x96xf32>
    %327 = arith.addf %326, %70 : vector<1x96xf32>
    %328 = vector.extract_strided_slice %325 {offsets = [0, 0], sizes = [1, 32], strides = [1, 1]} : vector<1x96xf32> to vector<1x32xf32>
    %329 = vector.extract_strided_slice %327 {offsets = [0, 0], sizes = [1, 32], strides = [1, 1]} : vector<1x96xf32> to vector<1x32xf32>
    %330 = arith.addf %328, %329 : vector<1x32xf32>
    %331 = arith.negf %330 : vector<1x32xf32>
    %332 = math.exp %331 : vector<1x32xf32>
    %cst_119 = arith.constant 1.000000e+00 : f32
    %333 = vector.broadcast %cst_119 : f32 to vector<1x32xf32>
    %334 = arith.addf %333, %332 : vector<1x32xf32>
    %335 = arith.divf %333, %334 : vector<1x32xf32>
    %336 = vector.extract_strided_slice %325 {offsets = [0, 32], sizes = [1, 32], strides = [1, 1]} : vector<1x96xf32> to vector<1x32xf32>
    %337 = vector.extract_strided_slice %327 {offsets = [0, 32], sizes = [1, 32], strides = [1, 1]} : vector<1x96xf32> to vector<1x32xf32>
    %338 = arith.addf %336, %337 : vector<1x32xf32>
    %339 = arith.negf %338 : vector<1x32xf32>
    %340 = math.exp %339 : vector<1x32xf32>
    %cst_120 = arith.constant 1.000000e+00 : f32
    %341 = vector.broadcast %cst_120 : f32 to vector<1x32xf32>
    %342 = arith.addf %341, %340 : vector<1x32xf32>
    %343 = arith.divf %341, %342 : vector<1x32xf32>
    %344 = vector.extract_strided_slice %325 {offsets = [0, 64], sizes = [1, 32], strides = [1, 1]} : vector<1x96xf32> to vector<1x32xf32>
    %345 = vector.extract_strided_slice %327 {offsets = [0, 64], sizes = [1, 32], strides = [1, 1]} : vector<1x96xf32> to vector<1x32xf32>
    %346 = arith.mulf %335, %345 : vector<1x32xf32>
    %347 = arith.addf %344, %346 : vector<1x32xf32>
    %348 = math.tanh %347 : vector<1x32xf32>
    %cst_121 = arith.constant 1.000000e+00 : f32
    %349 = vector.broadcast %cst_121 : f32 to vector<1x32xf32>
    %350 = arith.subf %349, %343 : vector<1x32xf32>
    %351 = arith.mulf %350, %348 : vector<1x32xf32>
    %352 = arith.mulf %343, %291 : vector<1x32xf32>
    %353 = arith.addf %351, %352 : vector<1x32xf32>
    %cst_122 = arith.constant dense<0.000000e+00> : vector<1x96xf32>
    %354 = tpu.matmul %353, %67, %cst_122 {dimension_numbers = #tpu.dot_dimension_numbers<[1], [0], [0], [1], [0, 0, 1, 1], [], []>} : vector<1x32xf32>, vector<32x96xf32>, vector<1x96xf32> -> vector<1x96xf32>
    %355 = arith.addf %354, %71 : vector<1x96xf32>
    %cst_123 = arith.constant dense<0.000000e+00> : vector<1x96xf32>
    %356 = tpu.matmul %321, %68, %cst_123 {dimension_numbers = #tpu.dot_dimension_numbers<[1], [0], [0], [1], [0, 0, 1, 1], [], []>} : vector<1x32xf32>, vector<32x96xf32>, vector<1x96xf32> -> vector<1x96xf32>
    %357 = arith.addf %356, %72 : vector<1x96xf32>
    %358 = vector.extract_strided_slice %355 {offsets = [0, 0], sizes = [1, 32], strides = [1, 1]} : vector<1x96xf32> to vector<1x32xf32>
    %359 = vector.extract_strided_slice %357 {offsets = [0, 0], sizes = [1, 32], strides = [1, 1]} : vector<1x96xf32> to vector<1x32xf32>
    %360 = arith.addf %358, %359 : vector<1x32xf32>
    %361 = arith.negf %360 : vector<1x32xf32>
    %362 = math.exp %361 : vector<1x32xf32>
    %cst_124 = arith.constant 1.000000e+00 : f32
    %363 = vector.broadcast %cst_124 : f32 to vector<1x32xf32>
    %364 = arith.addf %363, %362 : vector<1x32xf32>
    %365 = arith.divf %363, %364 : vector<1x32xf32>
    %366 = vector.extract_strided_slice %355 {offsets = [0, 32], sizes = [1, 32], strides = [1, 1]} : vector<1x96xf32> to vector<1x32xf32>
    %367 = vector.extract_strided_slice %357 {offsets = [0, 32], sizes = [1, 32], strides = [1, 1]} : vector<1x96xf32> to vector<1x32xf32>
    %368 = arith.addf %366, %367 : vector<1x32xf32>
    %369 = arith.negf %368 : vector<1x32xf32>
    %370 = math.exp %369 : vector<1x32xf32>
    %cst_125 = arith.constant 1.000000e+00 : f32
    %371 = vector.broadcast %cst_125 : f32 to vector<1x32xf32>
    %372 = arith.addf %371, %370 : vector<1x32xf32>
    %373 = arith.divf %371, %372 : vector<1x32xf32>
    %374 = vector.extract_strided_slice %355 {offsets = [0, 64], sizes = [1, 32], strides = [1, 1]} : vector<1x96xf32> to vector<1x32xf32>
    %375 = vector.extract_strided_slice %357 {offsets = [0, 64], sizes = [1, 32], strides = [1, 1]} : vector<1x96xf32> to vector<1x32xf32>
    %376 = arith.mulf %365, %375 : vector<1x32xf32>
    %377 = arith.addf %374, %376 : vector<1x32xf32>
    %378 = math.tanh %377 : vector<1x32xf32>
    %cst_126 = arith.constant 1.000000e+00 : f32
    %379 = vector.broadcast %cst_126 : f32 to vector<1x32xf32>
    %380 = arith.subf %379, %373 : vector<1x32xf32>
    %381 = arith.mulf %380, %378 : vector<1x32xf32>
    %382 = arith.mulf %373, %321 : vector<1x32xf32>
    %383 = arith.addf %381, %382 : vector<1x32xf32>
    %c4_127 = arith.constant 4 : index
    %c0_128 = arith.constant 0 : index
    %384 = vector.load %arg6[%c4_127, %c0_128] : memref<8x32xf32, #tpu.memory_space<vmem>>, vector<1x32xf32>
    tpu.vector_store %arg6[%c4_127, %c0_128], %383 {strides = array<i32>} : memref<8x32xf32, #tpu.memory_space<vmem>>, vector<1x32xf32>,
    %385 = vector.extract_strided_slice %63 {offsets = [5, 0], sizes = [1, 16], strides = [1, 1]} : vector<8x16xf32> to vector<1x16xf32>
    %cst_129 = arith.constant dense<0.000000e+00> : vector<1x96xf32>
    %386 = tpu.matmul %385, %65, %cst_129 {dimension_numbers = #tpu.dot_dimension_numbers<[1], [0], [0], [1], [0, 0, 1, 1], [], []>} : vector<1x16xf32>, vector<16x96xf32>, vector<1x96xf32> -> vector<1x96xf32>
    %387 = arith.addf %386, %69 : vector<1x96xf32>
    %cst_130 = arith.constant dense<0.000000e+00> : vector<1x96xf32>
    %388 = tpu.matmul %353, %66, %cst_130 {dimension_numbers = #tpu.dot_dimension_numbers<[1], [0], [0], [1], [0, 0, 1, 1], [], []>} : vector<1x32xf32>, vector<32x96xf32>, vector<1x96xf32> -> vector<1x96xf32>
    %389 = arith.addf %388, %70 : vector<1x96xf32>
    %390 = vector.extract_strided_slice %387 {offsets = [0, 0], sizes = [1, 32], strides = [1, 1]} : vector<1x96xf32> to vector<1x32xf32>
    %391 = vector.extract_strided_slice %389 {offsets = [0, 0], sizes = [1, 32], strides = [1, 1]} : vector<1x96xf32> to vector<1x32xf32>
    %392 = arith.addf %390, %391 : vector<1x32xf32>
    %393 = arith.negf %392 : vector<1x32xf32>
    %394 = math.exp %393 : vector<1x32xf32>
    %cst_131 = arith.constant 1.000000e+00 : f32
    %395 = vector.broadcast %cst_131 : f32 to vector<1x32xf32>
    %396 = arith.addf %395, %394 : vector<1x32xf32>
    %397 = arith.divf %395, %396 : vector<1x32xf32>
    %398 = vector.extract_strided_slice %387 {offsets = [0, 32], sizes = [1, 32], strides = [1, 1]} : vector<1x96xf32> to vector<1x32xf32>
    %399 = vector.extract_strided_slice %389 {offsets = [0, 32], sizes = [1, 32], strides = [1, 1]} : vector<1x96xf32> to vector<1x32xf32>
    %400 = arith.addf %398, %399 : vector<1x32xf32>
    %401 = arith.negf %400 : vector<1x32xf32>
    %402 = math.exp %401 : vector<1x32xf32>
    %cst_132 = arith.constant 1.000000e+00 : f32
    %403 = vector.broadcast %cst_132 : f32 to vector<1x32xf32>
    %404 = arith.addf %403, %402 : vector<1x32xf32>
    %405 = arith.divf %403, %404 : vector<1x32xf32>
    %406 = vector.extract_strided_slice %387 {offsets = [0, 64], sizes = [1, 32], strides = [1, 1]} : vector<1x96xf32> to vector<1x32xf32>
    %407 = vector.extract_strided_slice %389 {offsets = [0, 64], sizes = [1, 32], strides = [1, 1]} : vector<1x96xf32> to vector<1x32xf32>
    %408 = arith.mulf %397, %407 : vector<1x32xf32>
    %409 = arith.addf %406, %408 : vector<1x32xf32>
    %410 = math.tanh %409 : vector<1x32xf32>
    %cst_133 = arith.constant 1.000000e+00 : f32
    %411 = vector.broadcast %cst_133 : f32 to vector<1x32xf32>
    %412 = arith.subf %411, %405 : vector<1x32xf32>
    %413 = arith.mulf %412, %410 : vector<1x32xf32>
    %414 = arith.mulf %405, %353 : vector<1x32xf32>
    %415 = arith.addf %413, %414 : vector<1x32xf32>
    %cst_134 = arith.constant dense<0.000000e+00> : vector<1x96xf32>
    %416 = tpu.matmul %415, %67, %cst_134 {dimension_numbers = #tpu.dot_dimension_numbers<[1], [0], [0], [1], [0, 0, 1, 1], [], []>} : vector<1x32xf32>, vector<32x96xf32>, vector<1x96xf32> -> vector<1x96xf32>
    %417 = arith.addf %416, %71 : vector<1x96xf32>
    %cst_135 = arith.constant dense<0.000000e+00> : vector<1x96xf32>
    %418 = tpu.matmul %383, %68, %cst_135 {dimension_numbers = #tpu.dot_dimension_numbers<[1], [0], [0], [1], [0, 0, 1, 1], [], []>} : vector<1x32xf32>, vector<32x96xf32>, vector<1x96xf32> -> vector<1x96xf32>
    %419 = arith.addf %418, %72 : vector<1x96xf32>
    %420 = vector.extract_strided_slice %417 {offsets = [0, 0], sizes = [1, 32], strides = [1, 1]} : vector<1x96xf32> to vector<1x32xf32>
    %421 = vector.extract_strided_slice %419 {offsets = [0, 0], sizes = [1, 32], strides = [1, 1]} : vector<1x96xf32> to vector<1x32xf32>
    %422 = arith.addf %420, %421 : vector<1x32xf32>
    %423 = arith.negf %422 : vector<1x32xf32>
    %424 = math.exp %423 : vector<1x32xf32>
    %cst_136 = arith.constant 1.000000e+00 : f32
    %425 = vector.broadcast %cst_136 : f32 to vector<1x32xf32>
    %426 = arith.addf %425, %424 : vector<1x32xf32>
    %427 = arith.divf %425, %426 : vector<1x32xf32>
    %428 = vector.extract_strided_slice %417 {offsets = [0, 32], sizes = [1, 32], strides = [1, 1]} : vector<1x96xf32> to vector<1x32xf32>
    %429 = vector.extract_strided_slice %419 {offsets = [0, 32], sizes = [1, 32], strides = [1, 1]} : vector<1x96xf32> to vector<1x32xf32>
    %430 = arith.addf %428, %429 : vector<1x32xf32>
    %431 = arith.negf %430 : vector<1x32xf32>
    %432 = math.exp %431 : vector<1x32xf32>
    %cst_137 = arith.constant 1.000000e+00 : f32
    %433 = vector.broadcast %cst_137 : f32 to vector<1x32xf32>
    %434 = arith.addf %433, %432 : vector<1x32xf32>
    %435 = arith.divf %433, %434 : vector<1x32xf32>
    %436 = vector.extract_strided_slice %417 {offsets = [0, 64], sizes = [1, 32], strides = [1, 1]} : vector<1x96xf32> to vector<1x32xf32>
    %437 = vector.extract_strided_slice %419 {offsets = [0, 64], sizes = [1, 32], strides = [1, 1]} : vector<1x96xf32> to vector<1x32xf32>
    %438 = arith.mulf %427, %437 : vector<1x32xf32>
    %439 = arith.addf %436, %438 : vector<1x32xf32>
    %440 = math.tanh %439 : vector<1x32xf32>
    %cst_138 = arith.constant 1.000000e+00 : f32
    %441 = vector.broadcast %cst_138 : f32 to vector<1x32xf32>
    %442 = arith.subf %441, %435 : vector<1x32xf32>
    %443 = arith.mulf %442, %440 : vector<1x32xf32>
    %444 = arith.mulf %435, %383 : vector<1x32xf32>
    %445 = arith.addf %443, %444 : vector<1x32xf32>
    %c5 = arith.constant 5 : index
    %c0_139 = arith.constant 0 : index
    %446 = vector.load %arg6[%c5, %c0_139] : memref<8x32xf32, #tpu.memory_space<vmem>>, vector<1x32xf32>
    tpu.vector_store %arg6[%c5, %c0_139], %445 {strides = array<i32>} : memref<8x32xf32, #tpu.memory_space<vmem>>, vector<1x32xf32>,
    %447 = vector.extract_strided_slice %63 {offsets = [6, 0], sizes = [1, 16], strides = [1, 1]} : vector<8x16xf32> to vector<1x16xf32>
    %cst_140 = arith.constant dense<0.000000e+00> : vector<1x96xf32>
    %448 = tpu.matmul %447, %65, %cst_140 {dimension_numbers = #tpu.dot_dimension_numbers<[1], [0], [0], [1], [0, 0, 1, 1], [], []>} : vector<1x16xf32>, vector<16x96xf32>, vector<1x96xf32> -> vector<1x96xf32>
    %449 = arith.addf %448, %69 : vector<1x96xf32>
    %cst_141 = arith.constant dense<0.000000e+00> : vector<1x96xf32>
    %450 = tpu.matmul %415, %66, %cst_141 {dimension_numbers = #tpu.dot_dimension_numbers<[1], [0], [0], [1], [0, 0, 1, 1], [], []>} : vector<1x32xf32>, vector<32x96xf32>, vector<1x96xf32> -> vector<1x96xf32>
    %451 = arith.addf %450, %70 : vector<1x96xf32>
    %452 = vector.extract_strided_slice %449 {offsets = [0, 0], sizes = [1, 32], strides = [1, 1]} : vector<1x96xf32> to vector<1x32xf32>
    %453 = vector.extract_strided_slice %451 {offsets = [0, 0], sizes = [1, 32], strides = [1, 1]} : vector<1x96xf32> to vector<1x32xf32>
    %454 = arith.addf %452, %453 : vector<1x32xf32>
    %455 = arith.negf %454 : vector<1x32xf32>
    %456 = math.exp %455 : vector<1x32xf32>
    %cst_142 = arith.constant 1.000000e+00 : f32
    %457 = vector.broadcast %cst_142 : f32 to vector<1x32xf32>
    %458 = arith.addf %457, %456 : vector<1x32xf32>
    %459 = arith.divf %457, %458 : vector<1x32xf32>
    %460 = vector.extract_strided_slice %449 {offsets = [0, 32], sizes = [1, 32], strides = [1, 1]} : vector<1x96xf32> to vector<1x32xf32>
    %461 = vector.extract_strided_slice %451 {offsets = [0, 32], sizes = [1, 32], strides = [1, 1]} : vector<1x96xf32> to vector<1x32xf32>
    %462 = arith.addf %460, %461 : vector<1x32xf32>
    %463 = arith.negf %462 : vector<1x32xf32>
    %464 = math.exp %463 : vector<1x32xf32>
    %cst_143 = arith.constant 1.000000e+00 : f32
    %465 = vector.broadcast %cst_143 : f32 to vector<1x32xf32>
    %466 = arith.addf %465, %464 : vector<1x32xf32>
    %467 = arith.divf %465, %466 : vector<1x32xf32>
    %468 = vector.extract_strided_slice %449 {offsets = [0, 64], sizes = [1, 32], strides = [1, 1]} : vector<1x96xf32> to vector<1x32xf32>
    %469 = vector.extract_strided_slice %451 {offsets = [0, 64], sizes = [1, 32], strides = [1, 1]} : vector<1x96xf32> to vector<1x32xf32>
    %470 = arith.mulf %459, %469 : vector<1x32xf32>
    %471 = arith.addf %468, %470 : vector<1x32xf32>
    %472 = math.tanh %471 : vector<1x32xf32>
    %cst_144 = arith.constant 1.000000e+00 : f32
    %473 = vector.broadcast %cst_144 : f32 to vector<1x32xf32>
    %474 = arith.subf %473, %467 : vector<1x32xf32>
    %475 = arith.mulf %474, %472 : vector<1x32xf32>
    %476 = arith.mulf %467, %415 : vector<1x32xf32>
    %477 = arith.addf %475, %476 : vector<1x32xf32>
    %cst_145 = arith.constant dense<0.000000e+00> : vector<1x96xf32>
    %478 = tpu.matmul %477, %67, %cst_145 {dimension_numbers = #tpu.dot_dimension_numbers<[1], [0], [0], [1], [0, 0, 1, 1], [], []>} : vector<1x32xf32>, vector<32x96xf32>, vector<1x96xf32> -> vector<1x96xf32>
    %479 = arith.addf %478, %71 : vector<1x96xf32>
    %cst_146 = arith.constant dense<0.000000e+00> : vector<1x96xf32>
    %480 = tpu.matmul %445, %68, %cst_146 {dimension_numbers = #tpu.dot_dimension_numbers<[1], [0], [0], [1], [0, 0, 1, 1], [], []>} : vector<1x32xf32>, vector<32x96xf32>, vector<1x96xf32> -> vector<1x96xf32>
    %481 = arith.addf %480, %72 : vector<1x96xf32>
    %482 = vector.extract_strided_slice %479 {offsets = [0, 0], sizes = [1, 32], strides = [1, 1]} : vector<1x96xf32> to vector<1x32xf32>
    %483 = vector.extract_strided_slice %481 {offsets = [0, 0], sizes = [1, 32], strides = [1, 1]} : vector<1x96xf32> to vector<1x32xf32>
    %484 = arith.addf %482, %483 : vector<1x32xf32>
    %485 = arith.negf %484 : vector<1x32xf32>
    %486 = math.exp %485 : vector<1x32xf32>
    %cst_147 = arith.constant 1.000000e+00 : f32
    %487 = vector.broadcast %cst_147 : f32 to vector<1x32xf32>
    %488 = arith.addf %487, %486 : vector<1x32xf32>
    %489 = arith.divf %487, %488 : vector<1x32xf32>
    %490 = vector.extract_strided_slice %479 {offsets = [0, 32], sizes = [1, 32], strides = [1, 1]} : vector<1x96xf32> to vector<1x32xf32>
    %491 = vector.extract_strided_slice %481 {offsets = [0, 32], sizes = [1, 32], strides = [1, 1]} : vector<1x96xf32> to vector<1x32xf32>
    %492 = arith.addf %490, %491 : vector<1x32xf32>
    %493 = arith.negf %492 : vector<1x32xf32>
    %494 = math.exp %493 : vector<1x32xf32>
    %cst_148 = arith.constant 1.000000e+00 : f32
    %495 = vector.broadcast %cst_148 : f32 to vector<1x32xf32>
    %496 = arith.addf %495, %494 : vector<1x32xf32>
    %497 = arith.divf %495, %496 : vector<1x32xf32>
    %498 = vector.extract_strided_slice %479 {offsets = [0, 64], sizes = [1, 32], strides = [1, 1]} : vector<1x96xf32> to vector<1x32xf32>
    %499 = vector.extract_strided_slice %481 {offsets = [0, 64], sizes = [1, 32], strides = [1, 1]} : vector<1x96xf32> to vector<1x32xf32>
    %500 = arith.mulf %489, %499 : vector<1x32xf32>
    %501 = arith.addf %498, %500 : vector<1x32xf32>
    %502 = math.tanh %501 : vector<1x32xf32>
    %cst_149 = arith.constant 1.000000e+00 : f32
    %503 = vector.broadcast %cst_149 : f32 to vector<1x32xf32>
    %504 = arith.subf %503, %497 : vector<1x32xf32>
    %505 = arith.mulf %504, %502 : vector<1x32xf32>
    %506 = arith.mulf %497, %445 : vector<1x32xf32>
    %507 = arith.addf %505, %506 : vector<1x32xf32>
    %c6 = arith.constant 6 : index
    %c0_150 = arith.constant 0 : index
    %508 = vector.load %arg6[%c6, %c0_150] : memref<8x32xf32, #tpu.memory_space<vmem>>, vector<1x32xf32>
    tpu.vector_store %arg6[%c6, %c0_150], %507 {strides = array<i32>} : memref<8x32xf32, #tpu.memory_space<vmem>>, vector<1x32xf32>,
    %509 = vector.extract_strided_slice %63 {offsets = [7, 0], sizes = [1, 16], strides = [1, 1]} : vector<8x16xf32> to vector<1x16xf32>
    %cst_151 = arith.constant dense<0.000000e+00> : vector<1x96xf32>
    %510 = tpu.matmul %509, %65, %cst_151 {dimension_numbers = #tpu.dot_dimension_numbers<[1], [0], [0], [1], [0, 0, 1, 1], [], []>} : vector<1x16xf32>, vector<16x96xf32>, vector<1x96xf32> -> vector<1x96xf32>
    %511 = arith.addf %510, %69 : vector<1x96xf32>
    %cst_152 = arith.constant dense<0.000000e+00> : vector<1x96xf32>
    %512 = tpu.matmul %477, %66, %cst_152 {dimension_numbers = #tpu.dot_dimension_numbers<[1], [0], [0], [1], [0, 0, 1, 1], [], []>} : vector<1x32xf32>, vector<32x96xf32>, vector<1x96xf32> -> vector<1x96xf32>
    %513 = arith.addf %512, %70 : vector<1x96xf32>
    %514 = vector.extract_strided_slice %511 {offsets = [0, 0], sizes = [1, 32], strides = [1, 1]} : vector<1x96xf32> to vector<1x32xf32>
    %515 = vector.extract_strided_slice %513 {offsets = [0, 0], sizes = [1, 32], strides = [1, 1]} : vector<1x96xf32> to vector<1x32xf32>
    %516 = arith.addf %514, %515 : vector<1x32xf32>
    %517 = arith.negf %516 : vector<1x32xf32>
    %518 = math.exp %517 : vector<1x32xf32>
    %cst_153 = arith.constant 1.000000e+00 : f32
    %519 = vector.broadcast %cst_153 : f32 to vector<1x32xf32>
    %520 = arith.addf %519, %518 : vector<1x32xf32>
    %521 = arith.divf %519, %520 : vector<1x32xf32>
    %522 = vector.extract_strided_slice %511 {offsets = [0, 32], sizes = [1, 32], strides = [1, 1]} : vector<1x96xf32> to vector<1x32xf32>
    %523 = vector.extract_strided_slice %513 {offsets = [0, 32], sizes = [1, 32], strides = [1, 1]} : vector<1x96xf32> to vector<1x32xf32>
    %524 = arith.addf %522, %523 : vector<1x32xf32>
    %525 = arith.negf %524 : vector<1x32xf32>
    %526 = math.exp %525 : vector<1x32xf32>
    %cst_154 = arith.constant 1.000000e+00 : f32
    %527 = vector.broadcast %cst_154 : f32 to vector<1x32xf32>
    %528 = arith.addf %527, %526 : vector<1x32xf32>
    %529 = arith.divf %527, %528 : vector<1x32xf32>
    %530 = vector.extract_strided_slice %511 {offsets = [0, 64], sizes = [1, 32], strides = [1, 1]} : vector<1x96xf32> to vector<1x32xf32>
    %531 = vector.extract_strided_slice %513 {offsets = [0, 64], sizes = [1, 32], strides = [1, 1]} : vector<1x96xf32> to vector<1x32xf32>
    %532 = arith.mulf %521, %531 : vector<1x32xf32>
    %533 = arith.addf %530, %532 : vector<1x32xf32>
    %534 = math.tanh %533 : vector<1x32xf32>
    %cst_155 = arith.constant 1.000000e+00 : f32
    %535 = vector.broadcast %cst_155 : f32 to vector<1x32xf32>
    %536 = arith.subf %535, %529 : vector<1x32xf32>
    %537 = arith.mulf %536, %534 : vector<1x32xf32>
    %538 = arith.mulf %529, %477 : vector<1x32xf32>
    %539 = arith.addf %537, %538 : vector<1x32xf32>
    %cst_156 = arith.constant dense<0.000000e+00> : vector<1x96xf32>
    %540 = tpu.matmul %539, %67, %cst_156 {dimension_numbers = #tpu.dot_dimension_numbers<[1], [0], [0], [1], [0, 0, 1, 1], [], []>} : vector<1x32xf32>, vector<32x96xf32>, vector<1x96xf32> -> vector<1x96xf32>
    %541 = arith.addf %540, %71 : vector<1x96xf32>
    %cst_157 = arith.constant dense<0.000000e+00> : vector<1x96xf32>
    %542 = tpu.matmul %507, %68, %cst_157 {dimension_numbers = #tpu.dot_dimension_numbers<[1], [0], [0], [1], [0, 0, 1, 1], [], []>} : vector<1x32xf32>, vector<32x96xf32>, vector<1x96xf32> -> vector<1x96xf32>
    %543 = arith.addf %542, %72 : vector<1x96xf32>
    %544 = vector.extract_strided_slice %541 {offsets = [0, 0], sizes = [1, 32], strides = [1, 1]} : vector<1x96xf32> to vector<1x32xf32>
    %545 = vector.extract_strided_slice %543 {offsets = [0, 0], sizes = [1, 32], strides = [1, 1]} : vector<1x96xf32> to vector<1x32xf32>
    %546 = arith.addf %544, %545 : vector<1x32xf32>
    %547 = arith.negf %546 : vector<1x32xf32>
    %548 = math.exp %547 : vector<1x32xf32>
    %cst_158 = arith.constant 1.000000e+00 : f32
    %549 = vector.broadcast %cst_158 : f32 to vector<1x32xf32>
    %550 = arith.addf %549, %548 : vector<1x32xf32>
    %551 = arith.divf %549, %550 : vector<1x32xf32>
    %552 = vector.extract_strided_slice %541 {offsets = [0, 32], sizes = [1, 32], strides = [1, 1]} : vector<1x96xf32> to vector<1x32xf32>
    %553 = vector.extract_strided_slice %543 {offsets = [0, 32], sizes = [1, 32], strides = [1, 1]} : vector<1x96xf32> to vector<1x32xf32>
    %554 = arith.addf %552, %553 : vector<1x32xf32>
    %555 = arith.negf %554 : vector<1x32xf32>
    %556 = math.exp %555 : vector<1x32xf32>
    %cst_159 = arith.constant 1.000000e+00 : f32
    %557 = vector.broadcast %cst_159 : f32 to vector<1x32xf32>
    %558 = arith.addf %557, %556 : vector<1x32xf32>
    %559 = arith.divf %557, %558 : vector<1x32xf32>
    %560 = vector.extract_strided_slice %541 {offsets = [0, 64], sizes = [1, 32], strides = [1, 1]} : vector<1x96xf32> to vector<1x32xf32>
    %561 = vector.extract_strided_slice %543 {offsets = [0, 64], sizes = [1, 32], strides = [1, 1]} : vector<1x96xf32> to vector<1x32xf32>
    %562 = arith.mulf %551, %561 : vector<1x32xf32>
    %563 = arith.addf %560, %562 : vector<1x32xf32>
    %564 = math.tanh %563 : vector<1x32xf32>
    %cst_160 = arith.constant 1.000000e+00 : f32
    %565 = vector.broadcast %cst_160 : f32 to vector<1x32xf32>
    %566 = arith.subf %565, %559 : vector<1x32xf32>
    %567 = arith.mulf %566, %564 : vector<1x32xf32>
    %568 = arith.mulf %559, %507 : vector<1x32xf32>
    %569 = arith.addf %567, %568 : vector<1x32xf32>
    %c7 = arith.constant 7 : index
    %c0_161 = arith.constant 0 : index
    %570 = vector.load %arg6[%c7, %c0_161] : memref<8x32xf32, #tpu.memory_space<vmem>>, vector<1x32xf32>
    tpu.vector_store %arg6[%c7, %c0_161], %569 {strides = array<i32>} : memref<8x32xf32, #tpu.memory_space<vmem>>, vector<1x32xf32>,
    %c0_162 = arith.constant 0 : index
    %c0_163 = arith.constant 0 : index
    %571 = vector.load %arg4[%c0_162, %c0_163] : memref<194x160xf32, #tpu.memory_space<vmem>>, vector<32x160xf32>
    %c192 = arith.constant 192 : index
    %c0_164 = arith.constant 0 : index
    %572 = vector.load %arg4[%c192, %c0_164] : memref<194x160xf32, #tpu.memory_space<vmem>>, vector<1x160xf32>
    %c32 = arith.constant 32 : index
    %c0_165 = arith.constant 0 : index
    %573 = vector.load %arg4[%c32, %c0_165] : memref<194x160xf32, #tpu.memory_space<vmem>>, vector<160x80xf32>
    %c193 = arith.constant 193 : index
    %c0_166 = arith.constant 0 : index
    %574 = vector.load %arg4[%c193, %c0_166] : memref<194x160xf32, #tpu.memory_space<vmem>>, vector<1x80xf32>
    %cst_167 = arith.constant dense<0.000000e+00> : vector<1x160xf32>
    %575 = tpu.matmul %569, %571, %cst_167 {dimension_numbers = #tpu.dot_dimension_numbers<[1], [0], [0], [1], [0, 0, 1, 1], [], []>} : vector<1x32xf32>, vector<32x160xf32>, vector<1x160xf32> -> vector<1x160xf32>
    %576 = arith.addf %575, %572 : vector<1x160xf32>
    %cst_168 = arith.constant 0.000000e+00 : f32
    %577 = vector.broadcast %cst_168 : f32 to vector<1x160xf32>
    %578 = arith.maximumf %576, %577 : vector<1x160xf32>
    %cst_169 = arith.constant dense<0.000000e+00> : vector<1x80xf32>
    %579 = tpu.matmul %578, %573, %cst_169 {dimension_numbers = #tpu.dot_dimension_numbers<[1], [0], [0], [1], [0, 0, 1, 1], [], []>} : vector<1x160xf32>, vector<160x80xf32>, vector<1x80xf32> -> vector<1x80xf32>
    %580 = arith.addf %579, %574 : vector<1x80xf32>
    %c0_170 = arith.constant 0 : index
    %c0_171 = arith.constant 0 : index
    %c0_172 = arith.constant 0 : index
    %581 = vector.load %arg7[%c0_170, %c0_171, %c0_172] : memref<1x1x80xf32, #tpu.memory_space<vmem>>, vector<1x1x80xf32>
    %582 = vector.shape_cast %581 : vector<1x1x80xf32> to vector<1x80xf32>
    %583 = vector.shape_cast %580 : vector<1x80xf32> to vector<1x1x80xf32>
    tpu.vector_store %arg7[%c0_170, %c0_171, %c0_172], %583 {strides = array<i32>} : memref<1x1x80xf32, #tpu.memory_space<vmem>>, vector<1x1x80xf32>,
    %584 = tpu.iota {dimensions = array<i32: 1>} : vector<1x8xi32>
    %cst_173 = arith.constant 0.000000e+00 : f32
    %585 = vector.broadcast %cst_173 : f32 to vector<1x1xf32>
    %586 = vector.extract_strided_slice %580 {offsets = [0, 0], sizes = [1, 16], strides = [1, 1]} : vector<1x80xf32> to vector<1x16xf32>
    %cst_174 = arith.constant dense<0.000000e+00> : vector<1x8xf32>
    %587 = tpu.matmul %586, %63, %cst_174 {dimension_numbers = #tpu.dot_dimension_numbers<[1], [1], [0], [0], [0, 0, 1, 0], [], []>} : vector<1x16xf32>, vector<8x16xf32>, vector<1x8xf32> -> vector<1x8xf32>
    %cst_175 = arith.constant 1.000000e+01 : f32
    %588 = vector.broadcast %cst_175 : f32 to vector<1x8xf32>
    %589 = arith.mulf %587, %588 : vector<1x8xf32>
    %c1_i32 = arith.constant 1 : i32
    %590 = vector.broadcast %c1_i32 : i32 to vector<1x8xi32>
    %591 = arith.cmpi sge, %584, %590 : vector<1x8xi32>
    %cst_176 = arith.constant -1.000000e+30 : f32
    %592 = vector.broadcast %cst_176 : f32 to vector<1x8xf32>
    %593 = arith.select %591, %589, %592 : vector<1x8xi1>, vector<1x8xf32>
    %cst_177 = arith.constant dense<0xFF800000> : vector<1xf32>
    %594 = vector.multi_reduction <maximumf>, %593, %cst_177 [1] : vector<1x8xf32> to vector<1xf32>
    %595 = vector.shape_cast %594 : vector<1xf32> to vector<1x1xf32>
    %596 = vector.broadcast %595 : vector<1x1xf32> to vector<1x8xf32>
    %597 = arith.subf %593, %596 : vector<1x8xf32>
    %598 = math.exp %597 : vector<1x8xf32>
    %cst_178 = arith.constant 0.000000e+00 : f32
    %599 = vector.broadcast %cst_178 : f32 to vector<1x8xf32>
    %600 = arith.select %591, %598, %599 : vector<1x8xi1>, vector<1x8xf32>
    %cst_179 = arith.constant dense<0.000000e+00> : vector<1xf32>
    %601 = vector.multi_reduction <add>, %600, %cst_179 [1] : vector<1x8xf32> to vector<1xf32>
    %602 = vector.shape_cast %601 : vector<1xf32> to vector<1x1xf32>
    %603 = math.log %602 : vector<1x1xf32>
    %604 = arith.addf %595, %603 : vector<1x1xf32>
    %605 = vector.broadcast %604 : vector<1x1xf32> to vector<1x8xf32>
    %606 = arith.subf %589, %605 : vector<1x8xf32>
    %cst_180 = arith.constant 0.000000e+00 : f32
    %607 = vector.broadcast %cst_180 : f32 to vector<1x8xf32>
    %608 = arith.select %591, %606, %607 : vector<1x8xi1>, vector<1x8xf32>
    %cst_181 = arith.constant dense<0.000000e+00> : vector<1xf32>
    %609 = vector.multi_reduction <add>, %608, %cst_181 [1] : vector<1x8xf32> to vector<1xf32>
    %610 = vector.shape_cast %609 : vector<1xf32> to vector<1x1xf32>
    %cst_182 = arith.constant 7.000000e+00 : f32
    %611 = vector.broadcast %cst_182 : f32 to vector<1x1xf32>
    %612 = arith.divf %610, %611 : vector<1x1xf32>
    %613 = arith.addf %585, %612 : vector<1x1xf32>
    %614 = vector.extract_strided_slice %580 {offsets = [0, 16], sizes = [1, 16], strides = [1, 1]} : vector<1x80xf32> to vector<1x16xf32>
    %cst_183 = arith.constant dense<0.000000e+00> : vector<1x8xf32>
    %615 = tpu.matmul %614, %63, %cst_183 {dimension_numbers = #tpu.dot_dimension_numbers<[1], [1], [0], [0], [0, 0, 1, 0], [], []>} : vector<1x16xf32>, vector<8x16xf32>, vector<1x8xf32> -> vector<1x8xf32>
    %cst_184 = arith.constant 1.000000e+01 : f32
    %616 = vector.broadcast %cst_184 : f32 to vector<1x8xf32>
    %617 = arith.mulf %615, %616 : vector<1x8xf32>
    %c2_i32 = arith.constant 2 : i32
    %618 = vector.broadcast %c2_i32 : i32 to vector<1x8xi32>
    %619 = arith.cmpi sge, %584, %618 : vector<1x8xi32>
    %cst_185 = arith.constant -1.000000e+30 : f32
    %620 = vector.broadcast %cst_185 : f32 to vector<1x8xf32>
    %621 = arith.select %619, %617, %620 : vector<1x8xi1>, vector<1x8xf32>
    %cst_186 = arith.constant dense<0xFF800000> : vector<1xf32>
    %622 = vector.multi_reduction <maximumf>, %621, %cst_186 [1] : vector<1x8xf32> to vector<1xf32>
    %623 = vector.shape_cast %622 : vector<1xf32> to vector<1x1xf32>
    %624 = vector.broadcast %623 : vector<1x1xf32> to vector<1x8xf32>
    %625 = arith.subf %621, %624 : vector<1x8xf32>
    %626 = math.exp %625 : vector<1x8xf32>
    %cst_187 = arith.constant 0.000000e+00 : f32
    %627 = vector.broadcast %cst_187 : f32 to vector<1x8xf32>
    %628 = arith.select %619, %626, %627 : vector<1x8xi1>, vector<1x8xf32>
    %cst_188 = arith.constant dense<0.000000e+00> : vector<1xf32>
    %629 = vector.multi_reduction <add>, %628, %cst_188 [1] : vector<1x8xf32> to vector<1xf32>
    %630 = vector.shape_cast %629 : vector<1xf32> to vector<1x1xf32>
    %631 = math.log %630 : vector<1x1xf32>
    %632 = arith.addf %623, %631 : vector<1x1xf32>
    %633 = vector.broadcast %632 : vector<1x1xf32> to vector<1x8xf32>
    %634 = arith.subf %617, %633 : vector<1x8xf32>
    %cst_189 = arith.constant 0.000000e+00 : f32
    %635 = vector.broadcast %cst_189 : f32 to vector<1x8xf32>
    %636 = arith.select %619, %634, %635 : vector<1x8xi1>, vector<1x8xf32>
    %cst_190 = arith.constant dense<0.000000e+00> : vector<1xf32>
    %637 = vector.multi_reduction <add>, %636, %cst_190 [1] : vector<1x8xf32> to vector<1xf32>
    %638 = vector.shape_cast %637 : vector<1xf32> to vector<1x1xf32>
    %cst_191 = arith.constant 6.000000e+00 : f32
    %639 = vector.broadcast %cst_191 : f32 to vector<1x1xf32>
    %640 = arith.divf %638, %639 : vector<1x1xf32>
    %641 = arith.addf %613, %640 : vector<1x1xf32>
    %642 = vector.extract_strided_slice %580 {offsets = [0, 32], sizes = [1, 16], strides = [1, 1]} : vector<1x80xf32> to vector<1x16xf32>
    %cst_192 = arith.constant dense<0.000000e+00> : vector<1x8xf32>
    %643 = tpu.matmul %642, %63, %cst_192 {dimension_numbers = #tpu.dot_dimension_numbers<[1], [1], [0], [0], [0, 0, 1, 0], [], []>} : vector<1x16xf32>, vector<8x16xf32>, vector<1x8xf32> -> vector<1x8xf32>
    %cst_193 = arith.constant 1.000000e+01 : f32
    %644 = vector.broadcast %cst_193 : f32 to vector<1x8xf32>
    %645 = arith.mulf %643, %644 : vector<1x8xf32>
    %c3_i32 = arith.constant 3 : i32
    %646 = vector.broadcast %c3_i32 : i32 to vector<1x8xi32>
    %647 = arith.cmpi sge, %584, %646 : vector<1x8xi32>
    %cst_194 = arith.constant -1.000000e+30 : f32
    %648 = vector.broadcast %cst_194 : f32 to vector<1x8xf32>
    %649 = arith.select %647, %645, %648 : vector<1x8xi1>, vector<1x8xf32>
    %cst_195 = arith.constant dense<0xFF800000> : vector<1xf32>
    %650 = vector.multi_reduction <maximumf>, %649, %cst_195 [1] : vector<1x8xf32> to vector<1xf32>
    %651 = vector.shape_cast %650 : vector<1xf32> to vector<1x1xf32>
    %652 = vector.broadcast %651 : vector<1x1xf32> to vector<1x8xf32>
    %653 = arith.subf %649, %652 : vector<1x8xf32>
    %654 = math.exp %653 : vector<1x8xf32>
    %cst_196 = arith.constant 0.000000e+00 : f32
    %655 = vector.broadcast %cst_196 : f32 to vector<1x8xf32>
    %656 = arith.select %647, %654, %655 : vector<1x8xi1>, vector<1x8xf32>
    %cst_197 = arith.constant dense<0.000000e+00> : vector<1xf32>
    %657 = vector.multi_reduction <add>, %656, %cst_197 [1] : vector<1x8xf32> to vector<1xf32>
    %658 = vector.shape_cast %657 : vector<1xf32> to vector<1x1xf32>
    %659 = math.log %658 : vector<1x1xf32>
    %660 = arith.addf %651, %659 : vector<1x1xf32>
    %661 = vector.broadcast %660 : vector<1x1xf32> to vector<1x8xf32>
    %662 = arith.subf %645, %661 : vector<1x8xf32>
    %cst_198 = arith.constant 0.000000e+00 : f32
    %663 = vector.broadcast %cst_198 : f32 to vector<1x8xf32>
    %664 = arith.select %647, %662, %663 : vector<1x8xi1>, vector<1x8xf32>
    %cst_199 = arith.constant dense<0.000000e+00> : vector<1xf32>
    %665 = vector.multi_reduction <add>, %664, %cst_199 [1] : vector<1x8xf32> to vector<1xf32>
    %666 = vector.shape_cast %665 : vector<1xf32> to vector<1x1xf32>
    %cst_200 = arith.constant 5.000000e+00 : f32
    %667 = vector.broadcast %cst_200 : f32 to vector<1x1xf32>
    %668 = arith.divf %666, %667 : vector<1x1xf32>
    %669 = arith.addf %641, %668 : vector<1x1xf32>
    %670 = vector.extract_strided_slice %580 {offsets = [0, 48], sizes = [1, 16], strides = [1, 1]} : vector<1x80xf32> to vector<1x16xf32>
    %cst_201 = arith.constant dense<0.000000e+00> : vector<1x8xf32>
    %671 = tpu.matmul %670, %63, %cst_201 {dimension_numbers = #tpu.dot_dimension_numbers<[1], [1], [0], [0], [0, 0, 1, 0], [], []>} : vector<1x16xf32>, vector<8x16xf32>, vector<1x8xf32> -> vector<1x8xf32>
    %cst_202 = arith.constant 1.000000e+01 : f32
    %672 = vector.broadcast %cst_202 : f32 to vector<1x8xf32>
    %673 = arith.mulf %671, %672 : vector<1x8xf32>
    %c4_i32 = arith.constant 4 : i32
    %674 = vector.broadcast %c4_i32 : i32 to vector<1x8xi32>
    %675 = arith.cmpi sge, %584, %674 : vector<1x8xi32>
    %cst_203 = arith.constant -1.000000e+30 : f32
    %676 = vector.broadcast %cst_203 : f32 to vector<1x8xf32>
    %677 = arith.select %675, %673, %676 : vector<1x8xi1>, vector<1x8xf32>
    %cst_204 = arith.constant dense<0xFF800000> : vector<1xf32>
    %678 = vector.multi_reduction <maximumf>, %677, %cst_204 [1] : vector<1x8xf32> to vector<1xf32>
    %679 = vector.shape_cast %678 : vector<1xf32> to vector<1x1xf32>
    %680 = vector.broadcast %679 : vector<1x1xf32> to vector<1x8xf32>
    %681 = arith.subf %677, %680 : vector<1x8xf32>
    %682 = math.exp %681 : vector<1x8xf32>
    %cst_205 = arith.constant 0.000000e+00 : f32
    %683 = vector.broadcast %cst_205 : f32 to vector<1x8xf32>
    %684 = arith.select %675, %682, %683 : vector<1x8xi1>, vector<1x8xf32>
    %cst_206 = arith.constant dense<0.000000e+00> : vector<1xf32>
    %685 = vector.multi_reduction <add>, %684, %cst_206 [1] : vector<1x8xf32> to vector<1xf32>
    %686 = vector.shape_cast %685 : vector<1xf32> to vector<1x1xf32>
    %687 = math.log %686 : vector<1x1xf32>
    %688 = arith.addf %679, %687 : vector<1x1xf32>
    %689 = vector.broadcast %688 : vector<1x1xf32> to vector<1x8xf32>
    %690 = arith.subf %673, %689 : vector<1x8xf32>
    %cst_207 = arith.constant 0.000000e+00 : f32
    %691 = vector.broadcast %cst_207 : f32 to vector<1x8xf32>
    %692 = arith.select %675, %690, %691 : vector<1x8xi1>, vector<1x8xf32>
    %cst_208 = arith.constant dense<0.000000e+00> : vector<1xf32>
    %693 = vector.multi_reduction <add>, %692, %cst_208 [1] : vector<1x8xf32> to vector<1xf32>
    %694 = vector.shape_cast %693 : vector<1xf32> to vector<1x1xf32>
    %cst_209 = arith.constant 4.000000e+00 : f32
    %695 = vector.broadcast %cst_209 : f32 to vector<1x1xf32>
    %696 = arith.divf %694, %695 : vector<1x1xf32>
    %697 = arith.addf %669, %696 : vector<1x1xf32>
    %698 = vector.extract_strided_slice %580 {offsets = [0, 64], sizes = [1, 16], strides = [1, 1]} : vector<1x80xf32> to vector<1x16xf32>
    %cst_210 = arith.constant dense<0.000000e+00> : vector<1x8xf32>
    %699 = tpu.matmul %698, %63, %cst_210 {dimension_numbers = #tpu.dot_dimension_numbers<[1], [1], [0], [0], [0, 0, 1, 0], [], []>} : vector<1x16xf32>, vector<8x16xf32>, vector<1x8xf32> -> vector<1x8xf32>
    %cst_211 = arith.constant 1.000000e+01 : f32
    %700 = vector.broadcast %cst_211 : f32 to vector<1x8xf32>
    %701 = arith.mulf %699, %700 : vector<1x8xf32>
    %c5_i32 = arith.constant 5 : i32
    %702 = vector.broadcast %c5_i32 : i32 to vector<1x8xi32>
    %703 = arith.cmpi sge, %584, %702 : vector<1x8xi32>
    %cst_212 = arith.constant -1.000000e+30 : f32
    %704 = vector.broadcast %cst_212 : f32 to vector<1x8xf32>
    %705 = arith.select %703, %701, %704 : vector<1x8xi1>, vector<1x8xf32>
    %cst_213 = arith.constant dense<0xFF800000> : vector<1xf32>
    %706 = vector.multi_reduction <maximumf>, %705, %cst_213 [1] : vector<1x8xf32> to vector<1xf32>
    %707 = vector.shape_cast %706 : vector<1xf32> to vector<1x1xf32>
    %708 = vector.broadcast %707 : vector<1x1xf32> to vector<1x8xf32>
    %709 = arith.subf %705, %708 : vector<1x8xf32>
    %710 = math.exp %709 : vector<1x8xf32>
    %cst_214 = arith.constant 0.000000e+00 : f32
    %711 = vector.broadcast %cst_214 : f32 to vector<1x8xf32>
    %712 = arith.select %703, %710, %711 : vector<1x8xi1>, vector<1x8xf32>
    %cst_215 = arith.constant dense<0.000000e+00> : vector<1xf32>
    %713 = vector.multi_reduction <add>, %712, %cst_215 [1] : vector<1x8xf32> to vector<1xf32>
    %714 = vector.shape_cast %713 : vector<1xf32> to vector<1x1xf32>
    %715 = math.log %714 : vector<1x1xf32>
    %716 = arith.addf %707, %715 : vector<1x1xf32>
    %717 = vector.broadcast %716 : vector<1x1xf32> to vector<1x8xf32>
    %718 = arith.subf %701, %717 : vector<1x8xf32>
    %cst_216 = arith.constant 0.000000e+00 : f32
    %719 = vector.broadcast %cst_216 : f32 to vector<1x8xf32>
    %720 = arith.select %703, %718, %719 : vector<1x8xi1>, vector<1x8xf32>
    %cst_217 = arith.constant dense<0.000000e+00> : vector<1xf32>
    %721 = vector.multi_reduction <add>, %720, %cst_217 [1] : vector<1x8xf32> to vector<1xf32>
    %722 = vector.shape_cast %721 : vector<1xf32> to vector<1x1xf32>
    %cst_218 = arith.constant 3.000000e+00 : f32
    %723 = vector.broadcast %cst_218 : f32 to vector<1x1xf32>
    %724 = arith.divf %722, %723 : vector<1x1xf32>
    %725 = arith.addf %697, %724 : vector<1x1xf32>
    %cst_219 = arith.constant 0.000000e+00 : f32
    %726 = vector.broadcast %cst_219 : f32 to vector<1x1xf32>
    %727 = arith.subf %726, %725 : vector<1x1xf32>
    %c0_220 = arith.constant 0 : index
    %c0_221 = arith.constant 0 : index
    %c0_222 = arith.constant 0 : index
    %728 = vector.load %arg8[%c0_220, %c0_221, %c0_222] : memref<1x1x1xf32, #tpu.memory_space<vmem>>, vector<1x1x1xf32>
    %729 = vector.shape_cast %728 : vector<1x1x1xf32> to vector<1x1xf32>
    %730 = vector.shape_cast %727 : vector<1x1xf32> to vector<1x1x1xf32>
    tpu.vector_store %arg8[%c0_220, %c0_221, %c0_222], %730 {strides = array<i32>} : memref<1x1x1xf32, #tpu.memory_space<vmem>>, vector<1x1x1xf32>,
    return
  }
  func.func @transform_0(%arg0: i32) -> (i32, i32) {
    %c0_i32 = arith.constant 0 : i32
    %c0_i32_0 = arith.constant 0 : i32
    return %arg0, %c0_i32 : i32, i32
  }
  func.func @transform_1(%arg0: i32) -> (i32, i32) {
    %c0_i32 = arith.constant 0 : i32
    %c0_i32_0 = arith.constant 0 : i32
    %c0_i32_1 = arith.constant 0 : i32
    return %c0_i32, %c0_i32_0 : i32, i32
  }
  func.func @transform_2(%arg0: i32) -> (i32, i32) {
    %c0_i32 = arith.constant 0 : i32
    %c0_i32_0 = arith.constant 0 : i32
    %c0_i32_1 = arith.constant 0 : i32
    return %c0_i32, %c0_i32_0 : i32, i32
  }
  func.func @transform_3(%arg0: i32) -> (i32, i32) {
    %c0_i32 = arith.constant 0 : i32
    %c0_i32_0 = arith.constant 0 : i32
    %c0_i32_1 = arith.constant 0 : i32
    return %c0_i32, %c0_i32_0 : i32, i32
  }
  func.func @transform_4(%arg0: i32) -> (i32, i32) {
    %c0_i32 = arith.constant 0 : i32
    %c0_i32_0 = arith.constant 0 : i32
    return %arg0, %c0_i32 : i32, i32
  }
  func.func @transform_5(%arg0: i32) -> (i32, i32) {
    %c0_i32 = arith.constant 0 : i32
    %c0_i32_0 = arith.constant 0 : i32
    return %arg0, %c0_i32 : i32, i32
  }
  func.func @transform_6(%arg0: i32) -> (i32, i32, i32) {
    %c0_i32 = arith.constant 0 : i32
    %c0_i32_0 = arith.constant 0 : i32
    %c0_i32_1 = arith.constant 0 : i32
    return %arg0, %c0_i32, %c0_i32_0 : i32, i32, i32
  }
  func.func @transform_7(%arg0: i32) -> (i32, i32, i32) {
    %c0_i32 = arith.constant 0 : i32
    %c0_i32_0 = arith.constant 0 : i32
    %c0_i32_1 = arith.constant 0 : i32
    return %arg0, %c0_i32, %c0_i32_0 : i32, i32, i32
  }
}

</mosaic_0001>

<bundles_post_ra>
// kernel: cpc_forward.1
= control target key start
LH: loop header
LB: loop body
LE: loop exit
PB: predicated region body
PF: predicated region fallthrough
CT: control target
= control target key end

     0   :  { %s3963_s0 = inlined_call_operand.vmem [shape: f32[16,6], index: 0, kind: input, shape index: {}]   ;;  %s3964_s1 = inlined_call_operand.vmem [shape: f32[336,32], index: 1, kind: input, shape index: {}]   ;;  %s3965_s2 = inlined_call_operand.vmem [shape: f32[116,96], index: 2, kind: input, shape index: {}]   ;;  %s3966_s3 = inlined_call_operand.vmem [shape: f32[194,160], index: 3, kind: input, shape index: {}]   ;;  %s3967_s4 = inlined_call_operand.hbm [shape: f32[16,16], index: 4, kind: output, shape index: {0}]   ;;  %s3968_s5 = inlined_call_operand.hbm [shape: f32[16,32], index: 5, kind: output, shape index: {1}]   ;;  %s3969_s6 = inlined_call_operand.vmem [shape: f32[2,1,80], index: 6, kind: output, shape index: {2}]   ;;  %s3970_s7 = inlined_call_operand.vmem [shape: f32[2,1,1], index: 7, kind: output, shape index: {3}]  }
   0x1   :  { %3973 = sst [smem:[#allocation9_spill]] %s3963_s0 }
   0x2   :  { %3974 = sst [smem:[#allocation10_spill]] %s3964_s1 }
   0x3   :  { %13 = vsyncpa [#allocation4], 0 }
   0x4   :  { %15 = vsyncpa [#allocation4 + $0x1], 0 }
   0x5   :  { %16 = vsyncpa [#allocation6], 0 }
   0x6   :  { %18 = vsyncpa [#allocation6 + $0x1], 0  ;;  %s3050_s24 = smov 0   ;;  %s3052_s25 = smov 0  }
   0x7   :  { %s3054_s26 = smov 0   ;;  %s3056_s27 = smov 0  }
   0x8 LB: > { %s3071_s28 = sadd.s32 4294967295, %s2998_s27   ;;  %s2619_s29 = sadd.s32 4294967294, %s2998_s27   ;;  %s2998_s27 = sphi %s3056_s27, %s3984_s27   ;;  %s2994_s26 = sphi %s3054_s26, %s3983_s26   ;;  %s2990_s25 = sphi %s3052_s25, %s3982_s25   ;;  %s2986_s24 = sphi %s3050_s24, %s3981_s24  }
   0x9   : > { %s3075_s30 = sadd.s32 1, %s2998_s27   ;;  %s120_s8 = sadd.s32 1, %s2994_s26 }
   0xa   : > { %s117_s9 = ssub.s32 %s2998_s27, %s3075_s30  ;;  %p130_p0 = scmp.ne.s32.totalorder %s2994_s26, %s2990_s25 }
   0xb   : > { %p118_p1 = scmp.eq.s32.totalorder %s117_s9, 0  ;;  %p131_p2 = scmp.eq.s32.totalorder %s3071_s28, 1 }
   0xc   : > { %p136_p3 = scmp.ne.s32.totalorder %s2990_s25, %s2986_s24  ;;  %p137_p4 = scmp.eq.s32.totalorder %s2619_s29, 1 }
   0xd   : > { %s3086_s10 = scalar_select %p118_p1, %s2994_s26, %s120_s8  }
   0xe   : > { %p3088_p5 = por %p131_p2, %p130_p0  ;;  %p3092_p6 = por %p137_p4, %p136_p3 }
   0xf   : > { %p2622_p7 = scmp.ge.s32.totalorder %s2998_s27, 1  ;;  %p249_p8 = scmp.lt.s32.totalorder %s2998_s27, 3 }
  0x11   : > { %p250_p9 = pnand %p2622_p7, %p249_p8 }
  0x12   : > { %s3977_s1 = sld [smem:[#allocation10_spill]] (!%p250_p9)  ;;  %p291_p10 = scmp.lt.s32.totalorder (!%p250_p9), %s3071_s28, 1 }
  0x13   : > { %253 = sbr.rel (%p250_p9) target bundleno = 6732 (0x1a4c), region = 36  ;;  %s3978_s0 = sld [smem:[#allocation9_spill]] (!%p250_p9) }
  0x14   : > { %s3971_s23 = smov (!%p250_p9), 64   ;;  %s3972_s8 = smov (!%p250_p9), 96  }
  0x15   : > { %s3004_s14 = smov (!%p250_p9), 112   ;;  %s3979_s17 = smov (!%p250_p9), 96  }
  0x16   : > { %s2700_s21 = sshll.u32 (!%p250_p9), %s3071_s28, 3 }
  0x17   : > { %s2464_s9 = scalar_lea.hbm (!%p250_p9), %s3967_s4, %s2700_s21 }
  0x18   : > { %v302_v0 = vld [vmem:[%s3977_s1 + $0x8] sm:$0x3f]  ;;  %vm309_vm0 = vcmask 1045504   ;;  %s3103_s15 = scalar_select %p291_p10, %s3071_s28, 1  ;;  %vm305_vm1 = vcmask 48128   ;;  %vm333_vm2 = vcmask 261120  }
  0x19   : > { %2626 = vmatpush.msk.msra.mxu0 %vm309_vm0, %v302_v0  ;;  %vm335_vm3 = vcmask 254976   ;;  %v3000_v2 = vmov 0.0   ;;  %v346_v3 = vld [vmem:[%s3977_s1 + $0x28] sm:$0xff]  ;;  %v345_v5 = vld [vmem:[%s3977_s1 + $0x20] sm:$0xff]  ;;  %v344_v7 = vld [vmem:[%s3977_s1 + $0x18] sm:$0xff]  ;;  %vm636_vm4 = vcmask 130048  }
  0x1a   : > { %s2625_s16 = sshll.u32 %s3103_s15, 3  ;;  %334 = vst.msk [vmem:[#allocation2] sm:$0xff] %vm333_vm2, %v3000_v2  ;;  %v397_v4 = vld [vmem:[%s3977_s1 + $0x68] sm:$0xff]  ;;  %362 = vmatpush.msra.mxu2 %v346_v3  ;;  %v396_v6 = vld [vmem:[%s3977_s1 + $0x60] sm:$0xff]  ;;  %v395_v8 = vld [vmem:[%s3977_s1 + $0x58] sm:$0xff] }
  0x1b   : > { %s294_s19 = scalar_lea.vmem %s3978_s0, %s2625_s16  ;;  %336 = vst.msk [vmem:[#allocation2 + $0x8] sm:$0x3] %vm335_vm3, %v3000_v2  ;;  %413 = vmatpush.msra.mxu3 %v397_v4  ;;  %v343_v9 = vld [vmem:[%s3977_s1 + $0x10] sm:$0xff]  ;;  %v341_v11 = vld [vmem:[%s3977_s1 + $0x48] sm:$0xff]  ;;  %v340_v12 = vld [vmem:[%s3977_s1 + $0x40] sm:$0xff]  ;;  %s3305_s16 = sand.u32 1, %s2990_s25  }
  0x1c   : > { %v301_v1 = vld [vmem:[%s294_s19] sm:$0xff]  ;;  %363 = vmatpush.msra.mxu2 %v345_v5  ;;  %v394_v10 = vld [vmem:[%s3977_s1 + $0x50] sm:$0xff]  ;;  %v339_v13 = vld [vmem:[%s3977_s1 + $0x38] sm:$0xff]  ;;  %s2623_s19 = sshll.u32 %s3305_s16, 3 }
  0x1d   : > { %2627 = vmatmul.msk.f32.vlgmr.msra.gmra.mxu0 %vm305_vm1, %v301_v1  ;;  %414 = vmatpush.msra.mxu3 %v396_v6  ;;  %v338_v14 = vld [vmem:[%s3977_s1 + $0x30] sm:$0xff]  ;;  %v2758_v15 = vld [vmem:[%s3977_s1] ss:$0 sm:$0xff]  ;;  %v431_v20 = vld [vmem:[%s3977_s1 + $0xa8] sm:$0xff]  ;;  %s3317_s20 = scalar_lea.vmem [#allocation3], %s2623_s19  ;;  %vm829_vm1 = vcmask 253952  }
  0x1e   : > { %364 = vmatpush.msra.mxu2 %v344_v7  ;;  %475 = vmatpush.msra.mxu1 %v431_v20  ;;  %v430_v21 = vld [vmem:[%s3977_s1 + $0xa0] sm:$0xff]  ;;  %v429_v22 = vld [vmem:[%s3977_s1 + $0x98] sm:$0xff]  ;;  %v428_v23 = vld [vmem:[%s3977_s1 + $0x90] sm:$0xff]  ;;  %s3483_s18 = scalar_lea.vmem [#allocation5], %s2623_s19  ;;  %s3980_s19 = smov 64  }
  0x1f   : > { %415 = vmatpush.msra.mxu3 %v395_v8  ;;  %v487_v24 = vld [vmem:[%s3977_s1 + $0xc8] sm:$0xff]  ;;  %v486_v26 = vld [vmem:[%s3977_s1 + $0xc0] sm:$0xff]  ;;  %v485_v28 = vld [vmem:[%s3977_s1 + $0xb8] sm:$0xff] }
  0x20   : > { %365 = vmatpush.msra.mxu2 %v343_v9  ;;  %476 = vmatpush.msra.mxu1 %v430_v21  ;;  %v436_v25 = vld [vmem:[%s3977_s1 + $0x88] sm:$0xff]  ;;  %v435_v27 = vld [vmem:[%s3977_s1 + $0x80] sm:$0xff]  ;;  %v434_v29 = vld [vmem:[%s3977_s1 + $0x78] sm:$0xff] }
  0x21   : > { %416 = vmatpush.msra.mxu3 %v394_v10  ;;  %452 = vmatpush.msrb.mxu0 %v436_v25  ;;  %v484_v30 = vld [vmem:[%s3977_s1 + $0xb0] sm:$0xff]  ;;  %v2759_v35 = vld [vmem:[%s3977_s1 + $0x1] ss:$0 sm:$0xff]  ;;  %v521_v43 = vld [vmem:[%s3977_s1 + $0x108] sm:$0xff] }
  0x22   : > { %385 = vmatpush.msrb.mxu2 %v341_v11  ;;  %477 = vmatpush.msra.mxu1 %v429_v22  ;;  %v433_v31 = vld [vmem:[%s3977_s1 + $0x70] sm:$0xff]  ;;  %v520_v44 = vld [vmem:[%s3977_s1 + $0x100] sm:$0xff]  ;;  %v519_v45 = vld [vmem:[%s3977_s1 + $0xf8] sm:$0xff] }
  0x23   : > { %453 = vmatpush.msrb.mxu0 %v435_v27  ;;  %v518_v46 = vld [vmem:[%s3977_s1 + $0xf0] sm:$0xff]  ;;  %v526_v47 = vld [vmem:[%s3977_s1 + $0xe8] sm:$0xff]  ;;  %v525_v49 = vld [vmem:[%s3977_s1 + $0xe0] sm:$0xff] }
  0x24   : > { %386 = vmatpush.msrb.mxu2 %v340_v12  ;;  %478 = vmatpush.msra.mxu1 %v428_v23  ;;  %v577_v48 = vld [vmem:[%s3977_s1 + $0x128] sm:$0xff]  ;;  %v576_v50 = vld [vmem:[%s3977_s1 + $0x120] sm:$0xff]  ;;  %v524_v51 = vld [vmem:[%s3977_s1 + $0xd8] sm:$0xff] }
  0x25   : > { %454 = vmatpush.msrb.mxu0 %v434_v29  ;;  %542 = vmatpush.msrb.mxu3 %v526_v47  ;;  %v575_v52 = vld [vmem:[%s3977_s1 + $0x118] sm:$0xff]  ;;  %v523_v53 = vld [vmem:[%s3977_s1 + $0xd0] sm:$0xff]  ;;  %v2760_v58 = vld [vmem:[%s3977_s1 + $0x2] ss:$0 sm:$0xff] }
  0x26   : > { %387 = vmatpush.msrb.mxu2 %v339_v13  ;;  %593 = vmatpush.msrb.mxu1 %v577_v48  ;;  %v574_v54 = vld [vmem:[%s3977_s1 + $0x110] sm:$0xff]  ;;  %v610_v3 = vld [vmem:[%s3977_s1 + $0x148] sm:$0xff]  ;;  %v609_v4 = vld [vmem:[%s3977_s1 + $0x140] sm:$0xff] }
  0x27   : > { %455 = vmatpush.msrb.mxu0 %v433_v31  ;;  %543 = vmatpush.msrb.mxu3 %v525_v49  ;;  %v608_v5 = vld [vmem:[%s3977_s1 + $0x138] sm:$0xff]  ;;  %v607_v6 = vld [vmem:[%s3977_s1 + $0x130] sm:$0xff]  ;;  %v3256_v7 = vld [vmem:[%s3965_s2 + $0x28] sm:$0xff] }
  0x28   : > { %388 = vmatpush.msrb.mxu2 %v338_v14  ;;  %594 = vmatpush.msrb.mxu1 %v576_v50  ;;  %v3261_v8 = vld [vmem:[%s3965_s2 + $0x20] sm:$0xff]  ;;  %v3267_v9 = vld [vmem:[%s3965_s2 + $0x8] sm:$0xff]  ;;  %v3277_v11 = vld [vmem:[%s3965_s2 + $0x18] sm:$0xff] }
  0x29   : > { %565 = vmatpush.msra.mxu0 %v521_v43  ;;  %544 = vmatpush.msrb.mxu3 %v524_v51  ;;  %v3272_v10 = vld [vmem:[%s3965_s2] sm:$0xff]  ;;  %v3284_v12 = vld [vmem:[%s3965_s2 + $0x10] sm:$0xff] }
  0x2a   : > { %595 = vmatpush.msrb.mxu1 %v575_v52  ;;  %v2762_v22 = vld [vmem:[%s3977_s1 + $0x4] ss:$0 sm:$0xff] }
  0x2b   : > { %566 = vmatpush.msra.mxu0 %v520_v44  ;;  %545 = vmatpush.msrb.mxu3 %v523_v53 }
  0x2c   : > { %596 = vmatpush.msrb.mxu1 %v574_v54 }
  0x2d   : > { %567 = vmatpush.msra.mxu0 %v519_v45 }
  0x2f   : > { %568 = vmatpush.msra.mxu0 %v518_v46 }
  0x9a   : > { %v330_v16 = vpop.f32.mrf.mxu0 }
  0x9b   : > { %v331_v17 = vadd.f32 %v2758_v15, %v330_v16  ;;  %v2761_v16 = vld [vmem:[%s3977_s1 + $0x3] ss:$0 sm:$0xff] }
  0x9d   : > { %337 = vst.msk [vmem:[#allocation2 + $0x1] sm:$0xff] %vm333_vm2, %v331_v17 }
  0xa4   : > { %v342_v18 = vld [vmem:[#allocation2] sm:$0xff] }
  0xa5   : > { %v393_v19 = vld [vmem:[#allocation2 + $0x2] sm:$0xff]  ;;  %2628 = vmatmul.msk.f32.vlgmr.msra.gmra.mxu2 %vm333_vm2, %v342_v18 }
  0xa6   : > { %2630 = vmatmul.msk.f32.vlgmr.msra.gmra.mxu3 %vm333_vm2, %v393_v19  ;;  %503 = vmatpush.msra.mxu2 %v487_v24 }
  0xa7   : > { %673 = vmatpush.msra.mxu3 %v3267_v9 }
  0xa8   : > { %504 = vmatpush.msra.mxu2 %v486_v26  ;;  %v3329_v26 = vld [vmem:[%s3965_s2 + $0x71] sm:$0x1] }
  0xa9   : > { %674 = vmatpush.msra.mxu3 %v3272_v10 }
  0xaa   : > { %505 = vmatpush.msra.mxu2 %v485_v28 }
  0xac   : > { %506 = vmatpush.msra.mxu2 %v484_v30 }
  0xad   : > { %2629 = vmatmul.msk.f32.vlgmr.msrb.gmra.mxu2 %vm333_vm2, %v331_v17 }
  0xae   : > { %628 = vmatpush.msrb.mxu2 %v610_v3  ;;  %v3408_v3 = vld [vmem:[%s3965_s2 + $0x38] sm:$0xff] }
  0xb0   : > { %629 = vmatpush.msrb.mxu2 %v609_v4  ;;  %v3413_v4 = vld [vmem:[%s3965_s2 + $0x50] sm:$0xff] }
  0xb2   : > { %630 = vmatpush.msrb.mxu2 %v608_v5  ;;  %v3420_v5 = vld [vmem:[%s3965_s2 + $0x30] sm:$0xff] }
  0xb4   : > { %631 = vmatpush.msrb.mxu2 %v607_v6 }
 0x128   : > { %v367_v32 = vpop.f32.mrf.mxu2 }
 0x129   : > { %v418_v36 = vpop.f32.mrf.mxu3 }
 0x130   : > { %v390_v33 = vpop.f32.mrf.mxu2 }
 0x131   : > { %v391_v34 = vadd.f32 %v390_v33, %v367_v32 }
 0x133   : > { %v421_v37 = vadd.f32 %v418_v36, %v391_v34  ;;  %v2048_v34 = vld [vmem:[%s3966_s3 + $0x30] sm:$0xff] }
 0x134   : > { %v2044_v36 = vld [vmem:[%s3966_s3 + $0x10] sm:$0xff] }
 0x135   : > { %v424_v38 = vadd.f32 %v2759_v35, %v421_v37  ;;  %v2046_v35 = vld [vmem:[%s3966_s3 + $0x20] sm:$0xff] }
 0x136   : > { %v2042_v37 = vld [vmem:[%s3966_s3] sm:$0xff] }
 0x137   : > { %v425_v39 = vmax.f32 %v424_v38, 0.0 }
 0x139   : > { %v426_v40 = vadd.f32 %v425_v39, %v331_v17  ;;  %v3372_v39 = vld [vmem:[%s3965_s2 + $0x70] sm:$0x1] }
 0x13b   : > { %427 = vst.msk [vmem:[#allocation2 + $0x1] sm:$0xff] %vm333_vm2, %v426_v40  ;;  %2632 = vmatmul.msk.f32.vlgmr.msra.gmra.mxu1 %vm333_vm2, %v426_v40 }
 0x142   : > { %v432_v41 = vld [vmem:[#allocation2] sm:$0xff] }
 0x143   : > { %v483_v42 = vld [vmem:[#allocation2 + $0x2] sm:$0xff]  ;;  %2631 = vmatmul.msk.f32.vlgmr.msrb.gmra.mxu0 %vm333_vm2, %v432_v41 }
 0x144   : > { %2633 = vmatmul.msk.f32.vlgmr.msra.gmra.mxu2 %vm333_vm2, %v483_v42  ;;  %694 = vmatpush.msrb.mxu0 %v3256_v7 }
 0x146   : > { %695 = vmatpush.msrb.mxu0 %v3261_v8 }
 0x148   : > { %696 = vmatpush.msrb.mxu0 %v3277_v11 }
 0x14a   : > { %697 = vmatpush.msrb.mxu0 %v3284_v12 }
 0x1b8   : > { %v480_v56 = vpop.f32.mrf.mxu1 }
 0x1c0   : > { %v457_v55 = vpop.f32.mrf.mxu0 }
 0x1c1   : > { %v481_v57 = vadd.f32 %v480_v56, %v457_v55 }
 0x1c7   : > { %v508_v59 = vpop.f32.mrf.mxu2 }
 0x1c8   : > { %v511_v60 = vadd.f32 %v508_v59, %v481_v57 }
 0x1ca   : > { %v514_v61 = vadd.f32 %v2760_v58, %v511_v60 }
 0x1cc   : > { %v515_v62 = vmax.f32 %v514_v61, 0.0  ;;  %v3380_v61 = vld [vmem:[%s3965_s2 + $0x68] sm:$0xff] }
 0x1cd   : > { %778 = vmatpush.msra.mxu2 %v3380_v61 }
 0x1ce   : > { %v516_v63 = vadd.f32 %v515_v62, %v426_v40  ;;  %v3385_v62 = vld [vmem:[%s3965_s2 + $0x60] sm:$0xff] }
 0x1cf   : > { %779 = vmatpush.msra.mxu2 %v3385_v62 }
 0x1d0   : > { %517 = vst.msk [vmem:[#allocation2 + $0x1] sm:$0xff] %vm333_vm2, %v516_v63  ;;  %2635 = vmatmul.msk.f32.vlgmr.msra.gmra.mxu0 %vm333_vm2, %v516_v63 }
 0x1d1   : > { %866 = vmatpush.msra.mxu0 %v3256_v7 }
 0x1d3   : > { %867 = vmatpush.msra.mxu0 %v3261_v8 }
 0x1d5   : > { %868 = vmatpush.msra.mxu0 %v3277_v11 }
 0x1d7   : > { %v522_v0 = vld [vmem:[#allocation2] sm:$0xff]  ;;  %869 = vmatpush.msra.mxu0 %v3284_v12 }
 0x1d8   : > { %v573_v1 = vld [vmem:[#allocation2 + $0x2] sm:$0xff]  ;;  %2634 = vmatmul.msk.f32.vlgmr.msrb.gmra.mxu3 %vm333_vm2, %v522_v0  ;;  %698 = vmatmul.f32.vlgmr.msrb.gmra.mxu0 %v3000_v2 }
 0x1d9   : > { %2636 = vmatmul.msk.f32.vlgmr.msrb.gmra.mxu1 %vm333_vm2, %v573_v1  ;;  %848 = vmatpush.msrb.mxu3 %v3267_v9  ;;  %v3396_v0 = vld [vmem:[%s3965_s2 + $0x40] sm:$0xff]  ;;  %v3401_v1 = vld [vmem:[%s3965_s2 + $0x58] sm:$0xff] }
 0x1da   : > { %1039 = vmatpush.msrb.mxu0 %v3256_v7  ;;  %780 = vmatpush.msra.mxu2 %v3401_v1 }
 0x1db   : > { %849 = vmatpush.msrb.mxu3 %v3272_v10 }
 0x1dc   : > { %1040 = vmatpush.msrb.mxu0 %v3261_v8  ;;  %781 = vmatpush.msra.mxu2 %v3413_v4 }
 0x1de   : > { %1041 = vmatpush.msrb.mxu0 %v3277_v11 }
 0x1e0   : > { %1042 = vmatpush.msrb.mxu0 %v3284_v12 }
 0x24d   : > { %v570_v13 = vpop.f32.mrf.mxu0 }
 0x255   : > { %v699_v27 = vpop.f32.mrf.mxu0 }
 0x256   : > { %v598_v17 = vpop.f32.mrf.mxu1  ;;  %v700_v28 = vadd.f32 %v699_v27, %v3329_v26 }
 0x258   : > { %723 = vrot.lane.b32.xlu0 %v700_v28, %s3971_s23 }
 0x25b   : > { %v547_v14 = vpop.f32.mrf.mxu3 }
 0x25c   : > { %v571_v15 = vadd.f32 %v570_v13, %v547_v14  ;;  %v3445_v14 = vld [vmem:[%s3965_s2 + $0x73] sm:$0x1] }
 0x25e   : > { %v601_v18 = vadd.f32 %v598_v17, %v571_v15 }
 0x260   : > { %v604_v19 = vadd.f32 %v2761_v16, %v601_v18  ;;  %v3462_v18 = vld [vmem:[%s3965_s2 + $0x72] sm:$0x1] }
 0x262   : > { %v605_v20 = vmax.f32 %v604_v19, 0.0 }
 0x264   : > { %v606_v21 = vadd.f32 %v605_v20, %v516_v63  ;;  %v3391_v63 = vld [vmem:[%s3965_s2 + $0x48] sm:$0xff] }
 0x265   : > { %758 = vmatpush.msra.mxu1 %v3391_v63 }
 0x266   : > { %2637 = vmatmul.msk.f32.vlgmr.msrb.gmra.mxu2 %vm333_vm2, %v606_v21 }
 0x267   : > { %759 = vmatpush.msra.mxu1 %v3396_v0  ;;  %952 = vmatpush.msrb.mxu2 %v3380_v61 }
 0x269   : > { %760 = vmatpush.msra.mxu1 %v3408_v3  ;;  %953 = vmatpush.msrb.mxu2 %v3385_v62 }
 0x26b   : > { %761 = vmatpush.msra.mxu1 %v3420_v5  ;;  %954 = vmatpush.msrb.mxu2 %v3401_v1 }
 0x26d   : > { %930 = vmatpush.msrb.mxu1 %v3391_v63  ;;  %955 = vmatpush.msrb.mxu2 %v3413_v4 }
 0x26e   : > { %782 = vmatmul.f32.vlgmr.msra.gmra.mxu2 %v3000_v2 }
 0x26f   : > { %931 = vmatpush.msrb.mxu1 %v3396_v0  ;;  %1125 = vmatpush.msra.mxu2 %v3380_v61 }
 0x271   : > { %932 = vmatpush.msrb.mxu1 %v3408_v3  ;;  %1126 = vmatpush.msra.mxu2 %v3385_v62 }
 0x273   : > { %933 = vmatpush.msrb.mxu1 %v3420_v5  ;;  %1127 = vmatpush.msra.mxu2 %v3401_v1 }
 0x275   : > { %1128 = vmatpush.msra.mxu2 %v3413_v4 }
 0x2ca   : > { %v724_v53 = vpop.permute.xlu0 %723 }
 0x2e9   : > { %v633_v23 = vpop.f32.mrf.mxu2 }
 0x2ea   : > { %v3311_v24 = vadd.f32 %v2762_v22, %v633_v23 }
 0x2ec   : > { %2638 = vmatmul.msk.f32.vlgmr.msra.gmra.mxu3 %vm636_vm4, %v3311_v24  ;;  %637 = vst.msk [vmem:[%s3317_s20] sm:$0xff] %vm636_vm4, %v3311_v24  ;;  %v831_v25 = vrot.slane %v3311_v24, 1  ;;  %v1004_v29 = vrot.slane %v3311_v24, 2  ;;  %v1177_v30 = vrot.slane %v3311_v24, 3  ;;  %v1350_v31 = vrot.slane %v3311_v24, 4 }
 0x2ed   : > { %1021 = vmatpush.msra.mxu3 %v3267_v9  ;;  %v1523_v32 = vrot.slane %v3311_v24, 5  ;;  %v1696_v33 = vrot.slane %v3311_v24, 6  ;;  %v1869_v38 = vrot.slane %v3311_v24, 7 }
 0x2ef   : > { %1022 = vmatpush.msra.mxu3 %v3272_v10 }
 0x2f1   : > { %v783_v15 = vpop.f32.mrf.mxu2 }
 0x2f2   : > { %v784_v16 = vadd.f32 %v783_v15, %v3445_v14 }
 0x2f4   : > { %2642 = vmatmul.msk.f32.vlgmr.msrb.gmra.mxu3 %vm636_vm4, %v831_v25  ;;  %807 = vrot.lane.b32.xlu2 %v784_v16, %s3971_s23 }
 0x2f5   : > { %1194 = vmatpush.msrb.mxu3 %v3267_v9 }
 0x2f7   : > { %1195 = vmatpush.msrb.mxu3 %v3272_v10 }
 0x2fc   : > { %2648 = vmatmul.msk.f32.vlgmr.msra.gmra.mxu3 %vm636_vm4, %v1004_v29 }
 0x2fd   : > { %1367 = vmatpush.msra.mxu3 %v3267_v9 }
 0x2ff   : > { %1368 = vmatpush.msra.mxu3 %v3272_v10 }
 0x304   : > { %2654 = vmatmul.msk.f32.vlgmr.msrb.gmra.mxu3 %vm636_vm4, %v1177_v30 }
 0x305   : > { %1540 = vmatpush.msrb.mxu3 %v3267_v9 }
 0x307   : > { %1541 = vmatpush.msrb.mxu3 %v3272_v10 }
 0x30c   : > { %2660 = vmatmul.msk.f32.vlgmr.msra.gmra.mxu3 %vm636_vm4, %v1350_v31 }
 0x30d   : > { %1713 = vmatpush.msra.mxu3 %v3267_v9 }
 0x30f   : > { %1714 = vmatpush.msra.mxu3 %v3272_v10 }
 0x314   : > { %2666 = vmatmul.msk.f32.vlgmr.msrb.gmra.mxu3 %vm636_vm4, %v1523_v32 }
 0x315   : > { %1886 = vmatpush.msrb.mxu3 %v3267_v9 }
 0x317   : > { %1887 = vmatpush.msrb.mxu3 %v3272_v10 }
 0x31c   : > { %2672 = vmatmul.msk.f32.vlgmr.msra.gmra.mxu3 %vm636_vm4, %v1696_v33 }
 0x31d   : > { %2092 = vmatpush.msra.mxu3 %v2048_v34 }
 0x31f   : > { %2093 = vmatpush.msra.mxu3 %v2046_v35 }
 0x321   : > { %2094 = vmatpush.msra.mxu3 %v2044_v36 }
 0x323   : > { %2095 = vmatpush.msra.mxu3 %v2042_v37 }
 0x324   : > { %2678 = vmatmul.msk.f32.vlgmr.msrb.gmra.mxu3 %vm636_vm4, %v1869_v38 }
 0x325   : > { %2688 = vmatpush.xpose.msk.msrb.mxu3 %vm636_vm4, %v3311_v24 }
 0x34e   : > { %v808_v36 = vpop.permute.xlu2 %807 }
 0x36f   : > { %v676_v40 = vpop.f32.mrf.mxu3 }
 0x370   : > { %v677_v41 = vadd.f32 %v676_v40, %v3372_v39 }
 0x372   : > { %v702_v42 = vadd.f32 %v700_v28, %v677_v41 }
 0x374   : > { %v2639_v43 = vmul.f32 -1.442695, %v702_v42 }
 0x376   : > { %2763 = vpow2.f32 %v2639_v43 }
 0x377   : > { %v851_v42 = vpop.f32.mrf.mxu3 }
 0x378   : > { %v852_v43 = vadd.f32 %v851_v42, %v3372_v39 }
 0x37c   : > { %v2764_v44 = vpop.eup %2763 }
 0x37d   : > { %v706_v45 = vadd.f32 1.0, %v2764_v44 }
 0x37f   : > { %2765 = vrcp.f32 %v706_v45  ;;  %v718_v49 = vand.u32 2147483648, %v706_v45  ;;  %v716_v51 = vand.u32 2147483647, %v706_v45  ;;  %vm712_vm6 = vweird.f32 %v706_v45 }
 0x381   : > { %v719_v54 = vor.u32 1.1754944e-38, %v718_v49  ;;  %vm717_vm8 = vcmp.eq.f32.partialorder %v716_v51, 8.507059e+37 }
 0x385   : > { %v2766_v46 = vpop.eup %2765 }
 0x386   : > { %v708_v47 = vmul.f32 %v2766_v46, %v706_v45  ;;  %vm713_vm5 = vweird.f32 %v2766_v46 }
 0x387   : > { %vm714_vm7 = vmor %vm712_vm6, %vm713_vm5 }
 0x388   : > { %v709_v48 = vsub.f32 1.0, %v708_v47 }
 0x38a   : > { %v710_v50 = vmul.f32 %v2766_v46, %v709_v48 }
 0x38c   : > { %v711_v52 = vadd.f32 %v2766_v46, %v710_v50 }
 0x38e   : > { %v715_v55 = vsel %vm714_vm7, %v2766_v46, %v711_v52 }
 0x38f   : > { %v720_v56 = vsel %vm717_vm8, %v719_v54, %v715_v55 }
 0x390   : > { %v726_v57 = vmul.f32 %v724_v53, %v720_v56  ;;  %v733_v2 = vsub.f32 1.0, %v720_v56  ;;  %v739_v9 = vmul.f32 0.0, %v720_v56 }
 0x392   : > { %728 = vrot.lane.b32.xlu0 %v726_v57, %s3971_s23 }
 0x404   : > { %v729_v58 = vpop.permute.xlu0 %728 }
 0x405   : > { %v731_v59 = vadd.f32 %v729_v58, %v677_v41 }
 0x407   : > { %2767 = vtanh.f32 %v731_v59 }
 0x40d   : > { %v2768_v60 = vpop.eup %2767 }
 0x40e   : > { %735 = vrot.lane.b32.xlu1 %v2768_v60, %s3972_s8 }
 0x480   : > { %v736_v6 = vpop.permute.xlu1 %735 }
 0x481   : > { %v738_v10 = vmul.f32 %v736_v6, %v733_v2 }
 0x483   : > { %v3438_v13 = vadd.f32 %v739_v9, %v738_v10 }
 0x485   : > { %742 = vrot.lane.b32.xlu1 %v3438_v13, %s3972_s8 }
 0x4f7   : > { %v743_v17 = vpop.permute.xlu1 %742 }
 0x4f8   : > { %2640 = vmatmul.msk.f32.vlgmr.msra.gmra.mxu1 %vm333_vm2, %v743_v17  ;;  %2643 = vmatmul.msk.f32.vlgmr.msra.gmra.mxu0 %vm333_vm2, %v743_v17 }
 0x4f9   : > { %1103 = vmatpush.msra.mxu1 %v3391_v63  ;;  %1212 = vmatpush.msra.mxu0 %v3256_v7 }
 0x4fb   : > { %1104 = vmatpush.msra.mxu1 %v3396_v0  ;;  %1213 = vmatpush.msra.mxu0 %v3261_v8 }
 0x4fd   : > { %1105 = vmatpush.msra.mxu1 %v3408_v3  ;;  %1214 = vmatpush.msra.mxu0 %v3277_v11 }
 0x4ff   : > { %1106 = vmatpush.msra.mxu1 %v3420_v5  ;;  %1215 = vmatpush.msra.mxu0 %v3284_v12 }
 0x575   : > { %v763_v19 = vpop.f32.mrf.mxu1  ;;  %v871_v20 = vpop.f32.mrf.mxu0 }
 0x576   : > { %v764_v21 = vadd.f32 %v763_v19, %v3462_v18  ;;  %v872_v22 = vadd.f32 %v871_v20, %v3329_v26 }
 0x578   : > { %v786_v23 = vadd.f32 %v784_v16, %v764_v21  ;;  %895 = vrot.lane.b32.xlu2 %v872_v22, %s3971_s23  ;;  %v874_v44 = vadd.f32 %v872_v22, %v852_v43 }
 0x57a   : > { %v2641_v25 = vmul.f32 -1.442695, %v786_v23  ;;  %v2644_v45 = vmul.f32 -1.442695, %v874_v44 }
 0x57c   : > { %2769 = vpow2.f32 %v2641_v25 }
 0x582   : > { %v2770_v27 = vpop.eup %2769 }
 0x583   : > { %v790_v28 = vadd.f32 1.0, %v2770_v27 }
 0x585   : > { %2771 = vrcp.f32 %v790_v28  ;;  %v802_v32 = vand.u32 2147483648, %v790_v28  ;;  %v800_v34 = vand.u32 2147483647, %v790_v28  ;;  %vm796_vm10 = vweird.f32 %v790_v28 }
 0x586   : > { %2773 = vpow2.f32 %v2644_v45 }
 0x587   : > { %v803_v37 = vor.u32 1.1754944e-38, %v802_v32  ;;  %vm801_vm12 = vcmp.eq.f32.partialorder %v800_v34, 8.507059e+37 }
 0x58b   : > { %v2772_v29 = vpop.eup %2771 }
 0x58c   : > { %v792_v30 = vmul.f32 %v2772_v29, %v790_v28  ;;  %vm797_vm9 = vweird.f32 %v2772_v29  ;;  %v2774_v46 = vpop.eup %2773 }
 0x58d   : > { %vm798_vm11 = vmor %vm796_vm10, %vm797_vm9  ;;  %v878_v47 = vadd.f32 1.0, %v2774_v46 }
 0x58e   : > { %v793_v31 = vsub.f32 1.0, %v792_v30 }
 0x58f   : > { %2775 = vrcp.f32 %v878_v47  ;;  %v890_v53 = vand.u32 2147483648, %v878_v47  ;;  %vm884_vm14 = vweird.f32 %v878_v47  ;;  %v888_v54 = vand.u32 2147483647, %v878_v47 }
 0x590   : > { %v794_v33 = vmul.f32 %v2772_v29, %v793_v31 }
 0x591   : > { %v891_v56 = vor.u32 1.1754944e-38, %v890_v53  ;;  %vm889_vm0 = vcmp.eq.f32.partialorder %v888_v54, 8.507059e+37 }
 0x592   : > { %v795_v35 = vadd.f32 %v2772_v29, %v794_v33 }
 0x594   : > { %v799_v38 = vsel %vm798_vm11, %v2772_v29, %v795_v35 }
 0x595   : > { %v804_v40 = vsel %vm801_vm12, %v803_v37, %v799_v38  ;;  %v2776_v48 = vpop.eup %2775 }
 0x596   : > { %v810_v41 = vmul.f32 %v808_v36, %v804_v40  ;;  %v880_v49 = vmul.f32 %v2776_v48, %v878_v47  ;;  %vm885_vm13 = vweird.f32 %v2776_v48  ;;  %v817_v16 = vsub.f32 1.0, %v804_v40 }
 0x597   : > { %vm886_vm15 = vmor %vm884_vm14, %vm885_vm13  ;;  %v823_v19 = vmul.f32 0.0, %v804_v40 }
 0x598   : > { %812 = vrot.lane.b32.xlu0 %v810_v41, %s3971_s23  ;;  %v881_v50 = vsub.f32 1.0, %v880_v49 }
 0x59a   : > { %v882_v51 = vmul.f32 %v2776_v48, %v881_v50 }
 0x59c   : > { %v883_v52 = vadd.f32 %v2776_v48, %v882_v51 }
 0x59e   : > { %v887_v55 = vsel %vm886_vm15, %v2776_v48, %v883_v52  ;;  %v1024_v52 = vpop.f32.mrf.mxu3 }
 0x59f   : > { %v892_v58 = vsel %vm889_vm0, %v891_v56, %v887_v55  ;;  %v1025_v54 = vadd.f32 %v1024_v52, %v3372_v39 }
 0x5a0   : > { %v911_v25 = vmul.f32 %v892_v58, %v3438_v13 }
 0x5d2   : > { %v896_v57 = vpop.permute.xlu2 %895 }
 0x5d3   : > { %v898_v59 = vmul.f32 %v896_v57, %v892_v58 }
 0x5d5   : > { %900 = vrot.lane.b32.xlu1 %v898_v59, %s3971_s23 }
 0x60a   : > { %v813_v60 = vpop.permute.xlu0 %812 }
 0x60b   : > { %v815_v2 = vadd.f32 %v813_v60, %v764_v21  ;;  %v905_v21 = vsub.f32 1.0, %v892_v58 }
 0x60d   : > { %2777 = vtanh.f32 %v815_v2 }
 0x613   : > { %v2778_v6 = vpop.eup %2777 }
 0x614   : > { %819 = vrot.lane.b32.xlu2 %v2778_v6, %s3972_s8 }
 0x647   : > { %v901_v9 = vpop.permute.xlu1 %900 }
 0x648   : > { %v903_v10 = vadd.f32 %v901_v9, %v852_v43 }
 0x64a   : > { %2779 = vtanh.f32 %v903_v10 }
 0x650   : > { %v2780_v15 = vpop.eup %2779 }
 0x651   : > { %907 = vrot.lane.b32.xlu0 %v2780_v15, %s3972_s8 }
 0x66e   : > { %v820_v17 = vpop.permute.xlu2 %819 }
 0x66f   : > { %v822_v20 = vmul.f32 %v820_v17, %v817_v16 }
 0x671   : > { %v3472_v22 = vadd.f32 %v823_v19, %v822_v20 }
 0x673   : > { %826 = vrot.lane.b32.xlu1 %v3472_v22, %s3972_s8 }
 0x6c3   : > { %v908_v23 = vpop.permute.xlu0 %907 }
 0x6c4   : > { %v910_v27 = vmul.f32 %v908_v23, %v905_v21 }
 0x6c6   : > { %v3477_v28 = vadd.f32 %v911_v25, %v910_v27 }
 0x6c8   : > { %914 = vrot.lane.b32.xlu2 %v3477_v28, %s3972_s8 }
 0x6e5   : > { %v827_v29 = vpop.permute.xlu1 %826 }
 0x6e6   : > { %830 = vst.msk [vmem:[%s3483_s18] sm:$0x1] %vm829_vm1, %v827_v29  ;;  %2646 = vmatmul.msk.f32.vlgmr.msrb.gmra.mxu2 %vm333_vm2, %v827_v29 }
 0x6e7   : > { %1298 = vmatpush.msrb.mxu2 %v3380_v61 }
 0x6e9   : > { %1299 = vmatpush.msrb.mxu2 %v3385_v62 }
 0x6eb   : > { %1300 = vmatpush.msrb.mxu2 %v3401_v1 }
 0x6ed   : > { %1301 = vmatpush.msrb.mxu2 %v3413_v4 }
 0x722   : > { %v915_v13 = vpop.permute.xlu2 %914 }
 0x723   : > { %2645 = vmatmul.msk.f32.vlgmr.msrb.gmra.mxu1 %vm333_vm2, %v915_v13  ;;  %2649 = vmatmul.msk.f32.vlgmr.msrb.gmra.mxu0 %vm333_vm2, %v915_v13 }
 0x724   : > { %1276 = vmatpush.msrb.mxu1 %v3391_v63  ;;  %1385 = vmatpush.msrb.mxu0 %v3256_v7 }
 0x726   : > { %1277 = vmatpush.msrb.mxu1 %v3396_v0  ;;  %1386 = vmatpush.msrb.mxu0 %v3261_v8 }
 0x728   : > { %1278 = vmatpush.msrb.mxu1 %v3408_v3  ;;  %1387 = vmatpush.msrb.mxu0 %v3277_v11 }
 0x72a   : > { %1279 = vmatpush.msrb.mxu1 %v3420_v5  ;;  %1388 = vmatpush.msrb.mxu0 %v3284_v12 }
 0x769   : > { %v957_v30 = vpop.f32.mrf.mxu2 }
 0x76a   : > { %v958_v31 = vadd.f32 %v957_v30, %v3445_v14 }
 0x76c   : > { %981 = vrot.lane.b32.xlu0 %v958_v31, %s3971_s23 }
 0x7a0   : > { %v1044_v32 = vpop.f32.mrf.mxu0  ;;  %v935_v34 = vpop.f32.mrf.mxu1 }
 0x7a1   : > { %v1045_v33 = vadd.f32 %v1044_v32, %v3329_v26  ;;  %v936_v35 = vadd.f32 %v935_v34, %v3462_v18 }
 0x7a3   : > { %1068 = vrot.lane.b32.xlu1 %v1045_v33, %s3971_s23  ;;  %v960_v36 = vadd.f32 %v958_v31, %v936_v35  ;;  %v1047_v55 = vadd.f32 %v1045_v33, %v1025_v54 }
 0x7a5   : > { %v2647_v37 = vmul.f32 -1.442695, %v960_v36  ;;  %v2650_v56 = vmul.f32 -1.442695, %v1047_v55 }
 0x7a7   : > { %2781 = vpow2.f32 %v2647_v37 }
 0x7ad   : > { %v2782_v38 = vpop.eup %2781 }
 0x7ae   : > { %v964_v40 = vadd.f32 1.0, %v2782_v38 }
 0x7b0   : > { %2783 = vrcp.f32 %v964_v40  ;;  %v976_v46 = vand.u32 2147483648, %v964_v40  ;;  %vm970_vm5 = vweird.f32 %v964_v40  ;;  %v974_v47 = vand.u32 2147483647, %v964_v40 }
 0x7b1   : > { %2785 = vpow2.f32 %v2650_v56 }
 0x7b2   : > { %v977_v49 = vor.u32 1.1754944e-38, %v976_v46  ;;  %vm975_vm7 = vcmp.eq.f32.partialorder %v974_v47, 8.507059e+37 }
 0x7b6   : > { %v2784_v41 = vpop.eup %2783 }
 0x7b7   : > { %v966_v42 = vmul.f32 %v2784_v41, %v964_v40  ;;  %vm971_vm3 = vweird.f32 %v2784_v41  ;;  %v2786_v57 = vpop.eup %2785 }
 0x7b8   : > { %vm972_vm6 = vmor %vm970_vm5, %vm971_vm3  ;;  %v1051_v58 = vadd.f32 1.0, %v2786_v57 }
 0x7b9   : > { %v967_v43 = vsub.f32 1.0, %v966_v42 }
 0x7ba   : > { %2787 = vrcp.f32 %v1051_v58  ;;  %v1063_v10 = vand.u32 2147483648, %v1051_v58  ;;  %vm1057_vm9 = vweird.f32 %v1051_v58  ;;  %v1061_v15 = vand.u32 2147483647, %v1051_v58 }
 0x7bb   : > { %v968_v44 = vmul.f32 %v2784_v41, %v967_v43 }
 0x7bc   : > { %v1064_v17 = vor.u32 1.1754944e-38, %v1063_v10  ;;  %vm1062_vm11 = vcmp.eq.f32.partialorder %v1061_v15, 8.507059e+37  ;;  %v1197_v10 = vpop.f32.mrf.mxu3 }
 0x7bd   : > { %v969_v45 = vadd.f32 %v2784_v41, %v968_v44  ;;  %v1198_v15 = vadd.f32 %v1197_v10, %v3372_v39 }
 0x7bf   : > { %v973_v48 = vsel %vm972_vm6, %v2784_v41, %v969_v45 }
 0x7c0   : > { %v978_v50 = vsel %vm975_vm7, %v977_v49, %v973_v48  ;;  %v2788_v59 = vpop.eup %2787 }
 0x7c1   : > { %v1053_v60 = vmul.f32 %v2788_v59, %v1051_v58  ;;  %vm1058_vm8 = vweird.f32 %v2788_v59  ;;  %v991_v31 = vsub.f32 1.0, %v978_v50  ;;  %v997_v33 = vmul.f32 %v978_v50, %v3472_v22 }
 0x7c2   : > { %vm1059_vm10 = vmor %vm1057_vm9, %vm1058_vm8 }
 0x7c3   : > { %v1054_v2 = vsub.f32 1.0, %v1053_v60 }
 0x7c5   : > { %v1055_v6 = vmul.f32 %v2788_v59, %v1054_v2 }
 0x7c7   : > { %v1056_v9 = vadd.f32 %v2788_v59, %v1055_v6 }
 0x7c9   : > { %v1060_v16 = vsel %vm1059_vm10, %v2788_v59, %v1056_v9 }
 0x7ca   : > { %v1065_v20 = vsel %vm1062_vm11, %v1064_v17, %v1060_v16 }
 0x7cb   : > { %v1084_v38 = vmul.f32 %v1065_v20, %v3477_v28 }
 0x7de   : > { %v982_v51 = vpop.permute.xlu0 %981 }
 0x7df   : > { %v984_v53 = vmul.f32 %v982_v51, %v978_v50 }
 0x7e1   : > { %986 = vrot.lane.b32.xlu2 %v984_v53, %s3971_s23 }
 0x815   : > { %v1069_v19 = vpop.permute.xlu1 %1068 }
 0x816   : > { %v1071_v21 = vmul.f32 %v1069_v19, %v1065_v20 }
 0x818   : > { %1073 = vrot.lane.b32.xlu0 %v1071_v21, %s3971_s23 }
 0x83b   : > { %v987_v23 = vpop.permute.xlu2 %986 }
 0x83c   : > { %v989_v25 = vadd.f32 %v987_v23, %v936_v35  ;;  %v1078_v35 = vsub.f32 1.0, %v1065_v20 }
 0x83e   : > { %2789 = vtanh.f32 %v989_v25 }
 0x844   : > { %v2790_v27 = vpop.eup %2789 }
 0x845   : > { %993 = vrot.lane.b32.xlu1 %v2790_v27, %s3972_s8 }
 0x88a   : > { %v1074_v29 = vpop.permute.xlu0 %1073 }
 0x88b   : > { %v1076_v13 = vadd.f32 %v1074_v29, %v1025_v54 }
 0x88d   : > { %2791 = vtanh.f32 %v1076_v13 }
 0x893   : > { %v2792_v30 = vpop.eup %2791 }
 0x894   : > { %1080 = vrot.lane.b32.xlu2 %v2792_v30, %s3972_s8 }
 0x8b7   : > { %v994_v32 = vpop.permute.xlu1 %993 }
 0x8b8   : > { %v996_v34 = vmul.f32 %v994_v32, %v991_v31 }
 0x8ba   : > { %v3513_v36 = vadd.f32 %v997_v33, %v996_v34 }
 0x8bc   : > { %1000 = vrot.lane.b32.xlu0 %v3513_v36, %s3972_s8 }
 0x8ee   : > { %v1081_v37 = vpop.permute.xlu2 %1080 }
 0x8ef   : > { %v1083_v40 = vmul.f32 %v1081_v37, %v1078_v35 }
 0x8f1   : > { %v3518_v41 = vadd.f32 %v1084_v38, %v1083_v40 }
 0x8f3   : > { %1087 = vrot.lane.b32.xlu1 %v3518_v41, %s3972_s8 }
 0x92e   : > { %v1001_v42 = vpop.permute.xlu0 %1000 }
 0x92f   : > { %1003 = vst.msk [vmem:[%s3483_s18 + $0x1] sm:$0x1] %vm829_vm1, %v1001_v42  ;;  %2652 = vmatmul.msk.f32.vlgmr.msra.gmra.mxu2 %vm333_vm2, %v1001_v42 }
 0x930   : > { %1471 = vmatpush.msra.mxu2 %v3380_v61 }
 0x932   : > { %1472 = vmatpush.msra.mxu2 %v3385_v62 }
 0x934   : > { %1473 = vmatpush.msra.mxu2 %v3401_v1 }
 0x936   : > { %1474 = vmatpush.msra.mxu2 %v3413_v4 }
 0x965   : > { %v1088_v22 = vpop.permute.xlu1 %1087 }
 0x966   : > { %2651 = vmatmul.msk.f32.vlgmr.msra.gmra.mxu1 %vm333_vm2, %v1088_v22  ;;  %2655 = vmatmul.msk.f32.vlgmr.msra.gmra.mxu0 %vm333_vm2, %v1088_v22 }
 0x967   : > { %1449 = vmatpush.msra.mxu1 %v3391_v63  ;;  %1558 = vmatpush.msra.mxu0 %v3256_v7 }
 0x969   : > { %1450 = vmatpush.msra.mxu1 %v3396_v0  ;;  %1559 = vmatpush.msra.mxu0 %v3261_v8 }
 0x96b   : > { %1451 = vmatpush.msra.mxu1 %v3408_v3  ;;  %1560 = vmatpush.msra.mxu0 %v3277_v11 }
 0x96d   : > { %1452 = vmatpush.msra.mxu1 %v3420_v5  ;;  %1561 = vmatpush.msra.mxu0 %v3284_v12 }
 0x9b2   : > { %v1130_v28 = vpop.f32.mrf.mxu2 }
 0x9b3   : > { %v1131_v43 = vadd.f32 %v1130_v28, %v3445_v14 }
 0x9b5   : > { %1154 = vrot.lane.b32.xlu2 %v1131_v43, %s3971_s23 }
 0x9e3   : > { %v1108_v44 = vpop.f32.mrf.mxu1  ;;  %v1217_v45 = vpop.f32.mrf.mxu0 }
 0x9e4   : > { %v1109_v46 = vadd.f32 %v1108_v44, %v3462_v18  ;;  %v1218_v47 = vadd.f32 %v1217_v45, %v3329_v26 }
 0x9e6   : > { %v1133_v48 = vadd.f32 %v1131_v43, %v1109_v46  ;;  %1241 = vrot.lane.b32.xlu0 %v1218_v47, %s3971_s23  ;;  %v1220_v16 = vadd.f32 %v1218_v47, %v1198_v15 }
 0x9e8   : > { %v2653_v49 = vmul.f32 -1.442695, %v1133_v48  ;;  %v2656_v17 = vmul.f32 -1.442695, %v1220_v16 }
 0x9ea   : > { %2793 = vpow2.f32 %v2653_v49 }
 0x9f0   : > { %v2794_v50 = vpop.eup %2793 }
 0x9f1   : > { %v1137_v51 = vadd.f32 1.0, %v2794_v50 }
 0x9f3   : > { %2795 = vrcp.f32 %v1137_v51  ;;  %v1149_v57 = vand.u32 2147483648, %v1137_v51  ;;  %vm1143_vm13 = vweird.f32 %v1137_v51  ;;  %v1147_v58 = vand.u32 2147483647, %v1137_v51 }
 0x9f4   : > { %2797 = vpow2.f32 %v2656_v17 }
 0x9f5   : > { %v1150_v60 = vor.u32 1.1754944e-38, %v1149_v57  ;;  %vm1148_vm15 = vcmp.eq.f32.partialorder %v1147_v58, 8.507059e+37 }
 0x9f9   : > { %v2796_v52 = vpop.eup %2795 }
 0x9fa   : > { %v1139_v53 = vmul.f32 %v2796_v52, %v1137_v51  ;;  %vm1144_vm12 = vweird.f32 %v2796_v52  ;;  %v2798_v19 = vpop.eup %2797 }
 0x9fb   : > { %vm1145_vm14 = vmor %vm1143_vm13, %vm1144_vm12  ;;  %v1224_v20 = vadd.f32 1.0, %v2798_v19 }
 0x9fc   : > { %v1140_v54 = vsub.f32 1.0, %v1139_v53 }
 0x9fd   : > { %2799 = vrcp.f32 %v1224_v20  ;;  %v1236_v13 = vand.u32 2147483648, %v1224_v20  ;;  %vm1230_vm3 = vweird.f32 %v1224_v20  ;;  %v1234_v30 = vand.u32 2147483647, %v1224_v20 }
 0x9fe   : > { %v1141_v55 = vmul.f32 %v2796_v52, %v1140_v54 }
 0x9ff   : > { %v1237_v32 = vor.u32 1.1754944e-38, %v1236_v13  ;;  %vm1235_vm6 = vcmp.eq.f32.partialorder %v1234_v30, 8.507059e+37 }
 0xa00   : > { %v1142_v56 = vadd.f32 %v2796_v52, %v1141_v55 }
 0xa02   : > { %v1146_v59 = vsel %vm1145_vm14, %v2796_v52, %v1142_v56 }
 0xa03   : > { %v1151_v6 = vsel %vm1148_vm15, %v1150_v60, %v1146_v59  ;;  %v2800_v21 = vpop.eup %2799 }
 0xa04   : > { %v1226_v23 = vmul.f32 %v2800_v21, %v1224_v20  ;;  %vm1231_vm0 = vweird.f32 %v2800_v21  ;;  %v1164_v43 = vsub.f32 1.0, %v1151_v6  ;;  %v1170_v45 = vmul.f32 %v1151_v6, %v3513_v36 }
 0xa05   : > { %vm1232_vm5 = vmor %vm1230_vm3, %vm1231_vm0 }
 0xa06   : > { %v1227_v25 = vsub.f32 1.0, %v1226_v23 }
 0xa08   : > { %v1228_v27 = vmul.f32 %v2800_v21, %v1227_v25 }
 0xa0a   : > { %v1229_v29 = vadd.f32 %v2800_v21, %v1228_v27 }
 0xa0c   : > { %v1233_v31 = vsel %vm1232_vm5, %v2800_v21, %v1229_v29 }
 0xa0d   : > { %v1238_v33 = vsel %vm1235_vm6, %v1237_v32, %v1233_v31 }
 0xa0e   : > { %v1257_v50 = vmul.f32 %v1238_v33, %v3518_v41 }
 0xa0f   : > { %v1155_v2 = vpop.permute.xlu2 %1154 }
 0xa10   : > { %v1157_v9 = vmul.f32 %v1155_v2, %v1151_v6  ;;  %v1370_v6 = vpop.f32.mrf.mxu3 }
 0xa11   : > { %v1371_v10 = vadd.f32 %v1370_v6, %v3372_v39 }
 0xa12   : > { %1159 = vrot.lane.b32.xlu1 %v1157_v9, %s3971_s23 }
 0xa58   : > { %v1242_v34 = vpop.permute.xlu0 %1241 }
 0xa59   : > { %v1244_v35 = vmul.f32 %v1242_v34, %v1238_v33 }
 0xa5b   : > { %1246 = vrot.lane.b32.xlu2 %v1244_v35, %s3971_s23 }
 0xa84   : > { %v1160_v37 = vpop.permute.xlu1 %1159 }
 0xa85   : > { %v1162_v38 = vadd.f32 %v1160_v37, %v1109_v46  ;;  %v1251_v46 = vsub.f32 1.0, %v1238_v33 }
 0xa87   : > { %2801 = vtanh.f32 %v1162_v38 }
 0xa8d   : > { %v2802_v40 = vpop.eup %2801 }
 0xa8e   : > { %1166 = vrot.lane.b32.xlu0 %v2802_v40, %s3972_s8 }
 0xab5   : > { %v1247_v42 = vpop.permute.xlu2 %1246 }
 0xab6   : > { %v1249_v22 = vadd.f32 %v1247_v42, %v1198_v15 }
 0xab8   : > { %2803 = vtanh.f32 %v1249_v22 }
 0xabe   : > { %v2804_v28 = vpop.eup %2803 }
 0xabf   : > { %1253 = vrot.lane.b32.xlu1 %v2804_v28, %s3972_s8 }
 0xb00   : > { %v1167_v44 = vpop.permute.xlu0 %1166 }
 0xb01   : > { %v1169_v47 = vmul.f32 %v1167_v44, %v1164_v43 }
 0xb03   : > { %v3550_v48 = vadd.f32 %v1170_v45, %v1169_v47 }
 0xb05   : > { %1173 = vrot.lane.b32.xlu2 %v3550_v48, %s3972_s8 }
 0xb31   : > { %v1254_v49 = vpop.permute.xlu1 %1253 }
 0xb32   : > { %v1256_v51 = vmul.f32 %v1254_v49, %v1251_v46 }
 0xb34   : > { %v3555_v52 = vadd.f32 %v1257_v50, %v1256_v51 }
 0xb36   : > { %1260 = vrot.lane.b32.xlu0 %v3555_v52, %s3972_s8 }
 0xb5f   : > { %v1174_v53 = vpop.permute.xlu2 %1173 }
 0xb60   : > { %1176 = vst.msk [vmem:[%s3483_s18 + $0x2] sm:$0x1] %vm829_vm1, %v1174_v53  ;;  %2658 = vmatmul.msk.f32.vlgmr.msrb.gmra.mxu2 %vm333_vm2, %v1174_v53 }
 0xb61   : > { %1644 = vmatpush.msrb.mxu2 %v3380_v61 }
 0xb63   : > { %1645 = vmatpush.msrb.mxu2 %v3385_v62 }
 0xb65   : > { %1646 = vmatpush.msrb.mxu2 %v3401_v1 }
 0xb67   : > { %1647 = vmatpush.msrb.mxu2 %v3413_v4 }
 0xba8   : > { %v1261_v36 = vpop.permute.xlu0 %1260 }
 0xba9   : > { %2657 = vmatmul.msk.f32.vlgmr.msrb.gmra.mxu1 %vm333_vm2, %v1261_v36  ;;  %2661 = vmatmul.msk.f32.vlgmr.msrb.gmra.mxu0 %vm333_vm2, %v1261_v36 }
 0xbaa   : > { %1622 = vmatpush.msrb.mxu1 %v3391_v63  ;;  %1731 = vmatpush.msrb.mxu0 %v3256_v7 }
 0xbac   : > { %1623 = vmatpush.msrb.mxu1 %v3396_v0  ;;  %1732 = vmatpush.msrb.mxu0 %v3261_v8 }
 0xbae   : > { %1624 = vmatpush.msrb.mxu1 %v3408_v3  ;;  %1733 = vmatpush.msrb.mxu0 %v3277_v11 }
 0xbb0   : > { %1625 = vmatpush.msrb.mxu1 %v3420_v5  ;;  %1734 = vmatpush.msrb.mxu0 %v3284_v12 }
 0xbe3   : > { %v1303_v41 = vpop.f32.mrf.mxu2 }
 0xbe4   : > { %v1304_v54 = vadd.f32 %v1303_v41, %v3445_v14 }
 0xbe6   : > { %1327 = vrot.lane.b32.xlu1 %v1304_v54, %s3971_s23 }
 0xc26   : > { %v1281_v55 = vpop.f32.mrf.mxu1  ;;  %v1390_v56 = vpop.f32.mrf.mxu0 }
 0xc27   : > { %v1282_v7 = vadd.f32 %v1281_v55, %v3462_v18  ;;  %v1391_v57 = vadd.f32 %v1390_v56, %v3329_v26 }
 0xc29   : > { %v1306_v8 = vadd.f32 %v1304_v54, %v1282_v7  ;;  %1414 = vrot.lane.b32.xlu2 %v1391_v57, %s3971_s23  ;;  %v1393_v16 = vadd.f32 %v1391_v57, %v1371_v10 }
 0xc2b   : > { %v2659_v58 = vmul.f32 -1.442695, %v1306_v8  ;;  %v2662_v21 = vmul.f32 -1.442695, %v1393_v16 }
 0xc2d   : > { %2805 = vpow2.f32 %v2659_v58 }
 0xc33   : > { %v2806_v11 = vpop.eup %2805 }
 0xc34   : > { %v1310_v59 = vadd.f32 1.0, %v2806_v11 }
 0xc36   : > { %2807 = vrcp.f32 %v1310_v59  ;;  %v1322_v17 = vand.u32 2147483648, %v1310_v59  ;;  %vm1316_vm8 = vweird.f32 %v1310_v59  ;;  %v1320_v19 = vand.u32 2147483647, %v1310_v59 }
 0xc37   : > { %2809 = vpow2.f32 %v2662_v21 }
 0xc38   : > { %v1323_v23 = vor.u32 1.1754944e-38, %v1322_v17  ;;  %vm1321_vm10 = vcmp.eq.f32.partialorder %v1320_v19, 8.507059e+37 }
 0xc3c   : > { %v2808_v12 = vpop.eup %2807 }
 0xc3d   : > { %v1312_v60 = vmul.f32 %v2808_v12, %v1310_v59  ;;  %vm1317_vm7 = vweird.f32 %v2808_v12  ;;  %v2810_v13 = vpop.eup %2809 }
 0xc3e   : > { %vm1318_vm9 = vmor %vm1316_vm8, %vm1317_vm7  ;;  %v1397_v30 = vadd.f32 1.0, %v2810_v13 }
 0xc3f   : > { %v1313_v2 = vsub.f32 1.0, %v1312_v60 }
 0xc40   : > { %2811 = vrcp.f32 %v1397_v30  ;;  %v1409_v37 = vand.u32 2147483648, %v1397_v30  ;;  %vm1403_vm12 = vweird.f32 %v1397_v30  ;;  %v1407_v38 = vand.u32 2147483647, %v1397_v30 }
 0xc41   : > { %v1314_v9 = vmul.f32 %v2808_v12, %v1313_v2 }
 0xc42   : > { %v1410_v42 = vor.u32 1.1754944e-38, %v1409_v37  ;;  %vm1408_vm14 = vcmp.eq.f32.partialorder %v1407_v38, 8.507059e+37 }
 0xc43   : > { %v1315_v15 = vadd.f32 %v2808_v12, %v1314_v9 }
 0xc45   : > { %v1319_v20 = vsel %vm1318_vm9, %v2808_v12, %v1315_v15  ;;  %v1543_v15 = vpop.f32.mrf.mxu3 }
 0xc46   : > { %v1324_v27 = vsel %vm1321_vm10, %v1323_v23, %v1319_v20  ;;  %v2812_v31 = vpop.eup %2811  ;;  %v1544_v17 = vadd.f32 %v1543_v15, %v3372_v39 }
 0xc47   : > { %v1399_v32 = vmul.f32 %v2812_v31, %v1397_v30  ;;  %vm1404_vm11 = vweird.f32 %v2812_v31  ;;  %v1337_v51 = vsub.f32 1.0, %v1324_v27  ;;  %v1343_v36 = vmul.f32 %v1324_v27, %v3550_v48 }
 0xc48   : > { %vm1405_vm13 = vmor %vm1403_vm12, %vm1404_vm11 }
 0xc49   : > { %v1400_v33 = vsub.f32 1.0, %v1399_v32 }
 0xc4b   : > { %v1401_v34 = vmul.f32 %v2812_v31, %v1400_v33 }
 0xc4d   : > { %v1402_v35 = vadd.f32 %v2812_v31, %v1401_v34 }
 0xc4f   : > { %v1406_v40 = vsel %vm1405_vm13, %v2812_v31, %v1402_v35 }
 0xc50   : > { %v1411_v28 = vsel %vm1408_vm14, %v1410_v42, %v1406_v40 }
 0xc51   : > { %v1424_v55 = vsub.f32 1.0, %v1411_v28 }
 0xc58   : > { %v1328_v25 = vpop.permute.xlu1 %1327 }
 0xc59   : > { %v1330_v29 = vmul.f32 %v1328_v25, %v1324_v27 }
 0xc5b   : > { %1332 = vrot.lane.b32.xlu0 %v1330_v29, %s3971_s23 }
 0xc83   : > { %v1415_v22 = vpop.permute.xlu2 %1414 }
 0xc84   : > { %v1417_v43 = vmul.f32 %v1415_v22, %v1411_v28 }
 0xc86   : > { %1419 = vrot.lane.b32.xlu1 %v1417_v43, %s3971_s23 }
 0xccd   : > { %v1333_v44 = vpop.permute.xlu0 %1332 }
 0xcce   : > { %v1335_v45 = vadd.f32 %v1333_v44, %v1282_v7  ;;  %v1430_v7 = vmul.f32 %v1411_v28, %v3555_v52  ;;  %v2889_v52 = vld [vmem:[%s3965_s2 + $0x28] sm:$0xff] }
 0xcd0   : > { %2813 = vtanh.f32 %v1335_v45 }
 0xcd6   : > { %v2814_v47 = vpop.eup %2813 }
 0xcd7   : > { %1339 = vrot.lane.b32.xlu2 %v2814_v47, %s3972_s8 }
 0xcf8   : > { %v1420_v46 = vpop.permute.xlu1 %1419 }
 0xcf9   : > { %v1422_v49 = vadd.f32 %v1420_v46, %v1371_v10 }
 0xcfb   : > { %2815 = vtanh.f32 %v1422_v49 }
 0xd01   : > { %v2816_v50 = vpop.eup %2815 }
 0xd02   : > { %1426 = vrot.lane.b32.xlu0 %v2816_v50, %s3972_s8 }
 0xd31   : > { %v1340_v53 = vpop.permute.xlu2 %1339 }
 0xd32   : > { %v1342_v41 = vmul.f32 %v1340_v53, %v1337_v51 }
 0xd34   : > { %v3587_v54 = vadd.f32 %v1343_v36, %v1342_v41 }
 0xd36   : > { %1346 = vrot.lane.b32.xlu1 %v3587_v54, %s3972_s8 }
 0xd74   : > { %v1427_v56 = vpop.permute.xlu0 %1426 }
 0xd75   : > { %v1429_v57 = vmul.f32 %v1427_v56, %v1424_v55 }
 0xd77   : > { %v3592_v8 = vadd.f32 %v1430_v7, %v1429_v57 }
 0xd79   : > { %1433 = vrot.lane.b32.xlu2 %v3592_v8, %s3972_s8 }
 0xda8   : > { %v1347_v58 = vpop.permute.xlu1 %1346 }
 0xda9   : > { %1349 = vst.msk [vmem:[%s3483_s18 + $0x3] sm:$0x1] %vm829_vm1, %v1347_v58  ;;  %2664 = vmatmul.msk.f32.vlgmr.msra.gmra.mxu2 %vm333_vm2, %v1347_v58 }
 0xdaa   : > { %1817 = vmatpush.msra.mxu2 %v3380_v61  ;;  %v2890_v61 = vld [vmem:[%s3965_s2 + $0x20] sm:$0xff] }
 0xdac   : > { %1818 = vmatpush.msra.mxu2 %v3385_v62  ;;  %v2891_v62 = vld [vmem:[%s3965_s2 + $0x18] sm:$0xff] }
 0xdae   : > { %1819 = vmatpush.msra.mxu2 %v3401_v1  ;;  %v2892_v1 = vld [vmem:[%s3965_s2 + $0x10] sm:$0xff] }
 0xdb0   : > { %1820 = vmatpush.msra.mxu2 %v3413_v4 }
 0xdd3   : > { %v1434_v48 = vpop.permute.xlu2 %1433 }
 0xdd4   : > { %2663 = vmatmul.msk.f32.vlgmr.msra.gmra.mxu1 %vm333_vm2, %v1434_v48  ;;  %2667 = vmatmul.msk.f32.vlgmr.msra.gmra.mxu0 %vm333_vm2, %v1434_v48 }
 0xdd5   : > { %1904 = vmatpush.msra.mxu0 %v2889_v52  ;;  %1795 = vmatpush.msra.mxu1 %v3391_v63 }
 0xdd7   : > { %1905 = vmatpush.msra.mxu0 %v2890_v61  ;;  %1796 = vmatpush.msra.mxu1 %v3396_v0 }
 0xdd9   : > { %1906 = vmatpush.msra.mxu0 %v2891_v62  ;;  %1797 = vmatpush.msra.mxu1 %v3408_v3 }
 0xddb   : > { %1907 = vmatpush.msra.mxu0 %v2892_v1  ;;  %1798 = vmatpush.msra.mxu1 %v3420_v5  ;;  %v2895_v1 = vld [vmem:[%s3965_s2 + $0x58] sm:$0xff] }
 0xe2c   : > { %v1476_v63 = vpop.f32.mrf.mxu2 }
 0xe2d   : > { %v1477_v11 = vadd.f32 %v1476_v63, %v3445_v14 }
 0xe2f   : > { %1500 = vrot.lane.b32.xlu0 %v1477_v11, %s3971_s23 }
 0xe51   : > { %v1563_v0 = vpop.f32.mrf.mxu0  ;;  %v1454_v12 = vpop.f32.mrf.mxu1 }
 0xe52   : > { %v1564_v59 = vadd.f32 %v1563_v0, %v3329_v26  ;;  %v1455_v3 = vadd.f32 %v1454_v12, %v3462_v18  ;;  %v2897_v0 = vld [vmem:[%s3965_s2 + $0x40] sm:$0xff] }
 0xe54   : > { %1587 = vrot.lane.b32.xlu1 %v1564_v59, %s3971_s23  ;;  %v1479_v60 = vadd.f32 %v1477_v11, %v1455_v3  ;;  %v1566_v19 = vadd.f32 %v1564_v59, %v1544_v17  ;;  %v2896_v11 = vld [vmem:[%s3965_s2 + $0x48] sm:$0xff]  ;;  %v2898_v59 = vld [vmem:[%s3965_s2 + $0x38] sm:$0xff] }
 0xe56   : > { %v2665_v2 = vmul.f32 -1.442695, %v1479_v60  ;;  %v2668_v26 = vmul.f32 -1.442695, %v1566_v19 }
 0xe58   : > { %2817 = vpow2.f32 %v2665_v2  ;;  %v3673_v2 = vld [vmem:[%s3965_s2 + $0x71] sm:$0x1] }
 0xe5e   : > { %v2818_v6 = vpop.eup %2817 }
 0xe5f   : > { %v1483_v9 = vadd.f32 1.0, %v2818_v6 }
 0xe61   : > { %2819 = vrcp.f32 %v1483_v9  ;;  %v1495_v23 = vand.u32 2147483648, %v1483_v9  ;;  %vm1489_vm0 = vweird.f32 %v1483_v9  ;;  %v1493_v25 = vand.u32 2147483647, %v1483_v9 }
 0xe62   : > { %2821 = vpow2.f32 %v2668_v26 }
 0xe63   : > { %v1496_v29 = vor.u32 1.1754944e-38, %v1495_v23  ;;  %vm1494_vm5 = vcmp.eq.f32.partialorder %v1493_v25, 8.507059e+37 }
 0xe67   : > { %v2820_v5 = vpop.eup %2819 }
 0xe68   : > { %v1485_v10 = vmul.f32 %v2820_v5, %v1483_v9  ;;  %vm1490_vm15 = vweird.f32 %v2820_v5  ;;  %v2822_v32 = vpop.eup %2821 }
 0xe69   : > { %vm1491_vm3 = vmor %vm1489_vm0, %vm1490_vm15  ;;  %v1570_v39 = vadd.f32 1.0, %v2822_v32  ;;  %v3682_v32 = vld [vmem:[%s3965_s2 + $0x70] sm:$0x1] }
 0xe6a   : > { %v1486_v16 = vsub.f32 1.0, %v1485_v10 }
 0xe6b   : > { %2823 = vrcp.f32 %v1570_v39  ;;  %v1582_v40 = vand.u32 2147483648, %v1570_v39  ;;  %vm1576_vm7 = vweird.f32 %v1570_v39  ;;  %v1580_v42 = vand.u32 2147483647, %v1570_v39 }
 0xe6c   : > { %v1487_v20 = vmul.f32 %v2820_v5, %v1486_v16 }
 0xe6d   : > { %v1583_v28 = vor.u32 1.1754944e-38, %v1582_v40  ;;  %vm1581_vm9 = vcmp.eq.f32.partialorder %v1580_v42, 8.507059e+37 }
 0xe6e   : > { %v1488_v21 = vadd.f32 %v2820_v5, %v1487_v20 }
 0xe70   : > { %v1492_v27 = vsel %vm1491_vm3, %v2820_v5, %v1488_v21 }
 0xe71   : > { %v1497_v13 = vsel %vm1494_vm5, %v1496_v29, %v1492_v27  ;;  %v2824_v33 = vpop.eup %2823 }
 0xe72   : > { %v1572_v34 = vmul.f32 %v2824_v33, %v1570_v39  ;;  %vm1577_vm6 = vweird.f32 %v2824_v33  ;;  %v1510_v36 = vsub.f32 1.0, %v1497_v13  ;;  %v1516_v55 = vmul.f32 %v1497_v13, %v3587_v54  ;;  %v2893_v54 = vld [vmem:[%s3965_s2 + $0x68] sm:$0xff] }
 0xe73   : > { %vm1578_vm8 = vmor %vm1576_vm7, %vm1577_vm6 }
 0xe74   : > { %v1573_v35 = vsub.f32 1.0, %v1572_v34 }
 0xe76   : > { %v1574_v37 = vmul.f32 %v2824_v33, %v1573_v35 }
 0xe78   : > { %v1575_v38 = vadd.f32 %v2824_v33, %v1574_v37 }
 0xe7a   : > { %v1579_v22 = vsel %vm1578_vm8, %v2824_v33, %v1575_v38 }
 0xe7b   : > { %v1584_v44 = vsel %vm1581_vm9, %v1583_v28, %v1579_v22 }
 0xe7c   : > { %v1597_v57 = vsub.f32 1.0, %v1584_v44  ;;  %v1603_v48 = vmul.f32 %v1584_v44, %v3592_v8  ;;  %v2894_v8 = vld [vmem:[%s3965_s2 + $0x60] sm:$0xff] }
 0xea1   : > { %v1501_v30 = vpop.permute.xlu0 %1500 }
 0xea2   : > { %v1503_v31 = vmul.f32 %v1501_v30, %v1497_v13  ;;  %v1716_v30 = vpop.f32.mrf.mxu3 }
 0xea3   : > { %v1717_v39 = vadd.f32 %v3682_v32, %v1716_v30 }
 0xea4   : > { %1505 = vrot.lane.b32.xlu2 %v1503_v31, %s3971_s23 }
 0xec6   : > { %v1588_v43 = vpop.permute.xlu1 %1587 }
 0xec7   : > { %v1590_v45 = vmul.f32 %v1588_v43, %v1584_v44 }
 0xec9   : > { %1592 = vrot.lane.b32.xlu0 %v1590_v45, %s3971_s23 }
 0xefe   : > { %v1506_v47 = vpop.permute.xlu2 %1505 }
 0xeff   : > { %v1508_v46 = vadd.f32 %v1506_v47, %v1455_v3 }
 0xf01   : > { %2825 = vtanh.f32 %v1508_v46 }
 0xf07   : > { %v2826_v49 = vpop.eup %2825 }
 0xf08   : > { %1512 = vrot.lane.b32.xlu1 %v2826_v49, %s3972_s8 }
 0xf3b   : > { %v1593_v50 = vpop.permute.xlu0 %1592 }
 0xf3c   : > { %v1595_v51 = vadd.f32 %v1593_v50, %v1544_v17 }
 0xf3e   : > { %2827 = vtanh.f32 %v1595_v51 }
 0xf44   : > { %v2828_v53 = vpop.eup %2827 }
 0xf45   : > { %1599 = vrot.lane.b32.xlu2 %v2828_v53, %s3972_s8 }
 0xf7a   : > { %v1513_v41 = vpop.permute.xlu1 %1512 }
 0xf7b   : > { %v1515_v56 = vmul.f32 %v1513_v41, %v1510_v36 }
 0xf7d   : > { %v3632_v7 = vadd.f32 %v1516_v55, %v1515_v56 }
 0xf7f   : > { %1519 = vrot.lane.b32.xlu0 %v3632_v7, %s3972_s8 }
 0xf9f   : > { %v1600_v58 = vpop.permute.xlu2 %1599 }
 0xfa0   : > { %v1602_v52 = vmul.f32 %v1600_v58, %v1597_v57 }
 0xfa2   : > { %v3637_v61 = vadd.f32 %v1603_v48, %v1602_v52 }
 0xfa4   : > { %1606 = vrot.lane.b32.xlu1 %v3637_v61, %s3972_s8 }
 0xff1   : > { %v1520_v62 = vpop.permute.xlu0 %1519 }
 0xff2   : > { %1522 = vst.msk [vmem:[%s3483_s18 + $0x4] sm:$0x1] %vm829_vm1, %v1520_v62  ;;  %2670 = vmatmul.msk.f32.vlgmr.msrb.gmra.mxu2 %vm333_vm2, %v1520_v62 }
 0xff3   : > { %1990 = vmatpush.msrb.mxu2 %v2893_v54 }
 0xff5   : > { %1991 = vmatpush.msrb.mxu2 %v2894_v8 }
 0xff7   : > { %1992 = vmatpush.msrb.mxu2 %v2895_v1 }
 0xff9   : > { %1993 = vmatpush.msrb.mxu2 %v3413_v4  ;;  %v2899_v4 = vld [vmem:[%s3965_s2 + $0x30] sm:$0xff] }
0x1016   : > { %v1607_v63 = vpop.permute.xlu1 %1606 }
0x1017   : > { %2669 = vmatmul.msk.f32.vlgmr.msrb.gmra.mxu1 %vm333_vm2, %v1607_v63  ;;  %2673 = vmatmul.msk.f32.vlgmr.msrb.gmra.mxu0 %vm333_vm2, %v1607_v63 }
0x1018   : > { %1968 = vmatpush.msrb.mxu1 %v2896_v11 }
0x101a   : > { %1969 = vmatpush.msrb.mxu1 %v2897_v0  ;;  %v2047_v0 = vld [vmem:[%s3966_s3 + $0x28] sm:$0xff] }
0x101c   : > { %1970 = vmatpush.msrb.mxu1 %v2898_v59  ;;  %v2045_v59 = vld [vmem:[%s3966_s3 + $0x18] sm:$0xff] }
0x101e   : > { %1971 = vmatpush.msrb.mxu1 %v2899_v4 }
0x1075   : > { %v1649_v12 = vpop.f32.mrf.mxu2 }
0x1076   : > { %v1650_v3 = vadd.f32 %v1649_v12, %v3445_v14 }
0x1078   : > { %1673 = vrot.lane.b32.xlu2 %v1650_v3, %s3971_s23 }
0x1094   : > { %v1736_v60 = vpop.f32.mrf.mxu0  ;;  %v1627_v9 = vpop.f32.mrf.mxu1 }
0x1095   : > { %v1737_v6 = vadd.f32 %v3673_v2, %v1736_v60  ;;  %v1628_v5 = vadd.f32 %v1627_v9, %v3462_v18  ;;  %v3720_v60 = vld [vmem:[%s3965_s2 + $0x73] sm:$0x1] }
0x1097   : > { %1760 = vrot.lane.b32.xlu0 %v1737_v6, %s3971_s23  ;;  %v1652_v10 = vadd.f32 %v1650_v3, %v1628_v5  ;;  %v1739_v33 = vadd.f32 %v1737_v6, %v1717_v39 }
0x1099   : > { %v2671_v15 = vmul.f32 -1.442695, %v1652_v10  ;;  %v2674_v34 = vmul.f32 -1.442695, %v1739_v33 }
0x109b   : > { %2829 = vpow2.f32 %v2671_v15  ;;  %v3729_v15 = vld [vmem:[%s3965_s2 + $0x72] sm:$0x1] }
0x10a1   : > { %v2830_v16 = vpop.eup %2829 }
0x10a2   : > { %v1656_v14 = vadd.f32 1.0, %v2830_v16 }
0x10a4   : > { %2831 = vrcp.f32 %v1656_v14  ;;  %v1668_v23 = vand.u32 2147483648, %v1656_v14  ;;  %vm1662_vm11 = vweird.f32 %v1656_v14  ;;  %v1666_v25 = vand.u32 2147483647, %v1656_v14 }
0x10a5   : > { %2833 = vpow2.f32 %v2674_v34 }
0x10a6   : > { %v1669_v29 = vor.u32 1.1754944e-38, %v1668_v23  ;;  %vm1667_vm13 = vcmp.eq.f32.partialorder %v1666_v25, 8.507059e+37 }
0x10aa   : > { %v2832_v17 = vpop.eup %2831 }
0x10ab   : > { %v1658_v19 = vmul.f32 %v2832_v17, %v1656_v14  ;;  %vm1663_vm10 = vweird.f32 %v2832_v17  ;;  %v2834_v35 = vpop.eup %2833 }
0x10ac   : > { %vm1664_vm12 = vmor %vm1662_vm11, %vm1663_vm10  ;;  %v1743_v37 = vadd.f32 1.0, %v2834_v35 }
0x10ad   : > { %v1659_v20 = vsub.f32 1.0, %v1658_v19 }
0x10ae   : > { %2835 = vrcp.f32 %v1743_v37  ;;  %v1755_v43 = vand.u32 2147483648, %v1743_v37  ;;  %vm1749_vm15 = vweird.f32 %v1743_v37  ;;  %v1753_v44 = vand.u32 2147483647, %v1743_v37 }
0x10af   : > { %v1660_v26 = vmul.f32 %v2832_v17, %v1659_v20 }
0x10b0   : > { %v1756_v47 = vor.u32 1.1754944e-38, %v1755_v43  ;;  %vm1754_vm3 = vcmp.eq.f32.partialorder %v1753_v44, 8.507059e+37 }
0x10b1   : > { %v1661_v21 = vadd.f32 %v2832_v17, %v1660_v26  ;;  %v1889_v26 = vpop.f32.mrf.mxu3 }
0x10b3   : > { %v1665_v27 = vsel %vm1664_vm12, %v2832_v17, %v1661_v21  ;;  %v1890_v21 = vadd.f32 %v3682_v32, %v1889_v26 }
0x10b4   : > { %v1670_v13 = vsel %vm1667_vm13, %v1669_v29, %v1665_v27  ;;  %v2836_v38 = vpop.eup %2835 }
0x10b5   : > { %v1745_v40 = vmul.f32 %v2836_v38, %v1743_v37  ;;  %vm1750_vm14 = vweird.f32 %v2836_v38  ;;  %v1683_v57 = vsub.f32 1.0, %v1670_v13  ;;  %v1689_v48 = vmul.f32 %v1670_v13, %v3632_v7  ;;  %v2049_v7 = vld [vmem:[%s3966_s3 + $0x38] sm:$0xff] }
0x10b6   : > { %vm1751_vm0 = vmor %vm1749_vm15, %vm1750_vm14  ;;  %2112 = vmatpush.msrb.mxu0 %v2049_v7  ;;  %v2069_v7 = vld [vmem:[%s3966_s3 + $0x150] sm:$0xff] }
0x10b7   : > { %v1746_v42 = vsub.f32 1.0, %v1745_v40 }
0x10b8   : > { %2113 = vmatpush.msrb.mxu0 %v2047_v0 }
0x10b9   : > { %v1747_v22 = vmul.f32 %v2836_v38, %v1746_v42 }
0x10ba   : > { %2114 = vmatpush.msrb.mxu0 %v2045_v59 }
0x10bb   : > { %v1748_v28 = vadd.f32 %v2836_v38, %v1747_v22 }
0x10bd   : > { %v1752_v45 = vsel %vm1751_vm0, %v2836_v38, %v1748_v28 }
0x10be   : > { %v1757_v46 = vsel %vm1754_vm3, %v1756_v47, %v1752_v45  ;;  %vm2195_vm3 = vcmask 57344  }
0x10bf   : > { %v1770_v54 = vsub.f32 1.0, %v1757_v46  ;;  %v1776_v1 = vmul.f32 %v1757_v46, %v3637_v61  ;;  %v2043_v61 = vld [vmem:[%s3966_s3 + $0x8] sm:$0xff] }
0x10c0   : > { %2115 = vmatpush.msrb.mxu0 %v2043_v61 }
0x10d2   : > { %v1674_v18 = vpop.permute.xlu2 %1673 }
0x10d3   : > { %v1676_v31 = vmul.f32 %v1674_v18, %v1670_v13 }
0x10d5   : > { %1678 = vrot.lane.b32.xlu1 %v1676_v31, %s3971_s23 }
0x1109   : > { %v1761_v49 = vpop.permute.xlu0 %1760 }
0x110a   : > { %v1763_v50 = vmul.f32 %v1761_v49, %v1757_v46 }
0x110c   : > { %1765 = vrot.lane.b32.xlu2 %v1763_v50, %s3971_s23 }
0x1147   : > { %v1679_v51 = vpop.permute.xlu1 %1678 }
0x1148   : > { %v1681_v53 = vadd.f32 %v1679_v51, %v1628_v5 }
0x114a   : > { %2837 = vtanh.f32 %v1681_v53 }
0x1150   : > { %v2838_v36 = vpop.eup %2837 }
0x1151   : > { %1685 = vrot.lane.b32.xlu0 %v2838_v36, %s3972_s8 }
0x1166   : > { %v1766_v41 = vpop.permute.xlu2 %1765 }
0x1167   : > { %v1768_v55 = vadd.f32 %v1766_v41, %v1717_v39 }
0x1169   : > { %2839 = vtanh.f32 %v1768_v55 }
0x116f   : > { %v2840_v56 = vpop.eup %2839 }
0x1170   : > { %1772 = vrot.lane.b32.xlu1 %v2840_v56, %s3972_s8 }
0x11c3   : > { %v1686_v58 = vpop.permute.xlu0 %1685 }
0x11c4   : > { %v1688_v52 = vmul.f32 %v1686_v58, %v1683_v57 }
0x11c6   : > { %v3689_v62 = vadd.f32 %v1689_v48, %v1688_v52 }
0x11c8   : > { %1692 = vrot.lane.b32.xlu2 %v3689_v62, %s3972_s8 }
0x11e2   : > { %v1773_v8 = vpop.permute.xlu1 %1772 }
0x11e3   : > { %v1775_v63 = vmul.f32 %v1773_v8, %v1770_v54 }
0x11e5   : > { %v3694_v11 = vadd.f32 %v1776_v1, %v1775_v63  ;;  %v2071_v1 = vld [vmem:[%s3966_s3 + $0x170] sm:$0xff]  ;;  %v2070_v63 = vld [vmem:[%s3966_s3 + $0x160] sm:$0xff] }
0x11e7   : > { %1779 = vrot.lane.b32.xlu0 %v3694_v11, %s3972_s8 }
0x1222   : > { %v1693_v4 = vpop.permute.xlu2 %1692 }
0x1223   : > { %1695 = vst.msk [vmem:[%s3483_s18 + $0x5] sm:$0x1] %vm829_vm1, %v1693_v4  ;;  %2676 = vmatmul.msk.f32.vlgmr.msra.gmra.mxu2 %vm333_vm2, %v1693_v4 }
0x1224   : > { %2157 = vmatpush.msra.mxu2 %v2071_v1 }
0x1226   : > { %2158 = vmatpush.msra.mxu2 %v2070_v63  ;;  %v2072_v63 = vld [vmem:[%s3966_s3 + $0x181] ss:$0 sm:$0xff] }
0x1228   : > { %2159 = vmatpush.msra.mxu2 %v2069_v7 }
0x1259   : > { %v1780_v12 = vpop.permute.xlu0 %1779 }
0x125a   : > { %2675 = vmatmul.msk.f32.vlgmr.msra.gmra.mxu1 %vm333_vm2, %v1780_v12  ;;  %2679 = vmatmul.msk.f32.vlgmr.msra.gmra.mxu0 %vm333_vm2, %v1780_v12 }
0x125b   : > { %2690 = vmatpush.xpose.msk.msra.mxu0 %vm636_vm4, %v3311_v24 }
0x12a6   : > { %v1822_v3 = vpop.f32.mrf.mxu2 }
0x12a7   : > { %v1823_v6 = vadd.f32 %v3720_v60, %v1822_v3 }
0x12a9   : > { %1846 = vrot.lane.b32.xlu1 %v1823_v6, %s3971_s23 }
0x12d7   : > { %v1909_v9 = vpop.f32.mrf.mxu0  ;;  %v1800_v10 = vpop.f32.mrf.mxu1 }
0x12d8   : > { %v1910_v5 = vadd.f32 %v3673_v2, %v1909_v9  ;;  %v1801_v16 = vadd.f32 %v3729_v15, %v1800_v10 }
0x12da   : > { %1933 = vrot.lane.b32.xlu2 %v1910_v5, %s3971_s23  ;;  %v1825_v14 = vadd.f32 %v1823_v6, %v1801_v16  ;;  %v1912_v2 = vadd.f32 %v1910_v5, %v1890_v21 }
0x12dc   : > { %v2677_v17 = vmul.f32 -1.442695, %v1825_v14  ;;  %v2680_v25 = vmul.f32 -1.442695, %v1912_v2 }
0x12de   : > { %2841 = vpow2.f32 %v2677_v17 }
0x12e4   : > { %v2842_v19 = vpop.eup %2841 }
0x12e5   : > { %v1829_v20 = vadd.f32 1.0, %v2842_v19 }
0x12e7   : > { %2843 = vrcp.f32 %v1829_v20  ;;  %v1841_v39 = vand.u32 2147483648, %v1829_v20  ;;  %vm1835_vm6 = vweird.f32 %v1829_v20  ;;  %v1839_v33 = vand.u32 2147483647, %v1829_v20 }
0x12e8   : > { %2845 = vpow2.f32 %v2680_v25 }
0x12e9   : > { %v1842_v35 = vor.u32 1.1754944e-38, %v1841_v39  ;;  %vm1840_vm8 = vcmp.eq.f32.partialorder %v1839_v33, 8.507059e+37 }
0x12ed   : > { %v2844_v23 = vpop.eup %2843 }
0x12ee   : > { %v1831_v27 = vmul.f32 %v2844_v23, %v1829_v20  ;;  %v2846_v13 = vpop.eup %2845  ;;  %vm1836_vm5 = vweird.f32 %v2844_v23 }
0x12ef   : > { %v1916_v30 = vadd.f32 1.0, %v2846_v13  ;;  %vm1837_vm7 = vmor %vm1835_vm6, %vm1836_vm5 }
0x12f0   : > { %v1832_v29 = vsub.f32 1.0, %v1831_v27 }
0x12f1   : > { %2847 = vrcp.f32 %v1916_v30  ;;  %v1928_v44 = vand.u32 2147483648, %v1916_v30  ;;  %vm1922_vm10 = vweird.f32 %v1916_v30  ;;  %v1926_v45 = vand.u32 2147483647, %v1916_v30 }
0x12f2   : > { %v1833_v18 = vmul.f32 %v2844_v23, %v1832_v29 }
0x12f3   : > { %v1929_v46 = vor.u32 1.1754944e-38, %v1928_v44  ;;  %vm1927_vm12 = vcmp.eq.f32.partialorder %v1926_v45, 8.507059e+37  ;;  %v2061_v44 = vld [vmem:[%s3966_s3 + $0xd0] sm:$0xff]  ;;  %v2060_v45 = vld [vmem:[%s3966_s3 + $0xc0] sm:$0xff] }
0x12f4   : > { %v1834_v31 = vadd.f32 %v2844_v23, %v1833_v18 }
0x12f6   : > { %v1838_v34 = vsel %vm1837_vm7, %v2844_v23, %v1834_v31 }
0x12f7   : > { %v1843_v37 = vsel %vm1840_vm8, %v1842_v35, %v1838_v34  ;;  %v2848_v40 = vpop.eup %2847 }
0x12f8   : > { %v1918_v42 = vmul.f32 %v2848_v40, %v1916_v30  ;;  %vm1923_vm9 = vweird.f32 %v2848_v40  ;;  %v1856_v58 = vsub.f32 1.0, %v1843_v37  ;;  %v1862_v52 = vmul.f32 %v1843_v37, %v3689_v62  ;;  %v2068_v62 = vld [vmem:[%s3966_s3 + $0x140] sm:$0xff] }
0x12f9   : > { %vm1924_vm11 = vmor %vm1922_vm10, %vm1923_vm9  ;;  %2160 = vmatpush.msra.mxu2 %v2068_v62 }
0x12fa   : > { %v1919_v22 = vsub.f32 1.0, %v1918_v42  ;;  %v2065_v42 = vld [vmem:[%s3966_s3 + $0x110] sm:$0xff] }
0x12fc   : > { %v1920_v28 = vmul.f32 %v2848_v40, %v1919_v22  ;;  %v2064_v22 = vld [vmem:[%s3966_s3 + $0x100] sm:$0xff] }
0x12fe   : > { %v1921_v43 = vadd.f32 %v2848_v40, %v1920_v28  ;;  %v2063_v28 = vld [vmem:[%s3966_s3 + $0xf0] sm:$0xff] }
0x1300   : > { %v1925_v47 = vsel %vm1924_vm11, %v2848_v40, %v1921_v43  ;;  %v2066_v40 = vld [vmem:[%s3966_s3 + $0x120] sm:$0xff] }
0x1301   : > { %v1930_v50 = vsel %vm1927_vm12, %v1929_v46, %v1925_v47  ;;  %v2062_v43 = vld [vmem:[%s3966_s3 + $0xe0] sm:$0xff]  ;;  %v2059_v47 = vld [vmem:[%s3966_s3 + $0xb0] sm:$0xff] }
0x1302   : > { %v1943_v0 = vsub.f32 1.0, %v1930_v50  ;;  %v1949_v61 = vmul.f32 %v1930_v50, %v3694_v11  ;;  %v2058_v46 = vld [vmem:[%s3966_s3 + $0xa0] sm:$0xff] }
0x131b   : > { %v1847_v32 = vpop.permute.xlu1 %1846 }
0x131c   : > { %v1849_v38 = vmul.f32 %v1847_v32, %v1843_v37 }
0x131e   : > { %1851 = vrot.lane.b32.xlu0 %v1849_v38, %s3971_s23  ;;  %v2067_v38 = vld [vmem:[%s3966_s3 + $0x130] sm:$0xff] }
0x131f   : > { %2125 = vmatpush.msra.mxu1 %v2067_v38 }
0x1321   : > { %2126 = vmatpush.msra.mxu1 %v2066_v40 }
0x1323   : > { %2127 = vmatpush.msra.mxu1 %v2065_v42 }
0x1325   : > { %2128 = vmatpush.msra.mxu1 %v2064_v22 }
0x1327   : > { %2129 = vmatpush.msra.mxu1 %v2063_v28 }
0x1329   : > { %2130 = vmatpush.msra.mxu1 %v2062_v43 }
0x132b   : > { %2131 = vmatpush.msra.mxu1 %v2061_v44 }
0x132d   : > { %2132 = vmatpush.msra.mxu1 %v2060_v45 }
0x132f   : > { %2133 = vmatpush.msra.mxu1 %v2059_v47 }
0x1331   : > { %2134 = vmatpush.msra.mxu1 %v2058_v46 }
0x1334   : > { %v1934_v49 = vpop.permute.xlu2 %1933 }
0x1335   : > { %v1936_v51 = vmul.f32 %v1934_v49, %v1930_v50  ;;  %v2057_v50 = vld [vmem:[%s3966_s3 + $0x90] sm:$0xff] }
0x1336   : > { %2135 = vmatpush.msra.mxu1 %v2057_v50 }
0x1337   : > { %1938 = vrot.lane.b32.xlu1 %v1936_v51, %s3971_s23  ;;  %v2056_v51 = vld [vmem:[%s3966_s3 + $0x80] sm:$0xff] }
0x1338   : > { %2136 = vmatpush.msra.mxu1 %v2056_v51 }
0x1390   : > { %v1852_v53 = vpop.permute.xlu0 %1851 }
0x1391   : > { %v1854_v36 = vadd.f32 %v1852_v53, %v1801_v16  ;;  %v2055_v53 = vld [vmem:[%s3966_s3 + $0x70] sm:$0xff] }
0x1392   : > { %2137 = vmatpush.msra.mxu1 %v2055_v53 }
0x1393   : > { %2849 = vtanh.f32 %v1854_v36  ;;  %v2054_v36 = vld [vmem:[%s3966_s3 + $0x60] sm:$0xff] }
0x1394   : > { %2138 = vmatpush.msra.mxu1 %v2054_v36 }
0x1399   : > { %v2850_v41 = vpop.eup %2849 }
0x139a   : > { %1858 = vrot.lane.b32.xlu2 %v2850_v41, %s3972_s8  ;;  %v2052_v41 = vld [vmem:[%s3966_s3 + $0x40] sm:$0xff] }
0x13a9   : > { %v1939_v55 = vpop.permute.xlu1 %1938 }
0x13aa   : > { %v1941_v56 = vadd.f32 %v1939_v55, %v1890_v21  ;;  %v2684_v55 = vld [vmem:[%s3966_s3 + $0x180] ss:$8 sm:$0x3] }
0x13ac   : > { %2851 = vtanh.f32 %v1941_v56  ;;  %v2075_v56 = vperm.slane %v2684_v55, 1 }
0x13b2   : > { %v2852_v57 = vpop.eup %2851 }
0x13b3   : > { %1945 = vrot.lane.b32.xlu0 %v2852_v57, %s3972_s8 }
0x13f4   : > { %v1859_v48 = vpop.permute.xlu2 %1858 }
0x13f5   : > { %v1861_v54 = vmul.f32 %v1859_v48, %v1856_v58 }
0x13f7   : > { %v1863_v8 = vadd.f32 %v1862_v52, %v1861_v54  ;;  %v2074_v52 = vperm.slane %v2684_v55, 0 }
0x13f9   : > { %1865 = vrot.lane.b32.xlu1 %v1863_v8, %s3972_s8 }
0x1425   : > { %v1946_v59 = vpop.permute.xlu0 %1945 }
0x1426   : > { %v1948_v4 = vmul.f32 %v1946_v59, %v1943_v0 }
0x1428   : > { %v1950_v12 = vadd.f32 %v1949_v61, %v1948_v4 }
0x142a   : > { %1952 = vrot.lane.b32.xlu2 %v1950_v12, %s3972_s8 }
0x146b   : > { %v1866_v3 = vpop.permute.xlu1 %1865 }
0x146c   : > { %1868 = vst.msk [vmem:[%s3483_s18 + $0x6] sm:$0x1] %vm829_vm1, %v1866_v3  ;;  %2682 = vmatmul.msk.f32.vlgmr.msrb.gmra.mxu2 %vm333_vm2, %v1866_v3 }
0x146d   : > { %2692 = vmatpush.xpose.msk.msrb.mxu2 %vm636_vm4, %v3311_v24 }
0x1484   : > { %v1953_v6 = vpop.permute.xlu2 %1952 }
0x1485   : > { %2681 = vmatmul.msk.f32.vlgmr.msrb.gmra.mxu1 %vm333_vm2, %v1953_v6  ;;  %v2167_v6 = vlaneseq }
0x14ef   : > { %v1995_v9 = vpop.f32.mrf.mxu2 }
0x14f0   : > { %v1996_v5 = vadd.f32 %v3720_v60, %v1995_v9  ;;  %v3839_v9 = vand.u32 127, %v2167_v6 }
0x14f2   : > { %2019 = vrot.lane.b32.xlu0 %v1996_v5, %s3971_s23  ;;  %vm2248_vm5 = vcmp.ge.s32.totalorder %v3839_v9, 2  ;;  %vm2302_vm6 = vcmp.ge.s32.totalorder %v3839_v9, 3  ;;  %vm2410_vm7 = vcmp.ge.s32.totalorder %v3839_v9, 5 }
0x1502   : > { %v1973_v11 = vpop.f32.mrf.mxu1 }
0x1503   : > { %v1974_v10 = vadd.f32 %v3729_v15, %v1973_v11 }
0x1505   : > { %v1998_v16 = vadd.f32 %v1996_v5, %v1974_v10 }
0x1507   : > { %v2683_v14 = vmul.f32 -1.442695, %v1998_v16 }
0x1509   : > { %2853 = vpow2.f32 %v2683_v14 }
0x150f   : > { %v2854_v17 = vpop.eup %2853 }
0x1510   : > { %v2002_v19 = vadd.f32 1.0, %v2854_v17 }
0x1512   : > { %2855 = vrcp.f32 %v2002_v19  ;;  %v2014_v25 = vand.u32 2147483648, %v2002_v19  ;;  %vm2008_vm14 = vweird.f32 %v2002_v19  ;;  %v2012_v60 = vand.u32 2147483647, %v2002_v19 }
0x1514   : > { %v2015_v29 = vor.u32 1.1754944e-38, %v2014_v25  ;;  %vm2013_vm0 = vcmp.eq.f32.partialorder %v2012_v60, 8.507059e+37 }
0x1518   : > { %v2856_v20 = vpop.eup %2855 }
0x1519   : > { %v2004_v26 = vmul.f32 %v2856_v20, %v2002_v19  ;;  %vm2009_vm13 = vweird.f32 %v2856_v20 }
0x151a   : > { %vm2010_vm15 = vmor %vm2008_vm14, %vm2009_vm13 }
0x151b   : > { %v2005_v21 = vsub.f32 1.0, %v2004_v26 }
0x151d   : > { %v2006_v2 = vmul.f32 %v2856_v20, %v2005_v21 }
0x151f   : > { %v2007_v23 = vadd.f32 %v2856_v20, %v2006_v2 }
0x1521   : > { %v2011_v27 = vsel %vm2010_vm15, %v2856_v20, %v2007_v23 }
0x1522   : > { %v2016_v15 = vsel %vm2013_vm0, %v2015_v29, %v2011_v27 }
0x1523   : > { %v2029_v33 = vsub.f32 1.0, %v2016_v15  ;;  %v2035_v35 = vmul.f32 %v2016_v15, %v1863_v8 }
0x1564   : > { %v2020_v18 = vpop.permute.xlu0 %2019 }
0x1565   : > { %v2022_v13 = vmul.f32 %v2020_v18, %v2016_v15 }
0x1567   : > { %2024 = vrot.lane.b32.xlu1 %v2022_v13, %s3971_s23  ;;  %s297_s23 = scalar_lea.vmem %s3969_s6, %s3103_s15 }
0x15d9   : > { %v2025_v30 = vpop.permute.xlu1 %2024 }
0x15da   : > { %v2027_v31 = vadd.f32 %v2025_v30, %v1974_v10 }
0x15dc   : > { %2857 = vtanh.f32 %v2027_v31 }
0x15e2   : > { %v2858_v39 = vpop.eup %2857 }
0x15e3   : > { %2031 = vrot.lane.b32.xlu2 %v2858_v39, %s3972_s8 }
0x163d   : > { %v2032_v34 = vpop.permute.xlu2 %2031 }
0x163e   : > { %v2034_v32 = vmul.f32 %v2032_v34, %v2029_v33 }
0x1640   : > { %v2036_v37 = vadd.f32 %v2035_v35, %v2034_v32 }
0x1642   : > { %2038 = vrot.lane.b32.xlu0 %v2036_v37, %s3972_s8  ;;  %s3003_s8 = smov 80  }
0x16b4   : > { %v2039_v49 = vpop.permute.xlu0 %2038 }
0x16b5   : > { %2041 = vst.msk [vmem:[%s3483_s18 + $0x7] sm:$0x1] %vm829_vm1, %v2039_v49  ;;  %2685 = vmatmul.msk.f32.vlgmr.msra.gmra.mxu3 %vm333_vm2, %v2039_v49  ;;  %2686 = vmatmul.msk.f32.vlgmr.msrb.gmra.mxu0 %vm333_vm2, %v2039_v49  ;;  %vm2165_vm1 = vcmask 647168  }
0x16b6   : > { %2694 = vmatpush.xpose.msk.msra.mxu3 %vm636_vm4, %v3311_v24  ;;  %2696 = vmatpush.xpose.msk.msrb.mxu0 %vm636_vm4, %v3311_v24  ;;  %v2053_v24 = vld [vmem:[%s3966_s3 + $0x50] sm:$0xff] }
0x16b7   : > { %2139 = vmatpush.msra.mxu1 %v2053_v24 }
0x16b9   : > { %2140 = vmatpush.msra.mxu1 %v2052_v41 }
0x1732   : > { %v2117_v57 = vpop.f32.mrf.mxu0 }
0x1733   : > { %v2118_v58 = vadd.f32 %v2117_v57, %v2075_v56 }
0x1735   : > { %v2121_v48 = vmax.f32 %v2118_v58, 0.0 }
0x1737   : > { %2687 = vmatmul.msk.f32.vlgmr.msra.gmra.mxu2 %vm333_vm2, %v2121_v48  ;;  %vm2193_vm2 = vcmp.ge.s32.totalorder %v3839_v9, 1 }
0x1738   : > { %v2097_v54 = vpop.f32.mrf.mxu3 }
0x1739   : > { %v2098_v8 = vadd.f32 %v2097_v54, %v2074_v52 }
0x173b   : > { %v2120_v1 = vmax.f32 %v2098_v8, 0.0 }
0x173d   : > { %2141 = vmatmul.f32.vlgmr.msra.gmra.mxu1 %v2120_v1 }
0x17ba   : > { %v2142_v7 = vpop.f32.mrf.mxu1  ;;  %v2162_v0 = vpop.f32.mrf.mxu2 }
0x17bb   : > { %v2143_v62 = vadd.f32 %v2142_v7, %v2072_v63 }
0x17bd   : > { %v2163_v59 = vadd.f32 %v2162_v0, %v2143_v62 }
0x17bf   : > { %2166 = vst.msk [vmem:[%s297_s23] sm:$0x1] %vm2165_vm1, %v2163_v59  ;;  %2331 = vrot.lane.b32.xlu0 %v2163_v59, %s3003_s8  ;;  %2223 = vrot.lane.b32.xlu2 %v2163_v59, %s3004_s14  ;;  %s2478_s8 = scalar_lea.hbm %s3968_s5, %s2700_s21  ;;  %s2466_s14 = sshll.u32 %s3317_s20, 4  ;;  %s2467_s14 = int_to_ptr.vmem [resolvable:$true] %s2466_s14 }
0x17c0   : > { %2277 = vrot.lane.b32.xlu1 %v2163_v59, %s3979_s17  ;;  %2689 = vmatmul.msk.f32.vlgmr.msrb.gmra.mxu3 %vm636_vm4, %v2163_v59  ;;  %s2468_s17 = sshll.u32 %s2464_s9, 4  ;;  %s2482_s28 = sshll.u32 %s2478_s8, 4  ;;  %s2469_s17 = int_to_ptr.hbm [resolvable:$true] %s2468_s17  ;;  %s2483_s28 = int_to_ptr.hbm [resolvable:$true] %s2482_s28 }
0x17c1   : > { %s2918_s0 = sshra.s32 %s2469_s17, 4  ;;  %s2924_s21 = scalar_lea.hbm %s3967_s4, 16  ;;  %s2919_s0 = int_to_ptr.hbm [resolvable:$true] %s2918_s0 }
0x17c2   : > { %s2920_s1 = scalar_lea.hbm %s2919_s0, 8  ;;  %p2925_p0 = scmp.lt.s32.totalorder %s2919_s0, %s3967_s4 }
0x17c3   : > { %p2921_p11 = scmp.ne.s32.totalorder %s2919_s0, %s2920_s1  ;;  %p2926_p1 = scmp.lt.s32.totalorder %s2924_s21, %s2920_s1 }
0x17c5   : > { %p2922_p12 = pnand %p2921_p11, %p3088_p5  ;;  %p2927_p2 = por %p2926_p1, %p2925_p0 }
0x17c7   : > { %p2923_p13 = pneg %p2922_p12 }
0x17c8   : > { %2385 = vrot.lane.b32.xlu1 %v2163_v59, %s3980_s19  ;;  %s2443_s19 = scalar_lea.sflag [#allocation4], %s3305_s16 }
0x17c9   : > { %p2928_p3 = pnand %p2927_p2, %p2923_p13 }
0x1819   : > { %v2224_v61 = vpop.permute.xlu2 %2223 }
0x181a   : > { %2691 = vmatmul.msk.f32.vlgmr.msra.gmra.mxu0 %vm636_vm4, %v2224_v61 }
0x1831   : > { %v2332_v4 = vpop.permute.xlu0 %2331 }
0x1832   : > { %v2278_v12 = vpop.permute.xlu1 %2277  ;;  %2695 = vmatmul.msk.f32.vlgmr.msra.gmra.mxu3 %vm636_vm4, %v2332_v4 }
0x1833   : > { %2693 = vmatmul.msk.f32.vlgmr.msrb.gmra.mxu2 %vm636_vm4, %v2278_v12 }
0x183a   : > { %v2386_v3 = vpop.permute.xlu1 %2385 }
0x183b   : > { %2697 = vmatmul.msk.f32.vlgmr.msrb.gmra.mxu0 %vm636_vm4, %v2386_v3  ;;  %vm2356_vm4 = vcmp.ge.s32.totalorder %v3839_v9, 4 }
0x1843   : > { %v2189_v5 = vpop.f32.mrf.mxu3 }
0x1844   : > { %v3842_v11 = vmul.f32 10.0, %v2189_v5 }
0x1846   : > { %v2194_v10 = vsel %vm2193_vm2, %v3842_v11, -1e+30 }
0x1847   : > { %v2196_v16 = vsel %vm2195_vm3, %v2194_v10, -inf }
0x1848   : > { %2197 = vmax.xlane.f32.xlu2 %v2196_v16 }
0x1897   : > { %v2244_v14 = vpop.f32.mrf.mxu0 }
0x1898   : > { %v3849_v17 = vmul.f32 10.0, %v2244_v14 }
0x189a   : > { %v2249_v19 = vsel %vm2248_vm5, %v3849_v17, -1e+30 }
0x189b   : > { %v2250_v20 = vsel %vm2195_vm3, %v2249_v19, -inf }
0x189c   : > { %2251 = vmax.xlane.f32.xlu0 %v2250_v20 }
0x18b5   : > { %v2352_v26 = vpop.f32.mrf.mxu3 }
0x18b6   : > { %v2298_v21 = vpop.f32.mrf.mxu2  ;;  %v3856_v2 = vmul.f32 10.0, %v2352_v26 }
0x18b7   : > { %v3859_v23 = vmul.f32 10.0, %v2298_v21 }
0x18b8   : > { %v2406_v25 = vpop.f32.mrf.mxu0  ;;  %v2357_v60 = vsel %vm2356_vm4, %v3856_v2, -1e+30 }
0x18b9   : > { %v2303_v27 = vsel %vm2302_vm6, %v3859_v23, -1e+30  ;;  %v2358_v29 = vsel %vm2195_vm3, %v2357_v60, -inf  ;;  %v3868_v15 = vmul.f32 10.0, %v2406_v25 }
0x18ba   : > { %v2304_v18 = vsel %vm2195_vm3, %v2303_v27, -inf  ;;  %2359 = vmax.xlane.f32.xlu2 %v2358_v29 }
0x18bb   : > { %2305 = vmax.xlane.f32.xlu1 %v2304_v18  ;;  %v2198_v13 = vpop.xlane.xlu2 %2197  ;;  %v2411_v39 = vsel %vm2410_vm7, %v3868_v15, -1e+30 }
0x18bc   : > { %v2199_v30 = vsub.f32 %v2194_v10, %v2198_v13  ;;  %v2412_v33 = vsel %vm2195_vm3, %v2411_v39, -inf }
0x18be   : > { %v2200_v31 = vmul.f32 1.442695, %v2199_v30 }
0x18c0   : > { %2859 = vpow2.f32 %v2200_v31 }
0x18c2   : > { %2413 = vmax.xlane.f32.xlu2 %v2412_v33 }
0x18c6   : > { %v2860_v34 = vpop.eup %2859 }
0x18c7   : > { %v2202_v35 = vsel %vm2193_vm2, %v2860_v34, 0.0 }
0x18c8   : > { %v2203_v32 = vsel %vm2195_vm3, %v2202_v35, 0.0 }
0x18c9   : > { %2204 = vadd.xlane.f32.xlu0 %v2203_v32 }
0x190f   : > { %v2252_v37 = vpop.xlane.xlu0 %2251 }
0x1910   : > { %v2253_v38 = vsub.f32 %v2249_v19, %v2252_v37 }
0x1912   : > { %v2254_v40 = vmul.f32 1.442695, %v2253_v38 }
0x1914   : > { %2861 = vpow2.f32 %v2254_v40 }
0x191a   : > { %v2862_v42 = vpop.eup %2861 }
0x191b   : > { %v2256_v22 = vsel %vm2248_vm5, %v2862_v42, 0.0 }
0x191c   : > { %v2257_v28 = vsel %vm2195_vm3, %v2256_v22, 0.0 }
0x191d   : > { %2258 = vadd.xlane.f32.xlu1 %v2257_v28 }
0x192d   : > { %v2360_v43 = vpop.xlane.xlu2 %2359 }
0x192e   : > { %v2306_v44 = vpop.xlane.xlu1 %2305  ;;  %v2361_v45 = vsub.f32 %v2357_v60, %v2360_v43 }
0x192f   : > { %v2307_v47 = vsub.f32 %v2303_v27, %v2306_v44 }
0x1930   : > { %v2362_v46 = vmul.f32 1.442695, %v2361_v45 }
0x1931   : > { %v2308_v49 = vmul.f32 1.442695, %v2307_v47 }
0x1932   : > { %2863 = vpow2.f32 %v2362_v46 }
0x1933   : > { %2865 = vpow2.f32 %v2308_v49 }
0x1935   : > { %v2414_v50 = vpop.xlane.xlu2 %2413 }
0x1936   : > { %v2415_v51 = vsub.f32 %v2411_v39, %v2414_v50 }
0x1938   : > { %v2864_v53 = vpop.eup %2863  ;;  %v2416_v36 = vmul.f32 1.442695, %v2415_v51 }
0x1939   : > { %v2866_v24 = vpop.eup %2865  ;;  %v2364_v41 = vsel %vm2356_vm4, %v2864_v53, 0.0 }
0x193a   : > { %2867 = vpow2.f32 %v2416_v36  ;;  %v2310_v55 = vsel %vm2302_vm6, %v2866_v24, 0.0  ;;  %v2365_v56 = vsel %vm2195_vm3, %v2364_v41, 0.0 }
0x193b   : > { %v2311_v57 = vsel %vm2195_vm3, %v2310_v55, 0.0  ;;  %2366 = vadd.xlane.f32.xlu0 %v2365_v56 }
0x193c   : > { %2312 = vadd.xlane.f32.xlu2 %v2311_v57  ;;  %v2205_v58 = vpop.xlane.xlu0 %2204 }
0x193d   : > { %2869 = vlog2.f32 %v2205_v58 }
0x1940   : > { %v2868_v48 = vpop.eup %2867 }
0x1941   : > { %v2418_v52 = vsel %vm2410_vm7, %v2868_v48, 0.0 }
0x1942   : > { %v2419_v54 = vsel %vm2195_vm3, %v2418_v52, 0.0 }
0x1943   : > { %v2870_v8 = vpop.eup %2869  ;;  %2420 = vadd.xlane.f32.xlu1 %v2419_v54 }
0x1944   : > { %v2207_v1 = vmul.f32 0.6931472, %v2870_v8 }
0x1946   : > { %v2208_v63 = vadd.f32 %v2207_v1, %v2198_v13 }
0x1948   : > { %v2209_v7 = vsub.f32 %v3842_v11, %v2208_v63 }
0x194a   : > { %v2210_v62 = vsel %vm2193_vm2, %v2209_v7, 0.0 }
0x194b   : > { %v2211_v0 = vsel %vm2195_vm3, %v2210_v62, 0.0 }
0x194c   : > { %2212 = vadd.xlane.f32.xlu2 %v2211_v0 }
0x1990   : > { %v2259_v59 = vpop.xlane.xlu1 %2258 }
0x1991   : > { %2871 = vlog2.f32 %v2259_v59 }
0x1997   : > { %v2872_v61 = vpop.eup %2871 }
0x1998   : > { %v2261_v4 = vmul.f32 0.6931472, %v2872_v61 }
0x199a   : > { %v2262_v12 = vadd.f32 %v2261_v4, %v2252_v37 }
0x199c   : > { %v2263_v3 = vsub.f32 %v3849_v17, %v2262_v12 }
0x199e   : > { %v2264_v6 = vsel %vm2248_vm5, %v2263_v3, 0.0 }
0x199f   : > { %v2265_v5 = vsel %vm2195_vm3, %v2264_v6, 0.0 }
0x19a0   : > { %2266 = vadd.xlane.f32.xlu0 %v2265_v5 }
0x19ae   : > { %v2367_v11 = vpop.xlane.xlu0 %2366 }
0x19af   : > { %2873 = vlog2.f32 %v2367_v11  ;;  %v2313_v10 = vpop.xlane.xlu2 %2312 }
0x19b0   : > { %2875 = vlog2.f32 %v2313_v10 }
0x19b5   : > { %v2874_v16 = vpop.eup %2873 }
0x19b6   : > { %v2876_v14 = vpop.eup %2875  ;;  %v2369_v19 = vmul.f32 0.6931472, %v2874_v16  ;;  %v2421_v20 = vpop.xlane.xlu1 %2420 }
0x19b7   : > { %v2315_v26 = vmul.f32 0.6931472, %v2876_v14  ;;  %2877 = vlog2.f32 %v2421_v20 }
0x19b8   : > { %v2370_v21 = vadd.f32 %v2369_v19, %v2360_v43 }
0x19b9   : > { %v2316_v17 = vadd.f32 %v2315_v26, %v2306_v44 }
0x19ba   : > { %v2371_v25 = vsub.f32 %v3856_v2, %v2370_v21 }
0x19bb   : > { %v2317_v60 = vsub.f32 %v3859_v23, %v2316_v17 }
0x19bc   : > { %v2372_v27 = vsel %vm2356_vm4, %v2371_v25, 0.0 }
0x19bd   : > { %v2878_v29 = vpop.eup %2877  ;;  %v2373_v18 = vsel %vm2195_vm3, %v2372_v27, 0.0  ;;  %v2318_v13 = vsel %vm2302_vm6, %v2317_v60, 0.0 }
0x19be   : > { %v2423_v30 = vmul.f32 0.6931472, %v2878_v29  ;;  %2374 = vadd.xlane.f32.xlu2 %v2373_v18  ;;  %v2319_v31 = vsel %vm2195_vm3, %v2318_v13, 0.0 }
0x19bf   : > { %2320 = vadd.xlane.f32.xlu1 %v2319_v31 }
0x19c0   : > { %v2424_v2 = vadd.f32 %v2423_v30, %v2414_v50 }
0x19c2   : > { %v2425_v23 = vsub.f32 %v3868_v15, %v2424_v2 }
0x19c3   : > { %2931 = shalt.err (!%p2928_p3)
}
0x19c4   : > { %2704 = dma.vmem_to_hbm [thread:$0]  (%p3088_p5), %s2467_s14, 128, %s2469_s17, %s2443_s19   ;;  %v2426_v15 = vsel %vm2410_vm7, %v2425_v23, 0.0 }
0x19c5   : > { %s2480_s13 = sshll.u32 %s3483_s18, 4  ;;  %v2427_v39 = vsel %vm2195_vm3, %v2426_v15, 0.0  ;;  %s2448_s23 = scalar_lea.sflag [#allocation6], %s3305_s16  ;;  %s2481_s13 = int_to_ptr.vmem [resolvable:$true] %s2480_s13 }
0x19c6   : > { %s2946_s0 = sshra.s32 %s2483_s28, 4  ;;  %s2952_s14 = scalar_lea.hbm %s3968_s5, 16  ;;  %s2947_s0 = int_to_ptr.hbm [resolvable:$true] %s2946_s0 }
0x19c7   : > { %s2948_s1 = scalar_lea.hbm %s2947_s0, 8  ;;  %p2953_p9 = scmp.lt.s32.totalorder %s2947_s0, %s3968_s5 }
0x19c8   : > { %p2949_p4 = scmp.ne.s32.totalorder %s2947_s0, %s2948_s1  ;;  %p2954_p10 = scmp.lt.s32.totalorder %s2952_s14, %s2948_s1 }
0x19ca   : > { %p2950_p7 = pnand %p2949_p4, %p3088_p5  ;;  %p2955_p11 = por %p2954_p10, %p2953_p9 }
0x19cc   : > { %p2951_p8 = pneg %p2950_p7 }
0x19ce   : > { %p2956_p12 = pnand %p2955_p11, %p2951_p8 }
0x19d0   : > { %2959 = shalt.err (!%p2956_p12)
}
0x19d1   : > { %2705 = dma.vmem_to_hbm [thread:$0]  (%p3088_p5), %s2481_s13, 128, %s2483_s28, %s2448_s23   ;;  %2428 = vadd.xlane.f32.xlu0 %v2427_v39  ;;  %v3005_v9 = vmov 6.0   ;;  %v3006_v33 = vmov 7.0   ;;  %v3007_v34 = vmov 5.0   ;;  %v3008_v37 = vmov 4.0   ;;  %v2213_v58 = vpop.xlane.xlu2 %2212 }
0x19d2   : > { %2879 = vrcp.f32 %v3005_v9  ;;  %v3009_v42 = vmov 3.0   ;;  %s300_s28 = scalar_lea.vmem %s3970_s7, %s3103_s15  ;;  %vm2440_vm13 = vcmask 0  }
0x19d3   : > { %2881 = vrcp.f32 %v3006_v33 }
0x19d4   : > { %2883 = vrcp.f32 %v3007_v34 }
0x19d5   : > { %2885 = vrcp.f32 %v3008_v37 }
0x19d6   : > { %2887 = vrcp.f32 %v3009_v42 }
0x19d8   : > { %v2880_v35 = vpop.eup %2879 }
0x19d9   : > { %v2882_v32 = vpop.eup %2881  ;;  %v2269_v40 = vmul.f32 6.0, %v2880_v35  ;;  %vm2273_vm8 = vweird.f32 %v2880_v35 }
0x19da   : > { %v2884_v38 = vpop.eup %2883  ;;  %v2215_v22 = vmul.f32 7.0, %v2882_v32  ;;  %vm2219_vm9 = vweird.f32 %v2882_v32 }
0x19db   : > { %v2323_v28 = vmul.f32 5.0, %v2884_v38  ;;  %v2270_v43 = vsub.f32 1.0, %v2269_v40  ;;  %v2886_v44 = vpop.eup %2885  ;;  %vm2327_vm10 = vweird.f32 %v2884_v38 }
0x19dc   : > { %v2216_v45 = vsub.f32 1.0, %v2215_v22  ;;  %v2888_v47 = vpop.eup %2887  ;;  %v2377_v50 = vmul.f32 4.0, %v2886_v44  ;;  %vm2381_vm11 = vweird.f32 %v2886_v44 }
0x19dd   : > { %v2324_v46 = vsub.f32 1.0, %v2323_v28  ;;  %v2271_v49 = vmul.f32 %v2880_v35, %v2270_v43  ;;  %v2431_v53 = vmul.f32 3.0, %v2888_v47  ;;  %vm2435_vm12 = vweird.f32 %v2888_v47 }
0x19de   : > { %v2217_v51 = vmul.f32 %v2882_v32, %v2216_v45  ;;  %v2378_v41 = vsub.f32 1.0, %v2377_v50 }
0x19df   : > { %v2325_v36 = vmul.f32 %v2884_v38, %v2324_v46  ;;  %v2272_v24 = vadd.f32 %v2880_v35, %v2271_v49  ;;  %v2432_v56 = vsub.f32 1.0, %v2431_v53 }
0x19e0   : > { %v2218_v55 = vadd.f32 %v2882_v32, %v2217_v51  ;;  %v2379_v54 = vmul.f32 %v2886_v44, %v2378_v41 }
0x19e1   : > { %v2326_v57 = vadd.f32 %v2884_v38, %v2325_v36  ;;  %v2274_v48 = vsel %vm2273_vm8, %v2880_v35, %v2272_v24  ;;  %v2433_v1 = vmul.f32 %v2888_v47, %v2432_v56 }
0x19e2   : > { %v2220_v8 = vsel %vm2219_vm9, %v2882_v32, %v2218_v55  ;;  %v2380_v62 = vadd.f32 %v2886_v44, %v2379_v54 }
0x19e3   : > { %v2328_v7 = vsel %vm2327_vm10, %v2884_v38, %v2326_v57  ;;  %v2221_v0 = vmul.f32 %v2220_v8, %v2213_v58  ;;  %v2434_v4 = vadd.f32 %v2888_v47, %v2433_v1 }
0x19e4   : > { %v2382_v3 = vsel %vm2381_vm11, %v2886_v44, %v2380_v62 }
0x19e5   : > { %v2436_v11 = vsel %vm2435_vm12, %v2888_v47, %v2434_v4 }
0x1a13   : > { %v2267_v52 = vpop.xlane.xlu0 %2266 }
0x1a14   : > { %v2275_v63 = vmul.f32 %v2274_v48, %v2267_v52 }
0x1a16   : > { %v2276_v12 = vadd.f32 %v2275_v63, %v2221_v0 }
0x1a31   : > { %v2375_v6 = vpop.xlane.xlu2 %2374 }
0x1a32   : > { %v2321_v59 = vpop.xlane.xlu1 %2320  ;;  %v2383_v10 = vmul.f32 %v2382_v3, %v2375_v6 }
0x1a33   : > { %v2329_v61 = vmul.f32 %v2328_v7, %v2321_v59 }
0x1a35   : > { %v2330_v5 = vadd.f32 %v2329_v61, %v2276_v12 }
0x1a37   : > { %v2384_v14 = vadd.f32 %v2383_v10, %v2330_v5 }
0x1a44   : > { %v2429_v16 = vpop.xlane.xlu0 %2428 }
0x1a45   : > { %v2437_v19 = vmul.f32 %v2436_v11, %v2429_v16 }
0x1a47   : > { %v2438_v20 = vadd.f32 %v2437_v19, %v2384_v14 }
0x1a49   : > { %v2439_v26 = vsub.f32 0.0, %v2438_v20 }
0x1a4b   : > { %2441 = vst.msk [vmem:[%s300_s28] sm:$0x1] %vm2440_vm13, %v2439_v26 }
0x1a4c PF: > { %p2715_p5 = scmp.ge.s32.totalorder %s2998_s27, 2  ;;  %s2500_s19 = sand.u32 1, %s2986_s24  }
0x1a4d   : > { %s2501_s29 = scalar_lea.sflag [#allocation4], %s2500_s19 }
0x1a4e   : > { %p2709_p13 = pnand %p2715_p5, %p3092_p6 }
0x1a50   : > { %p2710_p0 = pneg %p2709_p13 }
0x1a52   : > { %2977 = dma.done.wait (%p2710_p0), %s2501_s29, 128  }
0x1a53   : > { %2979 = vsyncadd (%p2710_p0), %s2501_s29, 4294967168  ;;  %s2511_s21 = scalar_lea.sflag [#allocation6], %s2500_s19 }
0x1a54   : > { %2981 = dma.done.wait (%p2710_p0), %s2511_s21, 128  }
0x1a55   : > { %2983 = vsyncadd (%p2710_p0), %s2511_s21, 4294967168  ;;  %p21_p1 = scmp.ge.s32.totalorder %s3075_s30, 4   ;;  %s3981_s24 = smov %s2990_s25 }
0x1a56   : > { %s3982_s25 = smov %s2994_s26  ;;  %s3983_s26 = smov %s3086_s10 }
0x1a57   : > { %s3984_s27 = smov %s3075_s30  ;;  %23 = sbr.rel (!%p21_p1) target bundleno = 8 (0x8), region = 113 }
0x1a5c   :  { %2529 = vsyncpa [#allocation4], 1 }
0x1a5d   :  { %2531 = vsyncpa [#allocation4 + $0x1], 1 }
0x1a5e   :  { %2532 = vsyncpa [#allocation6], 1 }
0x1a5f   :  { %2534 = vsyncpa [#allocation6 + $0x1], 1 }

</bundles_post_ra>
